<compile_context>
chip_gen: v7x
topology: tpu7x:2x2x1
jax: 0.10.0
libtpu: 0.0.40
codegen_flags: <defaults>
</compile_context>

<pallas_src>
import functools

import jax
import jax.numpy as jnp
from jax import lax
from jax.experimental import pallas as pl
from jax.experimental.pallas import tpu as pltpu


# ------------------------------ fused kernel --------------------------------

def _dual_attention_kernel(x_ref, w_in_ref, w_out_ref, w_small_ref,
                           masks_ref, ab_ref, o_ref, *, H, W, B, ci):
    N = H * W
    BN = B * N
    Cin = x_ref.shape[0]

    x = x_ref[...]                                  # (Cin, BN)
    masks = masks_ref[...]                          # (9, BN)  boundary masks
    ones = jnp.ones((1, BN), jnp.float32)           # bias row for every matmul

    def tap_stack(a):
        # a: (C, BN) -> (9*C + 1, BN): 9 shifted+masked tap copies + ones row.
        taps = []
        for k in range(9):
            dy, dx = k // 3 - 1, k % 3 - 1
            s = dy * W + dx
            if s == 0:
                taps.append(a)                      # center tap: always valid
            else:
                # shifted[c, l] = a[c, l + s] (circular); wrapped / row-crossing
                # / cross-batch taps are zeroed by the precomputed mask.
                taps.append(pltpu.roll(a, shift=(-s) % BN, axis=1)
                            * masks[k:k + 1, :])
            if False:
                pass
        taps.append(ones)
        return jnp.concatenate(taps, axis=0)

    # ---- both input 3x3 convs (+bias, +ReLU) in ONE matmul -------------------
    Tx = tap_stack(x)                                           # (9*Cin+1, BN)
    inc = jnp.maximum(
        jnp.dot(w_in_ref[...], Tx, preferred_element_type=jnp.float32), 0.0)
    pos = inc[0:ci, :]                                          # (ci, BN)
    ch = inc[ci:2 * ci, :]                                      # (ci, BN)

    # ---- 1x1 B/C/D projections fused into one matmul -------------------------
    f_off = ((3 * ci + 7) // 8) * 8
    w_bcd = w_small_ref[0:3 * ci, :]                            # (3ci, ci+1)
    w_fus = w_small_ref[f_off:f_off + Cin, :]                   # (Cin, ci+1)

    pos_aug = jnp.concatenate([pos, ones], axis=0)              # (ci+1, BN)
    bcd = jnp.dot(w_bcd, pos_aug, preferred_element_type=jnp.float32)  # (3ci, BN)

    alpha = ab_ref[0]
    beta = ab_ref[1]

    # ---- attention (per-batch 128-aligned lane windows) ----------------------
    # TODO(synk): for feature maps beyond ~48x48, flash-tile the (N, N)
    # positional softmax over key blocks (online max/sum) and cast the MXU
    # operands to bf16 to stay inside v7x's 64 MiB VMEM.
    ds_parts, xa_parts = [], []
    for b in range(B):
        sl = slice(b * N, (b + 1) * N)
        Bn = bcd[0:ci, sl]
        Cn = bcd[ci:2 * ci, sl]
        Dn = bcd[2 * ci:3 * ci, sl]

        # S[n, m] = softmax_m( sum_i Cn[i, n] * Bn[i, m] )
        logits = lax.dot_general(Cn, Bn, (((0,), (0,)), ((), ())),
                                 preferred_element_type=jnp.float32)  # (N, N)
        logits = logits - jnp.max(logits, axis=-1, keepdims=True)
        e = jnp.exp(logits)
        S = e * pl.reciprocal(jnp.sum(e, axis=-1, keepdims=True), approx=True)
        # DS[i, n] = sum_m Dn[i, m] * S[n, m]
        ds_parts.append(lax.dot_general(Dn, S, (((1,), (1,)), ((), ())),
                                        preferred_element_type=jnp.float32))

        chb = ch[:, sl]                                          # (ci, N)
        # X[i, j] = softmax_j( sum_n chb[i, n] * chb[j, n] )
        G = lax.dot_general(chb, chb, (((1,), (1,)), ((), ())),
                            preferred_element_type=jnp.float32)  # (ci, ci)
        G = G - jnp.max(G, axis=-1, keepdims=True)
        eg = jnp.exp(G)
        Xm = eg * pl.reciprocal(jnp.sum(eg, axis=-1, keepdims=True), approx=True)
        # XA[j, n] = sum_i X[i, j] * chb[i, n]
        xa_parts.append(lax.dot_general(Xm, chb, (((0,), (0,)), ((), ())),
                                        preferred_element_type=jnp.float32))

    DS = jnp.concatenate(ds_parts, axis=1)                       # (ci, BN)
    XA = jnp.concatenate(xa_parts, axis=1)                       # (ci, BN)

    pos2 = alpha * DS + pos
    ch2 = beta * XA + ch

    # ---- both output 3x3 convs in ONE block-diagonal matmul ------------------
    Tpc = tap_stack(jnp.concatenate([pos2, ch2], axis=0))        # (18ci+1, BN)
    outc = jnp.maximum(
        jnp.dot(w_out_ref[...], Tpc, preferred_element_type=jnp.float32), 0.0)
    fused = outc[0:ci, :] + outc[ci:2 * ci, :]                   # (ci, BN)

    # ---- fusion 1x1 conv + ReLU ----------------------------------------------
    f_aug = jnp.concatenate([fused, ones], axis=0)               # (ci+1, BN)
    y = jnp.dot(w_fus, f_aug, preferred_element_type=jnp.float32)
    o_ref[...] = jnp.maximum(y, 0.0).astype(o_ref.dtype)         # (Cin, BN)


# ----------------------- one-time parameter packing ---------------------------

def pack_params(params, in_channels, batch, H, W):
    """Repack PyTorch-layout parameters ONCE into kernel-ready flat matrices."""
    ci = in_channels // 8
    N = H * W
    BN = batch * N

    def conv_taps(w):  # OIHW (Co, Ci, 3, 3) -> (Co, 9*Ci) with tap k = ky*3+kx
        co, cin = w.shape[0], w.shape[1]
        return jnp.transpose(w, (0, 2, 3, 1)).reshape(co, 9 * cin)

    # Input convs share one tap stack of x: rows [pos; ch], last column = bias.
    w_in = jnp.concatenate([conv_taps(params["w_in_pos"]),
                            conv_taps(params["w_in_ch"])], axis=0)
    b_in = jnp.concatenate([params["b_in_pos"], params["b_in_ch"]])[:, None]
    w_in_aug = jnp.concatenate([w_in, b_in], axis=1)             # (2ci, 9*Cin+1)

    # Output convs: block-diagonal over the stacked [pos2; ch2] tap buffer.
    wop = jnp.transpose(params["w_out_pos"], (0, 2, 3, 1))       # (ci,3,3,ci)
    woc = jnp.transpose(params["w_out_ch"], (0, 2, 3, 1))
    w_out_t = jnp.zeros((2 * ci, 3, 3, 2 * ci), jnp.float32)
    w_out_t = w_out_t.at[:ci, :, :, :ci].set(wop)
    w_out_t = w_out_t.at[ci:, :, :, ci:].set(woc)
    w_out = w_out_t.reshape(2 * ci, 9 * 2 * ci)
    b_out = jnp.concatenate([params["b_out_pos"], params["b_out_ch"]])[:, None]
    w_out_aug = jnp.concatenate([w_out, b_out], axis=1)          # (2ci, 18ci+1)

    # 1x1 convs: stacked B/C/D projection + fusion conv, bias in last column.
    w_bcd = jnp.concatenate([params["w_B"].reshape(ci, ci),
                             params["w_C"].reshape(ci, ci),
                             params["w_D"].reshape(ci, ci)], axis=0)
    b_bcd = jnp.concatenate([params["b_B"], params["b_C"],
                             params["b_D"]])[:, None]
    bcd_aug = jnp.concatenate([w_bcd, b_bcd], axis=1)            # (3ci, ci+1)
    w_fus = params["w_fusion"].reshape(in_channels, ci)
    fus_aug = jnp.concatenate([w_fus, params["b_fusion"][:, None]], axis=1)
    f_off = ((3 * ci + 7) // 8) * 8                              # 8-aligned row
    w_small = jnp.zeros((f_off + in_channels, ci + 1), jnp.float32)
    w_small = w_small.at[:3 * ci, :].set(bcd_aug)
    w_small = w_small.at[f_off:, :].set(fus_aug)

    # Precomputed 3x3 boundary masks, one row per tap, over the B*N lane axis.
    lane = jnp.arange(BN, dtype=jnp.int32)
    hh = (lane % N) // W
    ww = lane % W
    rows = []
    for k in range(9):
        dy, dx = k // 3 - 1, k % 3 - 1
        ok = (hh + dy >= 0) & (hh + dy < H) & (ww + dx >= 0) & (ww + dx < W)
        rows.append(ok.astype(jnp.float32))
    masks = jnp.stack(rows, axis=0)                              # (9, BN)

    ab = jnp.concatenate([params["alpha"], params["beta"]]).astype(jnp.float32)
    return dict(w_in=w_in_aug, w_out=w_out_aug, w_small=w_small,
                masks=masks, ab=ab)


# ------------------------------- host wrapper ---------------------------------

@jax.jit
def dual_attention_forward(x_nchw, packed):
    B, Cin, H, W = x_nchw.shape
    ci = Cin // 8
    N = H * W
    BN = B * N

    # channel-major, batch folded into the lane axis: x_flat[c, b*N + n]
    x_flat = x_nchw.reshape(B, Cin, N).transpose(1, 0, 2).reshape(Cin, BN)

    kernel = functools.partial(_dual_attention_kernel, H=H, W=W, B=B, ci=ci)
    vmem = pltpu.MemorySpace.VMEM
    out_flat = pl.pallas_call(
        kernel,
        out_shape=jax.ShapeDtypeStruct((Cin, BN), jnp.float32),
        in_specs=[
            pl.BlockSpec(memory_space=vmem),   # x
            pl.BlockSpec(memory_space=vmem),   # packed input-conv weights
            pl.BlockSpec(memory_space=vmem),   # packed output-conv weights
            pl.BlockSpec(memory_space=vmem),   # packed 1x1 (B/C/D + fusion)
            pl.BlockSpec(memory_space=vmem),   # boundary masks
            pl.BlockSpec(memory_space=pltpu.MemorySpace.SMEM),  # alpha, beta
        ],
        out_specs=pl.BlockSpec(memory_space=vmem),
        compiler_params=pltpu.CompilerParams(
            vmem_limit_bytes=32 * 1024 * 1024),
    )(x_flat, packed["w_in"], packed["w_out"], packed["w_small"],
      packed["masks"], packed["ab"])

    return out_flat.reshape(Cin, B, N).transpose(1, 0, 2).reshape(B, Cin, H, W)


# --------------------------- pure-JAX reference --------------------------------

def _conv2d(x, w, b, pad):
    y = lax.conv_general_dilated(
        x, w, window_strides=(1, 1), padding=[(pad, pad), (pad, pad)],
        dimension_numbers=("NCHW", "OIHW", "NCHW"))
    return y + b[None, :, None, None]


def ref_forward(x, params):
    B, C, H, W = x.shape
    ci = C // 8
    N = H * W
    relu = jax.nn.relu

    pos = relu(_conv2d(x, params["w_in_pos"], params["b_in_pos"], 1))
    Bm = _conv2d(pos, params["w_B"], params["b_B"], 0).reshape(B, ci, N)
    Cm = _conv2d(pos, params["w_C"], params["b_C"], 0).reshape(B, ci, N)
    Dm = _conv2d(pos, params["w_D"], params["b_D"], 0).reshape(B, ci, N)
    S = jax.nn.softmax(jnp.einsum("bin,bim->bnm", Cm, Bm), axis=-1)
    DS = jnp.einsum("bim,bnm->bin", Dm, S).reshape(B, ci, H, W)
    pos = params["alpha"][0] * DS + pos
    pos = relu(_conv2d(pos, params["w_out_pos"], params["b_out_pos"], 1))

    ch = relu(_conv2d(x, params["w_in_ch"], params["b_in_ch"], 1))
    A1 = ch.reshape(B, ci, N)
    X = jax.nn.softmax(jnp.einsum("bin,bjn->bij", A1, A1), axis=-1)
    XA1 = jnp.einsum("bij,bin->bjn", X, A1).reshape(B, ci, H, W)
    ch = params["beta"][0] * XA1 + ch
    ch = relu(_conv2d(ch, params["w_out_ch"], params["b_out_ch"], 1))

    fusion = pos + ch
    return relu(_conv2d(fusion, params["w_fusion"], params["b_fusion"], 0))


# ------------------------------ params / main ----------------------------------

def init_params(key, in_channels):
    ci = in_channels // 8
    ks = jax.random.split(key, 16)

    def nrm(k, shape):
        return 0.02 * jax.random.normal(k, shape, jnp.float32)

    return dict(
        w_in_pos=nrm(ks[0], (ci, in_channels, 3, 3)), b_in_pos=nrm(ks[1], (ci,)),
        w_in_ch=nrm(ks[2], (ci, in_channels, 3, 3)),  b_in_ch=nrm(ks[3], (ci,)),
        w_out_pos=nrm(ks[4], (ci, ci, 3, 3)),         b_out_pos=nrm(ks[5], (ci,)),
        w_out_ch=nrm(ks[6], (ci, ci, 3, 3)),          b_out_ch=nrm(ks[7], (ci,)),
        w_fusion=nrm(ks[8], (in_channels, ci, 1, 1)), b_fusion=nrm(ks[9], (in_channels,)),
        w_B=nrm(ks[10], (ci, ci, 1, 1)), b_B=nrm(ks[11], (ci,)),
        w_C=nrm(ks[12], (ci, ci, 1, 1)), b_C=nrm(ks[13], (ci,)),
        w_D=nrm(ks[14], (ci, ci, 1, 1)), b_D=nrm(ks[15], (ci,)),
        # deterministic non-zero so both attention paths actually contribute
        # (PyTorch inits alpha/beta to 0, which would make them dead code).
        alpha=jnp.array([0.5], jnp.float32),
        beta=jnp.array([0.5], jnp.float32),
    )


if __name__ == "__main__":
    key = jax.random.PRNGKey(0)
    kx, kp = jax.random.split(key)
    batch, in_channels, H, W = 2, 32, 16, 16        # intermediate_channels = 4
    x = jax.random.normal(kx, (batch, in_channels, H, W), jnp.float32)
    params = init_params(kp, in_channels)

    # One-time parameter packing (hoisted out of the per-call forward).
    packed = jax.tree_util.tree_map(
        jax.block_until_ready, pack_params(params, in_channels, batch, H, W))

    out = jax.block_until_ready(dual_attention_forward(x, packed))
    ref = jax.block_until_ready(ref_forward(x, params))

    assert out.shape == ref.shape == (batch, in_channels, H, W)
    err = float(jnp.max(jnp.abs(out - ref)))
    if not err < 2e-3:
        raise AssertionError(f"mismatch vs reference: max abs err = {err}")
    print("KERNEL_OK")
</pallas_src>

<mosaic_0001>
module attributes {stable_mosaic.version = 11 : i64} {
  func.func @_dual_attention_kernel(%arg0: memref<32x512xf32, #tpu.memory_space<vmem>>, %arg1: memref<8x289xf32, #tpu.memory_space<vmem>>, %arg2: memref<8x73xf32, #tpu.memory_space<vmem>>, %arg3: memref<48x5xf32, #tpu.memory_space<vmem>>, %arg4: memref<9x512xf32, #tpu.memory_space<vmem>>, %arg5: memref<2xf32, #tpu.memory_space<smem>>, %arg6: memref<32x512xf32, #tpu.memory_space<vmem>>) attributes {dimension_semantics = [], scalar_prefetch = 0 : i64, scratch_operands = 0 : i64, tpu.core_type = #tpu.core_type<tc>} {
    %c0 = arith.constant 0 : index
    %c0_0 = arith.constant 0 : index
    %0 = vector.load %arg0[%c0, %c0_0] : memref<32x512xf32, #tpu.memory_space<vmem>>, vector<32x512xf32>
    %c0_1 = arith.constant 0 : index
    %c0_2 = arith.constant 0 : index
    %1 = vector.load %arg4[%c0_1, %c0_2] : memref<9x512xf32, #tpu.memory_space<vmem>>, vector<9x512xf32>
    %cst = arith.constant 1.000000e+00 : f32
    %2 = vector.broadcast %cst : f32 to vector<1x512xf32>
    %c17_i32 = arith.constant 17 : i32
    %3 = tpu.dynamic_rotate %0 by %c17_i32 dim 1 : vector<32x512xf32>, i32 -> vector<32x512xf32>
    %4 = vector.extract_strided_slice %1 {offsets = [0, 0], sizes = [1, 512], strides = [1, 1]} : vector<9x512xf32> to vector<1x512xf32>
    %5 = vector.broadcast %4 : vector<1x512xf32> to vector<32x512xf32>
    %6 = arith.mulf %3, %5 : vector<32x512xf32>
    %c16_i32 = arith.constant 16 : i32
    %7 = tpu.dynamic_rotate %0 by %c16_i32 dim 1 : vector<32x512xf32>, i32 -> vector<32x512xf32>
    %8 = vector.extract_strided_slice %1 {offsets = [1, 0], sizes = [1, 512], strides = [1, 1]} : vector<9x512xf32> to vector<1x512xf32>
    %9 = vector.broadcast %8 : vector<1x512xf32> to vector<32x512xf32>
    %10 = arith.mulf %7, %9 : vector<32x512xf32>
    %c15_i32 = arith.constant 15 : i32
    %11 = tpu.dynamic_rotate %0 by %c15_i32 dim 1 : vector<32x512xf32>, i32 -> vector<32x512xf32>
    %12 = vector.extract_strided_slice %1 {offsets = [2, 0], sizes = [1, 512], strides = [1, 1]} : vector<9x512xf32> to vector<1x512xf32>
    %13 = vector.broadcast %12 : vector<1x512xf32> to vector<32x512xf32>
    %14 = arith.mulf %11, %13 : vector<32x512xf32>
    %c1_i32 = arith.constant 1 : i32
    %15 = tpu.dynamic_rotate %0 by %c1_i32 dim 1 : vector<32x512xf32>, i32 -> vector<32x512xf32>
    %16 = vector.extract_strided_slice %1 {offsets = [3, 0], sizes = [1, 512], strides = [1, 1]} : vector<9x512xf32> to vector<1x512xf32>
    %17 = vector.broadcast %16 : vector<1x512xf32> to vector<32x512xf32>
    %18 = arith.mulf %15, %17 : vector<32x512xf32>
    %c511_i32 = arith.constant 511 : i32
    %19 = tpu.dynamic_rotate %0 by %c511_i32 dim 1 : vector<32x512xf32>, i32 -> vector<32x512xf32>
    %20 = vector.extract_strided_slice %1 {offsets = [5, 0], sizes = [1, 512], strides = [1, 1]} : vector<9x512xf32> to vector<1x512xf32>
    %21 = vector.broadcast %20 : vector<1x512xf32> to vector<32x512xf32>
    %22 = arith.mulf %19, %21 : vector<32x512xf32>
    %c497_i32 = arith.constant 497 : i32
    %23 = tpu.dynamic_rotate %0 by %c497_i32 dim 1 : vector<32x512xf32>, i32 -> vector<32x512xf32>
    %24 = vector.extract_strided_slice %1 {offsets = [6, 0], sizes = [1, 512], strides = [1, 1]} : vector<9x512xf32> to vector<1x512xf32>
    %25 = vector.broadcast %24 : vector<1x512xf32> to vector<32x512xf32>
    %26 = arith.mulf %23, %25 : vector<32x512xf32>
    %c496_i32 = arith.constant 496 : i32
    %27 = tpu.dynamic_rotate %0 by %c496_i32 dim 1 : vector<32x512xf32>, i32 -> vector<32x512xf32>
    %28 = vector.extract_strided_slice %1 {offsets = [7, 0], sizes = [1, 512], strides = [1, 1]} : vector<9x512xf32> to vector<1x512xf32>
    %29 = vector.broadcast %28 : vector<1x512xf32> to vector<32x512xf32>
    %30 = arith.mulf %27, %29 : vector<32x512xf32>
    %c495_i32 = arith.constant 495 : i32
    %31 = tpu.dynamic_rotate %0 by %c495_i32 dim 1 : vector<32x512xf32>, i32 -> vector<32x512xf32>
    %32 = vector.extract_strided_slice %1 {offsets = [8, 0], sizes = [1, 512], strides = [1, 1]} : vector<9x512xf32> to vector<1x512xf32>
    %33 = vector.broadcast %32 : vector<1x512xf32> to vector<32x512xf32>
    %34 = arith.mulf %31, %33 : vector<32x512xf32>
    %35 = tpu.concatenate %6, %10, %14, %18, %0, %22, %26, %30, %34, %2 in 0 : vector<32x512xf32>, vector<32x512xf32>, vector<32x512xf32>, vector<32x512xf32>, vector<32x512xf32>, vector<32x512xf32>, vector<32x512xf32>, vector<32x512xf32>, vector<32x512xf32>, vector<1x512xf32> -> vector<289x512xf32>
    %c0_3 = arith.constant 0 : index
    %c0_4 = arith.constant 0 : index
    %36 = vector.load %arg1[%c0_3, %c0_4] : memref<8x289xf32, #tpu.memory_space<vmem>>, vector<8x289xf32>
    %cst_5 = arith.constant dense<0.000000e+00> : vector<8x512xf32>
    %37 = tpu.matmul %36, %35, %cst_5 {dimension_numbers = #tpu.dot_dimension_numbers<[1], [0], [0], [1], [0, 0, 1, 1], [], []>} : vector<8x289xf32>, vector<289x512xf32>, vector<8x512xf32> -> vector<8x512xf32>
    %cst_6 = arith.constant 0.000000e+00 : f32
    %38 = vector.broadcast %cst_6 : f32 to vector<8x512xf32>
    %39 = arith.maximumf %37, %38 : vector<8x512xf32>
    %40 = vector.extract_strided_slice %39 {offsets = [0, 0], sizes = [4, 512], strides = [1, 1]} : vector<8x512xf32> to vector<4x512xf32>
    %41 = vector.extract_strided_slice %39 {offsets = [4, 0], sizes = [4, 512], strides = [1, 1]} : vector<8x512xf32> to vector<4x512xf32>
    %c0_7 = arith.constant 0 : index
    %c0_8 = arith.constant 0 : index
    %42 = vector.load %arg3[%c0_7, %c0_8] : memref<48x5xf32, #tpu.memory_space<vmem>>, vector<12x5xf32>
    %c16 = arith.constant 16 : index
    %c0_9 = arith.constant 0 : index
    %43 = vector.load %arg3[%c16, %c0_9] : memref<48x5xf32, #tpu.memory_space<vmem>>, vector<32x5xf32>
    %44 = tpu.concatenate %40, %2 in 0 : vector<4x512xf32>, vector<1x512xf32> -> vector<5x512xf32>
    %cst_10 = arith.constant dense<0.000000e+00> : vector<12x512xf32>
    %45 = tpu.matmul %42, %44, %cst_10 {dimension_numbers = #tpu.dot_dimension_numbers<[1], [0], [0], [1], [0, 0, 1, 1], [], []>} : vector<12x5xf32>, vector<5x512xf32>, vector<12x512xf32> -> vector<12x512xf32>
    %c0_11 = arith.constant 0 : index
    %46 = memref.load %arg5[%c0_11] : memref<2xf32, #tpu.memory_space<smem>>
    %c1 = arith.constant 1 : index
    %47 = memref.load %arg5[%c1] : memref<2xf32, #tpu.memory_space<smem>>
    %48 = vector.extract_strided_slice %45 {offsets = [0, 0], sizes = [4, 256], strides = [1, 1]} : vector<12x512xf32> to vector<4x256xf32>
    %49 = vector.extract_strided_slice %45 {offsets = [4, 0], sizes = [4, 256], strides = [1, 1]} : vector<12x512xf32> to vector<4x256xf32>
    %50 = vector.extract_strided_slice %45 {offsets = [8, 0], sizes = [4, 256], strides = [1, 1]} : vector<12x512xf32> to vector<4x256xf32>
    %cst_12 = arith.constant dense<0.000000e+00> : vector<256x256xf32>
    %51 = tpu.matmul %49, %48, %cst_12 {dimension_numbers = #tpu.dot_dimension_numbers<[0], [0], [1], [1], [0, 1, 1, 1], [], []>} : vector<4x256xf32>, vector<4x256xf32>, vector<256x256xf32> -> vector<256x256xf32>
    %cst_13 = arith.constant dense<0xFF800000> : vector<256xf32>
    %52 = vector.multi_reduction <maximumf>, %51, %cst_13 [1] : vector<256x256xf32> to vector<256xf32>
    %53 = vector.shape_cast %52 : vector<256xf32> to vector<256x1xf32>
    %54 = vector.broadcast %53 : vector<256x1xf32> to vector<256x256xf32>
    %55 = arith.subf %51, %54 : vector<256x256xf32>
    %56 = math.exp %55 : vector<256x256xf32>
    %cst_14 = arith.constant dense<0.000000e+00> : vector<256xf32>
    %57 = vector.multi_reduction <add>, %56, %cst_14 [1] : vector<256x256xf32> to vector<256xf32>
    %58 = vector.shape_cast %57 : vector<256xf32> to vector<256x1xf32>
    %59 = tpu.reciprocal %58 {approx = true} : vector<256x1xf32> -> vector<256x1xf32>
    %60 = vector.broadcast %59 : vector<256x1xf32> to vector<256x256xf32>
    %61 = arith.mulf %56, %60 : vector<256x256xf32>
    %cst_15 = arith.constant dense<0.000000e+00> : vector<4x256xf32>
    %62 = tpu.matmul %50, %61, %cst_15 {dimension_numbers = #tpu.dot_dimension_numbers<[1], [1], [0], [0], [0, 0, 1, 0], [], []>} : vector<4x256xf32>, vector<256x256xf32>, vector<4x256xf32> -> vector<4x256xf32>
    %63 = vector.extract_strided_slice %41 {offsets = [0, 0], sizes = [4, 256], strides = [1, 1]} : vector<4x512xf32> to vector<4x256xf32>
    %cst_16 = arith.constant dense<0.000000e+00> : vector<4x4xf32>
    %64 = tpu.matmul %63, %63, %cst_16 {dimension_numbers = #tpu.dot_dimension_numbers<[1], [1], [0], [0], [0, 0, 1, 0], [], []>} : vector<4x256xf32>, vector<4x256xf32>, vector<4x4xf32> -> vector<4x4xf32>
    %cst_17 = arith.constant dense<0xFF800000> : vector<4xf32>
    %65 = vector.multi_reduction <maximumf>, %64, %cst_17 [1] : vector<4x4xf32> to vector<4xf32>
    %66 = vector.shape_cast %65 : vector<4xf32> to vector<4x1xf32>
    %67 = vector.broadcast %66 : vector<4x1xf32> to vector<4x4xf32>
    %68 = arith.subf %64, %67 : vector<4x4xf32>
    %69 = math.exp %68 : vector<4x4xf32>
    %cst_18 = arith.constant dense<0.000000e+00> : vector<4xf32>
    %70 = vector.multi_reduction <add>, %69, %cst_18 [1] : vector<4x4xf32> to vector<4xf32>
    %71 = vector.shape_cast %70 : vector<4xf32> to vector<4x1xf32>
    %72 = tpu.reciprocal %71 {approx = true} : vector<4x1xf32> -> vector<4x1xf32>
    %73 = vector.broadcast %72 : vector<4x1xf32> to vector<4x4xf32>
    %74 = arith.mulf %69, %73 : vector<4x4xf32>
    %cst_19 = arith.constant dense<0.000000e+00> : vector<4x256xf32>
    %75 = tpu.matmul %74, %63, %cst_19 {dimension_numbers = #tpu.dot_dimension_numbers<[0], [0], [1], [1], [0, 1, 1, 1], [], []>} : vector<4x4xf32>, vector<4x256xf32>, vector<4x256xf32> -> vector<4x256xf32>
    %76 = vector.extract_strided_slice %45 {offsets = [0, 256], sizes = [4, 256], strides = [1, 1]} : vector<12x512xf32> to vector<4x256xf32>
    %77 = vector.extract_strided_slice %45 {offsets = [4, 256], sizes = [4, 256], strides = [1, 1]} : vector<12x512xf32> to vector<4x256xf32>
    %78 = vector.extract_strided_slice %45 {offsets = [8, 256], sizes = [4, 256], strides = [1, 1]} : vector<12x512xf32> to vector<4x256xf32>
    %cst_20 = arith.constant dense<0.000000e+00> : vector<256x256xf32>
    %79 = tpu.matmul %77, %76, %cst_20 {dimension_numbers = #tpu.dot_dimension_numbers<[0], [0], [1], [1], [0, 1, 1, 1], [], []>} : vector<4x256xf32>, vector<4x256xf32>, vector<256x256xf32> -> vector<256x256xf32>
    %cst_21 = arith.constant dense<0xFF800000> : vector<256xf32>
    %80 = vector.multi_reduction <maximumf>, %79, %cst_21 [1] : vector<256x256xf32> to vector<256xf32>
    %81 = vector.shape_cast %80 : vector<256xf32> to vector<256x1xf32>
    %82 = vector.broadcast %81 : vector<256x1xf32> to vector<256x256xf32>
    %83 = arith.subf %79, %82 : vector<256x256xf32>
    %84 = math.exp %83 : vector<256x256xf32>
    %cst_22 = arith.constant dense<0.000000e+00> : vector<256xf32>
    %85 = vector.multi_reduction <add>, %84, %cst_22 [1] : vector<256x256xf32> to vector<256xf32>
    %86 = vector.shape_cast %85 : vector<256xf32> to vector<256x1xf32>
    %87 = tpu.reciprocal %86 {approx = true} : vector<256x1xf32> -> vector<256x1xf32>
    %88 = vector.broadcast %87 : vector<256x1xf32> to vector<256x256xf32>
    %89 = arith.mulf %84, %88 : vector<256x256xf32>
    %cst_23 = arith.constant dense<0.000000e+00> : vector<4x256xf32>
    %90 = tpu.matmul %78, %89, %cst_23 {dimension_numbers = #tpu.dot_dimension_numbers<[1], [1], [0], [0], [0, 0, 1, 0], [], []>} : vector<4x256xf32>, vector<256x256xf32>, vector<4x256xf32> -> vector<4x256xf32>
    %91 = vector.extract_strided_slice %41 {offsets = [0, 256], sizes = [4, 256], strides = [1, 1]} : vector<4x512xf32> to vector<4x256xf32>
    %cst_24 = arith.constant dense<0.000000e+00> : vector<4x4xf32>
    %92 = tpu.matmul %91, %91, %cst_24 {dimension_numbers = #tpu.dot_dimension_numbers<[1], [1], [0], [0], [0, 0, 1, 0], [], []>} : vector<4x256xf32>, vector<4x256xf32>, vector<4x4xf32> -> vector<4x4xf32>
    %cst_25 = arith.constant dense<0xFF800000> : vector<4xf32>
    %93 = vector.multi_reduction <maximumf>, %92, %cst_25 [1] : vector<4x4xf32> to vector<4xf32>
    %94 = vector.shape_cast %93 : vector<4xf32> to vector<4x1xf32>
    %95 = vector.broadcast %94 : vector<4x1xf32> to vector<4x4xf32>
    %96 = arith.subf %92, %95 : vector<4x4xf32>
    %97 = math.exp %96 : vector<4x4xf32>
    %cst_26 = arith.constant dense<0.000000e+00> : vector<4xf32>
    %98 = vector.multi_reduction <add>, %97, %cst_26 [1] : vector<4x4xf32> to vector<4xf32>
    %99 = vector.shape_cast %98 : vector<4xf32> to vector<4x1xf32>
    %100 = tpu.reciprocal %99 {approx = true} : vector<4x1xf32> -> vector<4x1xf32>
    %101 = vector.broadcast %100 : vector<4x1xf32> to vector<4x4xf32>
    %102 = arith.mulf %97, %101 : vector<4x4xf32>
    %cst_27 = arith.constant dense<0.000000e+00> : vector<4x256xf32>
    %103 = tpu.matmul %102, %91, %cst_27 {dimension_numbers = #tpu.dot_dimension_numbers<[0], [0], [1], [1], [0, 1, 1, 1], [], []>} : vector<4x4xf32>, vector<4x256xf32>, vector<4x256xf32> -> vector<4x256xf32>
    %104 = tpu.concatenate %62, %90 in 1 : vector<4x256xf32>, vector<4x256xf32> -> vector<4x512xf32>
    %105 = tpu.concatenate %75, %103 in 1 : vector<4x256xf32>, vector<4x256xf32> -> vector<4x512xf32>
    %106 = vector.broadcast %46 : f32 to vector<4x512xf32>
    %107 = arith.mulf %106, %104 : vector<4x512xf32>
    %108 = arith.addf %107, %40 : vector<4x512xf32>
    %109 = vector.broadcast %47 : f32 to vector<4x512xf32>
    %110 = arith.mulf %109, %105 : vector<4x512xf32>
    %111 = arith.addf %110, %41 : vector<4x512xf32>
    %112 = tpu.concatenate %108, %111 in 0 : vector<4x512xf32>, vector<4x512xf32> -> vector<8x512xf32>
    %c17_i32_28 = arith.constant 17 : i32
    %113 = tpu.dynamic_rotate %112 by %c17_i32_28 dim 1 : vector<8x512xf32>, i32 -> vector<8x512xf32>
    %114 = vector.extract_strided_slice %1 {offsets = [0, 0], sizes = [1, 512], strides = [1, 1]} : vector<9x512xf32> to vector<1x512xf32>
    %115 = vector.broadcast %114 : vector<1x512xf32> to vector<8x512xf32>
    %116 = arith.mulf %113, %115 : vector<8x512xf32>
    %c16_i32_29 = arith.constant 16 : i32
    %117 = tpu.dynamic_rotate %112 by %c16_i32_29 dim 1 : vector<8x512xf32>, i32 -> vector<8x512xf32>
    %118 = vector.extract_strided_slice %1 {offsets = [1, 0], sizes = [1, 512], strides = [1, 1]} : vector<9x512xf32> to vector<1x512xf32>
    %119 = vector.broadcast %118 : vector<1x512xf32> to vector<8x512xf32>
    %120 = arith.mulf %117, %119 : vector<8x512xf32>
    %c15_i32_30 = arith.constant 15 : i32
    %121 = tpu.dynamic_rotate %112 by %c15_i32_30 dim 1 : vector<8x512xf32>, i32 -> vector<8x512xf32>
    %122 = vector.extract_strided_slice %1 {offsets = [2, 0], sizes = [1, 512], strides = [1, 1]} : vector<9x512xf32> to vector<1x512xf32>
    %123 = vector.broadcast %122 : vector<1x512xf32> to vector<8x512xf32>
    %124 = arith.mulf %121, %123 : vector<8x512xf32>
    %c1_i32_31 = arith.constant 1 : i32
    %125 = tpu.dynamic_rotate %112 by %c1_i32_31 dim 1 : vector<8x512xf32>, i32 -> vector<8x512xf32>
    %126 = vector.extract_strided_slice %1 {offsets = [3, 0], sizes = [1, 512], strides = [1, 1]} : vector<9x512xf32> to vector<1x512xf32>
    %127 = vector.broadcast %126 : vector<1x512xf32> to vector<8x512xf32>
    %128 = arith.mulf %125, %127 : vector<8x512xf32>
    %c511_i32_32 = arith.constant 511 : i32
    %129 = tpu.dynamic_rotate %112 by %c511_i32_32 dim 1 : vector<8x512xf32>, i32 -> vector<8x512xf32>
    %130 = vector.extract_strided_slice %1 {offsets = [5, 0], sizes = [1, 512], strides = [1, 1]} : vector<9x512xf32> to vector<1x512xf32>
    %131 = vector.broadcast %130 : vector<1x512xf32> to vector<8x512xf32>
    %132 = arith.mulf %129, %131 : vector<8x512xf32>
    %c497_i32_33 = arith.constant 497 : i32
    %133 = tpu.dynamic_rotate %112 by %c497_i32_33 dim 1 : vector<8x512xf32>, i32 -> vector<8x512xf32>
    %134 = vector.extract_strided_slice %1 {offsets = [6, 0], sizes = [1, 512], strides = [1, 1]} : vector<9x512xf32> to vector<1x512xf32>
    %135 = vector.broadcast %134 : vector<1x512xf32> to vector<8x512xf32>
    %136 = arith.mulf %133, %135 : vector<8x512xf32>
    %c496_i32_34 = arith.constant 496 : i32
    %137 = tpu.dynamic_rotate %112 by %c496_i32_34 dim 1 : vector<8x512xf32>, i32 -> vector<8x512xf32>
    %138 = vector.extract_strided_slice %1 {offsets = [7, 0], sizes = [1, 512], strides = [1, 1]} : vector<9x512xf32> to vector<1x512xf32>
    %139 = vector.broadcast %138 : vector<1x512xf32> to vector<8x512xf32>
    %140 = arith.mulf %137, %139 : vector<8x512xf32>
    %c495_i32_35 = arith.constant 495 : i32
    %141 = tpu.dynamic_rotate %112 by %c495_i32_35 dim 1 : vector<8x512xf32>, i32 -> vector<8x512xf32>
    %142 = vector.extract_strided_slice %1 {offsets = [8, 0], sizes = [1, 512], strides = [1, 1]} : vector<9x512xf32> to vector<1x512xf32>
    %143 = vector.broadcast %142 : vector<1x512xf32> to vector<8x512xf32>
    %144 = arith.mulf %141, %143 : vector<8x512xf32>
    %145 = tpu.concatenate %116, %120, %124, %128, %112, %132, %136, %140, %144, %2 in 0 : vector<8x512xf32>, vector<8x512xf32>, vector<8x512xf32>, vector<8x512xf32>, vector<8x512xf32>, vector<8x512xf32>, vector<8x512xf32>, vector<8x512xf32>, vector<8x512xf32>, vector<1x512xf32> -> vector<73x512xf32>
    %c0_36 = arith.constant 0 : index
    %c0_37 = arith.constant 0 : index
    %146 = vector.load %arg2[%c0_36, %c0_37] : memref<8x73xf32, #tpu.memory_space<vmem>>, vector<8x73xf32>
    %cst_38 = arith.constant dense<0.000000e+00> : vector<8x512xf32>
    %147 = tpu.matmul %146, %145, %cst_38 {dimension_numbers = #tpu.dot_dimension_numbers<[1], [0], [0], [1], [0, 0, 1, 1], [], []>} : vector<8x73xf32>, vector<73x512xf32>, vector<8x512xf32> -> vector<8x512xf32>
    %cst_39 = arith.constant 0.000000e+00 : f32
    %148 = vector.broadcast %cst_39 : f32 to vector<8x512xf32>
    %149 = arith.maximumf %147, %148 : vector<8x512xf32>
    %150 = vector.extract_strided_slice %149 {offsets = [0, 0], sizes = [4, 512], strides = [1, 1]} : vector<8x512xf32> to vector<4x512xf32>
    %151 = vector.extract_strided_slice %149 {offsets = [4, 0], sizes = [4, 512], strides = [1, 1]} : vector<8x512xf32> to vector<4x512xf32>
    %152 = arith.addf %150, %151 : vector<4x512xf32>
    %153 = tpu.concatenate %152, %2 in 0 : vector<4x512xf32>, vector<1x512xf32> -> vector<5x512xf32>
    %cst_40 = arith.constant dense<0.000000e+00> : vector<32x512xf32>
    %154 = tpu.matmul %43, %153, %cst_40 {dimension_numbers = #tpu.dot_dimension_numbers<[1], [0], [0], [1], [0, 0, 1, 1], [], []>} : vector<32x5xf32>, vector<5x512xf32>, vector<32x512xf32> -> vector<32x512xf32>
    %cst_41 = arith.constant 0.000000e+00 : f32
    %155 = vector.broadcast %cst_41 : f32 to vector<32x512xf32>
    %156 = arith.maximumf %154, %155 : vector<32x512xf32>
    %c0_42 = arith.constant 0 : index
    %c0_43 = arith.constant 0 : index
    %157 = vector.load %arg6[%c0_42, %c0_43] : memref<32x512xf32, #tpu.memory_space<vmem>>, vector<32x512xf32>
    tpu.vector_store %arg6[%c0_42, %c0_43], %156 {strides = array<i32>} : memref<32x512xf32, #tpu.memory_space<vmem>>, vector<32x512xf32>,
    return
  }
}

</mosaic_0001>

<bundles_post_ra>
// kernel: dual_attention_forward.1
= control target key start
LH: loop header
LB: loop body
LE: loop exit
PB: predicated region body
PF: predicated region fallthrough
CT: control target
= control target key end

     0   :  { %11 = vsyncpa [#allocation3], 0  ;;  %s7972_s0 = inlined_call_operand.vmem [shape: f32[32,512], index: 0, kind: input, shape index: {}]   ;;  %s7973_s1 = inlined_call_operand.vmem [shape: f32[8,289], index: 1, kind: input, shape index: {}]   ;;  %s7974_s2 = inlined_call_operand.vmem [shape: f32[8,73], index: 2, kind: input, shape index: {}]   ;;  %s7975_s3 = inlined_call_operand.vmem [shape: f32[48,5], index: 3, kind: input, shape index: {}]   ;;  %s7976_s4 = inlined_call_operand.vmem [shape: f32[9,512], index: 4, kind: input, shape index: {}]   ;;  %s7977_s5 = inlined_call_operand.vmem [shape: f32[2], index: 5, kind: input, shape index: {}]   ;;  %s7978_s6 = inlined_call_operand.vmem [shape: f32[32,512], index: 6, kind: output, shape index: {}]  }
   0x1   :  { %s28_s23 = sshll.u32 %s7977_s5, 4  ;;  %s29_s23 = int_to_ptr.vmem [resolvable:$true] %s28_s23 }
   0x2   :  { %s4967_s24 = scalar_lea.vmem %s29_s23, 16  ;;  %p4972_p1 = scmp.lt.s32.totalorder %s29_s23, %s29_s23 }
   0x3   :  { %p4968_p0 = scmp.ne.s32.totalorder %s29_s23, %s4967_s24  ;;  %p4973_p2 = scmp.lt.s32.totalorder %s4967_s24, %s4967_s24 }
   0x5   :  { %p4974_p3 = por %p4973_p2, %p4972_p1 }
   0x7   :  { %p4975_p4 = pnand %p4974_p3, %p4968_p0 }
   0x9   :  { %4978 = shalt.err (!%p4975_p4)
}
   0xa   :  { %s4981_s25 = smov [#allocation2]  }
   0xb   :  { %31 = dma.vmem_to_smem %s29_s23, 16, %s4981_s25, [#allocation3]  }
   0xc   :  { %4979 = dma.done.wait [#allocation3], 16  }
   0xd   :  { %4980 = vsyncadd [#allocation3], 4294967280 }
   0xe   :  { %35 = sfence }
   0xf   :  { %v5034_v0 = vld [vmem:[%s7972_s0 + $0x8] sm:$0xff]  ;;  %v5039_v1 = vld [vmem:[%s7972_s0] sm:$0xff]  ;;  %s4982_s29 = smov 17   ;;  %v5062_v4 = vld [vmem:[%s7972_s0 + $0x38] sm:$0xff]  ;;  %s4983_s26 = smov 16   ;;  %v92_v14 = vlaneseq  ;;  %vm717_vm8 = vcmask 1040384  }
  0x10   :  { %68 = vrot.lane.b32.xlu1 %v5034_v0, %s4982_s29  ;;  %60 = vrot.lane.b32.xlu0 %v5039_v1, %s4982_s29  ;;  %v5048_v2 = vld [vmem:[%s7972_s0 + $0x28] sm:$0xff]  ;;  %v5053_v3 = vld [vmem:[%s7972_s0 + $0x20] sm:$0xff]  ;;  %s4984_s27 = smov 15   ;;  %s4985_s28 = smov 1   ;;  %vm713_vm9 = vcmask 269312   ;;  %vm1015_vm10 = vcmask 1043456  }
  0x11   :  { %v5067_v5 = vld [vmem:[%s7972_s0 + $0x18] sm:$0xff]  ;;  %v5076_v6 = vld [vmem:[%s7972_s0 + $0x60] sm:$0xff]  ;;  %v5090_v8 = vld [vmem:[%s7972_s0 + $0x68] sm:$0xff]  ;;  %s4986_s5 = smov 127   ;;  %v5213_v15 = vshrl.u32 %v92_v14, 7  ;;  %v5225_v18 = vand.u32 127, %v92_v14 }
  0x12   :  { %v5081_v7 = vld [vmem:[%s7972_s0 + $0x40] sm:$0xff]  ;;  %v5095_v9 = vld [vmem:[%s7972_s0 + $0x48] sm:$0xff]  ;;  %v5104_v10 = vld [vmem:[%s7972_s0 + $0x78] sm:$0xff]  ;;  %s4987_s18 = smov 113   ;;  %s4988_s19 = smov 112   ;;  %vm1027_vm11 = vcmask 1044480  }
  0x13   :  { %v5109_v11 = vld [vmem:[%s7972_s0 + $0x58] sm:$0xff]  ;;  %v5194_v12 = vld [vmem:[%s7972_s0 + $0x30] sm:$0xff]  ;;  %8116 = vst [vmem:[#allocation5_spill] sm:$0xff] %v5225_v18  ;;  %v5232_v19 = vsub.s32 0, %v5213_v15  ;;  %v5237_v20 = vld [vmem:[%s7976_s4 + $0x8] sm:$0xff]  ;;  %vm94_vm0 = vcmp.lt.s32.totalorder %v5225_v18, 17 }
  0x14   :  { %70 = vrot.lane.b32.xlu1 %v5048_v2, %s4982_s29  ;;  %62 = vrot.lane.b32.xlu0 %v5053_v3, %s4982_s29  ;;  %v5199_v13 = vld [vmem:[%s7972_s0 + $0x10] sm:$0xff]  ;;  %v5256_v25 = vld [vmem:[%s7976_s4] sm:$0xff]  ;;  %v5326_v55 = vsub.s32 1, %v5213_v15  ;;  %vm175_vm1 = vcmp.lt.s32.totalorder %v5225_v18, 16  ;;  %vm256_vm2 = vcmp.lt.s32.totalorder %v5225_v18, 15  ;;  %s4989_s22 = smov 111  }
  0x15   :  { %v5218_v16 = vld [vmem:[%s7972_s0 + $0x70] sm:$0xff]  ;;  %v5248_v23 = vrot.slane %v5237_v20, %v5232_v19  ;;  %v5271_v31 = vrot.slane %v5256_v25, %v5232_v19  ;;  %vm337_vm3 = vcmp.lt.s32.totalorder %v5225_v18, 1  ;;  %vm418_vm4 = vcmp.lt.s32.totalorder %v5225_v18, 127  ;;  %s1194_s21 = sld [smem:[#allocation2]]  ;;  %s4138_s23 = sld [smem:[#allocation2 + $0x1]] }
  0x16   :  { %v5223_v17 = vld [vmem:[%s7972_s0 + $0x50] sm:$0xff]  ;;  %v5335_v59 = vrot.slane %v5237_v20, %v5326_v55  ;;  %vm499_vm5 = vcmp.lt.s32.totalorder %v5225_v18, 113  ;;  %vm580_vm6 = vcmp.lt.s32.totalorder %v5225_v18, 112  ;;  %vm661_vm7 = vcmp.lt.s32.totalorder %v5225_v18, 111 }
  0x17   :  { %8117 = vst [vmem:[#allocation6_spill] sm:$0xff] %v5248_v23  ;;  %8118 = vst [vmem:[#allocation7_spill] sm:$0xff] %v5271_v31  ;;  %vm1020_vm12 = vcmask 39936   ;;  %vm1266_vm13 = vcmask 31744   ;;  %vm2251_vm14 = vcmask 27648   ;;  %vm4992_vm15 = vmmov 1  }
  0x18   :  { %86 = vrot.lane.b32.xlu1 %v5062_v4, %s4982_s29  ;;  %84 = vrot.lane.b32.xlu0 %v5067_v5, %s4982_s29  ;;  %8119 = vst [vmem:[#allocation8_spill] sm:$0xff] %v5335_v59 }
  0x1c   :  { %66 = vrot.lane.b32.xlu1 %v5076_v6, %s4982_s29  ;;  %64 = vrot.lane.b32.xlu0 %v5081_v7, %s4982_s29 }
  0x20   :  { %74 = vrot.lane.b32.xlu1 %v5090_v8, %s4982_s29  ;;  %72 = vrot.lane.b32.xlu0 %v5095_v9, %s4982_s29 }
  0x24   :  { %90 = vrot.lane.b32.xlu1 %v5104_v10, %s4982_s29  ;;  %88 = vrot.lane.b32.xlu0 %v5109_v11, %s4982_s29 }
  0x28   :  { %145 = vrot.lane.b32.xlu1 %v5053_v3, %s4983_s26  ;;  %143 = vrot.lane.b32.xlu0 %v5039_v1, %s4983_s26 }
  0x2c   :  { %153 = vrot.lane.b32.xlu1 %v5048_v2, %s4983_s26  ;;  %151 = vrot.lane.b32.xlu0 %v5034_v0, %s4983_s26 }
  0x30   :  { %169 = vrot.lane.b32.xlu1 %v5062_v4, %s4983_s26  ;;  %167 = vrot.lane.b32.xlu0 %v5067_v5, %s4983_s26 }
  0x34   :  { %149 = vrot.lane.b32.xlu1 %v5076_v6, %s4983_s26  ;;  %147 = vrot.lane.b32.xlu0 %v5081_v7, %s4983_s26 }
  0x38   :  { %157 = vrot.lane.b32.xlu1 %v5090_v8, %s4983_s26  ;;  %155 = vrot.lane.b32.xlu0 %v5095_v9, %s4983_s26 }
  0x3c   :  { %173 = vrot.lane.b32.xlu1 %v5104_v10, %s4983_s26  ;;  %171 = vrot.lane.b32.xlu0 %v5109_v11, %s4983_s26 }
  0x40   :  { %226 = vrot.lane.b32.xlu1 %v5053_v3, %s4984_s27  ;;  %224 = vrot.lane.b32.xlu0 %v5039_v1, %s4984_s27 }
  0x44   :  { %234 = vrot.lane.b32.xlu1 %v5048_v2, %s4984_s27  ;;  %232 = vrot.lane.b32.xlu0 %v5034_v0, %s4984_s27 }
  0x48   :  { %250 = vrot.lane.b32.xlu1 %v5062_v4, %s4984_s27  ;;  %248 = vrot.lane.b32.xlu0 %v5067_v5, %s4984_s27 }
  0x4c   :  { %230 = vrot.lane.b32.xlu1 %v5076_v6, %s4984_s27  ;;  %228 = vrot.lane.b32.xlu0 %v5081_v7, %s4984_s27 }
  0x50   :  { %238 = vrot.lane.b32.xlu1 %v5090_v8, %s4984_s27  ;;  %236 = vrot.lane.b32.xlu0 %v5095_v9, %s4984_s27 }
  0x54   :  { %254 = vrot.lane.b32.xlu1 %v5104_v10, %s4984_s27  ;;  %252 = vrot.lane.b32.xlu0 %v5109_v11, %s4984_s27 }
  0x58   :  { %307 = vrot.lane.b32.xlu1 %v5053_v3, %s4985_s28  ;;  %305 = vrot.lane.b32.xlu0 %v5039_v1, %s4985_s28 }
  0x5c   :  { %315 = vrot.lane.b32.xlu1 %v5048_v2, %s4985_s28  ;;  %313 = vrot.lane.b32.xlu0 %v5034_v0, %s4985_s28 }
  0x60   :  { %331 = vrot.lane.b32.xlu1 %v5062_v4, %s4985_s28  ;;  %329 = vrot.lane.b32.xlu0 %v5067_v5, %s4985_s28 }
  0x64   :  { %311 = vrot.lane.b32.xlu1 %v5076_v6, %s4985_s28  ;;  %309 = vrot.lane.b32.xlu0 %v5081_v7, %s4985_s28 }
  0x68   :  { %319 = vrot.lane.b32.xlu1 %v5090_v8, %s4985_s28  ;;  %317 = vrot.lane.b32.xlu0 %v5095_v9, %s4985_s28 }
  0x6c   :  { %335 = vrot.lane.b32.xlu1 %v5104_v10, %s4985_s28  ;;  %333 = vrot.lane.b32.xlu0 %v5109_v11, %s4985_s28 }
  0x70   :  { %396 = vrot.lane.b32.xlu1 %v5048_v2, %s4986_s5  ;;  %394 = vrot.lane.b32.xlu0 %v5034_v0, %s4986_s5 }
  0x74   :  { %404 = vrot.lane.b32.xlu1 %v5194_v12, %s4986_s5  ;;  %402 = vrot.lane.b32.xlu0 %v5199_v13, %s4986_s5 }
  0x78   :  { %388 = vrot.lane.b32.xlu1 %v5053_v3, %s4986_s5  ;;  %386 = vrot.lane.b32.xlu0 %v5039_v1, %s4986_s5 }
  0x7c   :  { %400 = vrot.lane.b32.xlu1 %v5090_v8, %s4986_s5  ;;  %398 = vrot.lane.b32.xlu0 %v5095_v9, %s4986_s5 }
  0x80   :  { %408 = vrot.lane.b32.xlu1 %v5218_v16, %s4986_s5  ;;  %406 = vrot.lane.b32.xlu0 %v5223_v17, %s4986_s5 }
  0x82   :  { %v5239_v21 = vpop.permute.xlu1 %68  ;;  %v61_v22 = vpop.permute.xlu0 %60 }
  0x83   :  { %v103_v24 = vsel %vm94_vm0, %v61_v22, %v5239_v21 }
  0x84   :  { %392 = vrot.lane.b32.xlu1 %v5076_v6, %s4986_s5  ;;  %390 = vrot.lane.b32.xlu0 %v5081_v7, %s4986_s5  ;;  %v128_v29 = vmul.f32 %v5248_v23, %v103_v24  ;;  %v5355_v24 = vrot.slane %v5256_v25, %v5326_v55 }
  0x86   :  { %v5258_v26 = vpop.permute.xlu1 %70  ;;  %v63_v27 = vpop.permute.xlu0 %62  ;;  %8120 = vst [vmem:[#allocation9_spill] sm:$0xff] %v5355_v24 }
  0x87   :  { %v104_v28 = vsel %vm94_vm0, %v63_v27, %v5258_v26 }
  0x88   :  { %477 = vrot.lane.b32.xlu1 %v5048_v2, %s4987_s18  ;;  %475 = vrot.lane.b32.xlu0 %v5034_v0, %s4987_s18  ;;  %v132_v30 = vmul.f32 %v5248_v23, %v104_v28 }
  0x8a   :  { %v5273_v32 = vpop.permute.xlu1 %86  ;;  %v5275_v33 = vpop.permute.xlu0 %84  ;;  %v4231_v34 = vpack.c.bf16 %v132_v30, %v128_v29 }
  0x8b   :  { %v108_v35 = vsel %vm94_vm0, %v5273_v32, %v63_v27  ;;  %v107_v36 = vsel %vm94_vm0, %v5275_v33, %v61_v22 }
  0x8c   :  { %485 = vrot.lane.b32.xlu1 %v5194_v12, %s4987_s18  ;;  %483 = vrot.lane.b32.xlu0 %v5199_v13, %s4987_s18  ;;  %v127_v37 = vmul.f32 %v5271_v31, %v107_v36  ;;  %v131_v38 = vmul.f32 %v5271_v31, %v108_v35 }
  0x8d   :  { %4232 = vmatprep.subr.bf16.mxu0 %v4231_v34 }
  0x8e   :  { %v67_v39 = vpop.permute.xlu1 %66  ;;  %v65_v40 = vpop.permute.xlu0 %64  ;;  %v4233_v41 = vpack.c.bf16 %v131_v38, %v127_v37 }
  0x90   :  { %469 = vrot.lane.b32.xlu1 %v5053_v3, %s4987_s18  ;;  %467 = vrot.lane.b32.xlu0 %v5039_v1, %s4987_s18 }
  0x91   :  { %4234 = vmatpush1.bf16.msra.mxu0 %v4233_v41 }
  0x92   :  { %v5293_v42 = vpop.permute.xlu1 %74  ;;  %v5295_v43 = vpop.permute.xlu0 %72 }
  0x93   :  { %v106_v44 = vsel %vm94_vm0, %v67_v39, %v5293_v42  ;;  %v105_v45 = vsel %vm94_vm0, %v65_v40, %v5295_v43 }
  0x94   :  { %v140_v46 = vmul.f32 %v5248_v23, %v106_v44  ;;  %v136_v47 = vmul.f32 %v5248_v23, %v105_v45  ;;  %481 = vrot.lane.b32.xlu1 %v5090_v8, %s4987_s18  ;;  %479 = vrot.lane.b32.xlu0 %v5095_v9, %s4987_s18 }
  0x96   :  { %v5309_v48 = vpop.permute.xlu1 %90  ;;  %v5311_v49 = vpop.permute.xlu0 %88  ;;  %v4235_v50 = vpack.c.bf16 %v140_v46, %v136_v47 }
  0x97   :  { %v110_v51 = vsel %vm94_vm0, %v5309_v48, %v67_v39  ;;  %v109_v52 = vsel %vm94_vm0, %v5311_v49, %v65_v40 }
  0x98   :  { %v139_v53 = vmul.f32 %v5271_v31, %v110_v51  ;;  %v135_v54 = vmul.f32 %v5271_v31, %v109_v52  ;;  %489 = vrot.lane.b32.xlu1 %v5218_v16, %s4987_s18  ;;  %487 = vrot.lane.b32.xlu0 %v5223_v17, %s4987_s18 }
  0x99   :  { %4236 = vmatprep.subr.bf16.mxu0 %v4235_v50 }
  0x9a   :  { %v146_v56 = vpop.permute.xlu1 %145  ;;  %v144_v57 = vpop.permute.xlu0 %143  ;;  %v4237_v58 = vpack.c.bf16 %v139_v53, %v135_v54 }
  0x9c   :  { %473 = vrot.lane.b32.xlu1 %v5076_v6, %s4987_s18  ;;  %471 = vrot.lane.b32.xlu0 %v5081_v7, %s4987_s18 }
  0x9d   :  { %4238 = vmatpush1.bf16.msra.mxu0 %v4237_v58  ;;  %v5410_v58 = vsub.s32 2, %v5213_v15 }
  0x9e   :  { %v5337_v60 = vpop.permute.xlu1 %153  ;;  %v5339_v61 = vpop.permute.xlu0 %151 }
  0x9f   :  { %v185_v62 = vsel %vm175_vm1, %v146_v56, %v5337_v60  ;;  %v184_v63 = vsel %vm175_vm1, %v144_v57, %v5339_v61 }
  0xa0   :  { %v213_v14 = vmul.f32 %v5335_v59, %v185_v62  ;;  %v209_v22 = vmul.f32 %v5335_v59, %v184_v63  ;;  %558 = vrot.lane.b32.xlu1 %v5048_v2, %s4988_s19  ;;  %556 = vrot.lane.b32.xlu0 %v5034_v0, %s4988_s19 }
  0xa2   :  { %v5357_v27 = vpop.permute.xlu1 %169  ;;  %v5359_v28 = vpop.permute.xlu0 %167  ;;  %v4239_v29 = vpack.c.bf16 %v213_v14, %v209_v22  ;;  %v5419_v22 = vrot.slane %v5237_v20, %v5410_v58 }
  0xa3   :  { %v189_v30 = vsel %vm175_vm1, %v5357_v27, %v146_v56  ;;  %v188_v34 = vsel %vm175_vm1, %v5359_v28, %v144_v57 }
  0xa4   :  { %v212_v35 = vmul.f32 %v5355_v24, %v189_v30  ;;  %v208_v36 = vmul.f32 %v5355_v24, %v188_v34  ;;  %566 = vrot.lane.b32.xlu1 %v5194_v12, %s4988_s19  ;;  %564 = vrot.lane.b32.xlu0 %v5199_v13, %s4988_s19  ;;  %8121 = vst [vmem:[#allocation10_spill] sm:$0xff] %v5419_v22  ;;  %v711_v34 = vld [vmem:[%s7973_s1 + $0x8] sm:$0xff] }
  0xa5   :  { %4240 = vmatprep.subr.bf16.mxu0 %v4239_v29  ;;  %785 = vmatprep.mubr.f32.mxu0 %v711_v34 }
  0xa6   :  { %v150_v37 = vpop.permute.xlu1 %149  ;;  %v148_v38 = vpop.permute.xlu0 %147  ;;  %v4241_v39 = vpack.c.bf16 %v212_v35, %v208_v36  ;;  %927 = vmatprep.mubr.f32.mxu1 %v711_v34 }
  0xa8   :  { %550 = vrot.lane.b32.xlu1 %v5053_v3, %s4988_s19  ;;  %548 = vrot.lane.b32.xlu0 %v5039_v1, %s4988_s19 }
  0xa9   :  { %4242 = vmatpush1.bf16.msra.mxu0 %v4241_v39  ;;  %v5442_v39 = vrot.slane %v5256_v25, %v5410_v58 }
  0xaa   :  { %v5377_v40 = vpop.permute.xlu1 %157  ;;  %v5379_v41 = vpop.permute.xlu0 %155 }
  0xab   :  { %v187_v44 = vsel %vm175_vm1, %v150_v37, %v5377_v40  ;;  %v186_v45 = vsel %vm175_vm1, %v148_v38, %v5379_v41  ;;  %8122 = vst [vmem:[#allocation11_spill] sm:$0xff] %v5442_v39 }
  0xac   :  { %v221_v46 = vmul.f32 %v5335_v59, %v187_v44  ;;  %v217_v47 = vmul.f32 %v5335_v59, %v186_v45  ;;  %562 = vrot.lane.b32.xlu1 %v5090_v8, %s4988_s19  ;;  %560 = vrot.lane.b32.xlu0 %v5095_v9, %s4988_s19 }
  0xae   :  { %v5393_v50 = vpop.permute.xlu1 %173  ;;  %v5395_v51 = vpop.permute.xlu0 %171  ;;  %v4243_v52 = vpack.c.bf16 %v221_v46, %v217_v47 }
  0xaf   :  { %v191_v53 = vsel %vm175_vm1, %v5393_v50, %v150_v37  ;;  %v190_v54 = vsel %vm175_vm1, %v5395_v51, %v148_v38 }
  0xb0   :  { %v220_v56 = vmul.f32 %v5355_v24, %v191_v53  ;;  %v216_v57 = vmul.f32 %v5355_v24, %v190_v54  ;;  %570 = vrot.lane.b32.xlu1 %v5218_v16, %s4988_s19  ;;  %568 = vrot.lane.b32.xlu0 %v5223_v17, %s4988_s19 }
  0xb1   :  { %4244 = vmatprep.subr.bf16.mxu0 %v4243_v52 }
  0xb2   :  { %v227_v62 = vpop.permute.xlu1 %226  ;;  %v225_v63 = vpop.permute.xlu0 %224  ;;  %v4245_v14 = vpack.c.bf16 %v220_v56, %v216_v57 }
  0xb4   :  { %554 = vrot.lane.b32.xlu1 %v5076_v6, %s4988_s19  ;;  %552 = vrot.lane.b32.xlu0 %v5081_v7, %s4988_s19 }
  0xb5   :  { %4246 = vmatpush1.bf16.msra.mxu0 %v4245_v14 }
  0xb6   :  { %v5421_v29 = vpop.permute.xlu1 %234  ;;  %v5423_v30 = vpop.permute.xlu0 %232 }
  0xb7   :  { %v266_v35 = vsel %vm256_vm2, %v227_v62, %v5421_v29  ;;  %v265_v36 = vsel %vm256_vm2, %v225_v63, %v5423_v30 }
  0xb8   :  { %v294_v37 = vmul.f32 %v5419_v22, %v266_v35  ;;  %v290_v38 = vmul.f32 %v5419_v22, %v265_v36  ;;  %639 = vrot.lane.b32.xlu1 %v5048_v2, %s4989_s22  ;;  %637 = vrot.lane.b32.xlu0 %v5034_v0, %s4989_s22 }
  0xba   :  { %v5444_v44 = vpop.permute.xlu1 %250  ;;  %v5446_v45 = vpop.permute.xlu0 %248  ;;  %v4247_v46 = vpack.c.bf16 %v294_v37, %v290_v38 }
  0xbb   :  { %v270_v47 = vsel %vm256_vm2, %v5444_v44, %v227_v62  ;;  %v269_v52 = vsel %vm256_vm2, %v5446_v45, %v225_v63 }
  0xbc   :  { %v293_v53 = vmul.f32 %v5442_v39, %v270_v47  ;;  %v289_v54 = vmul.f32 %v5442_v39, %v269_v52  ;;  %647 = vrot.lane.b32.xlu1 %v5194_v12, %s4989_s22  ;;  %645 = vrot.lane.b32.xlu0 %v5199_v13, %s4989_s22 }
  0xbd   :  { %4248 = vmatprep.subr.bf16.mxu0 %v4247_v46 }
  0xbe   :  { %v231_v56 = vpop.permute.xlu1 %230  ;;  %v229_v57 = vpop.permute.xlu0 %228  ;;  %v4249_v14 = vpack.c.bf16 %v293_v53, %v289_v54 }
  0xc0   :  { %631 = vrot.lane.b32.xlu1 %v5053_v3, %s4989_s22  ;;  %629 = vrot.lane.b32.xlu0 %v5039_v1, %s4989_s22 }
  0xc1   :  { %4250 = vmatpush1.bf16.msra.mxu0 %v4249_v14 }
  0xc2   :  { %v5464_v62 = vpop.permute.xlu1 %238  ;;  %v5466_v63 = vpop.permute.xlu0 %236 }
  0xc3   :  { %v268_v34 = vsel %vm256_vm2, %v231_v56, %v5464_v62  ;;  %v267_v35 = vsel %vm256_vm2, %v229_v57, %v5466_v63 }
  0xc4   :  { %v302_v36 = vmul.f32 %v5419_v22, %v268_v34  ;;  %v298_v37 = vmul.f32 %v5419_v22, %v267_v35  ;;  %643 = vrot.lane.b32.xlu1 %v5090_v8, %s4989_s22  ;;  %641 = vrot.lane.b32.xlu0 %v5095_v9, %s4989_s22  ;;  %v5497_v34 = vsub.s32 3, %v5213_v15 }
  0xc6   :  { %v5480_v38 = vpop.permute.xlu1 %254  ;;  %v5482_v46 = vpop.permute.xlu0 %252  ;;  %v4251_v47 = vpack.c.bf16 %v302_v36, %v298_v37 }
  0xc7   :  { %v272_v52 = vsel %vm256_vm2, %v5480_v38, %v231_v56  ;;  %v271_v53 = vsel %vm256_vm2, %v5482_v46, %v229_v57  ;;  %v5506_v57 = vrot.slane %v5237_v20, %v5497_v34 }
  0xc8   :  { %v301_v54 = vmul.f32 %v5442_v39, %v272_v52  ;;  %v297_v14 = vmul.f32 %v5442_v39, %v271_v53  ;;  %651 = vrot.lane.b32.xlu1 %v5218_v16, %s4989_s22  ;;  %649 = vrot.lane.b32.xlu0 %v5223_v17, %s4989_s22 }
  0xc9   :  { %4252 = vmatprep.subr.bf16.mxu0 %v4251_v47  ;;  %8123 = vst [vmem:[#allocation12_spill] sm:$0xff] %v5506_v57 }
  0xca   :  { %v308_v35 = vpop.permute.xlu1 %307  ;;  %v306_v56 = vpop.permute.xlu0 %305  ;;  %v4253_v36 = vpack.c.bf16 %v301_v54, %v297_v14 }
  0xcc   :  { %635 = vrot.lane.b32.xlu1 %v5076_v6, %s4989_s22  ;;  %633 = vrot.lane.b32.xlu0 %v5081_v7, %s4989_s22 }
  0xcd   :  { %4254 = vmatpush1.bf16.msra.mxu0 %v4253_v36  ;;  %v5526_v36 = vrot.slane %v5256_v25, %v5497_v34 }
  0xce   :  { %v5508_v37 = vpop.permute.xlu1 %315  ;;  %v5510_v52 = vpop.permute.xlu0 %313 }
  0xcf   :  { %8124 = vst [vmem:[#allocation13_spill] sm:$0xff] %v5510_v52  ;;  %v347_v47 = vsel %vm337_vm3, %v308_v35, %v5508_v37  ;;  %v346_v53 = vsel %vm337_vm3, %v306_v56, %v5510_v52  ;;  %8125 = vst [vmem:[#allocation14_spill] sm:$0xff] %v5526_v36 }
  0xd0   :  { %v375_v54 = vmul.f32 %v5506_v57, %v347_v47  ;;  %v371_v14 = vmul.f32 %v5506_v57, %v346_v53  ;;  %78 = vrot.lane.b32.xlu1 %v5194_v12, %s4982_s29  ;;  %76 = vrot.lane.b32.xlu0 %v5199_v13, %s4982_s29 }
  0xd2   :  { %v5528_v39 = vpop.permute.xlu1 %331  ;;  %v5530_v24 = vpop.permute.xlu0 %329  ;;  %v4255_v31 = vpack.c.bf16 %v375_v54, %v371_v14 }
  0xd3   :  { %v351_v47 = vsel %vm337_vm3, %v5528_v39, %v308_v35  ;;  %v350_v53 = vsel %vm337_vm3, %v5530_v24, %v306_v56 }
  0xd4   :  { %v374_v22 = vmul.f32 %v5526_v36, %v351_v47  ;;  %v370_v23 = vmul.f32 %v5526_v36, %v350_v53  ;;  %82 = vrot.lane.b32.xlu1 %v5218_v16, %s4982_s29  ;;  %80 = vrot.lane.b32.xlu0 %v5223_v17, %s4982_s29 }
  0xd5   :  { %4256 = vmatprep.subr.bf16.mxu0 %v4255_v31 }
  0xd6   :  { %v312_v54 = vpop.permute.xlu1 %311  ;;  %v310_v14 = vpop.permute.xlu0 %309  ;;  %v4257_v59 = vpack.c.bf16 %v374_v22, %v370_v23 }
  0xd8   :  { %161 = vrot.lane.b32.xlu1 %v5194_v12, %s4983_s26  ;;  %159 = vrot.lane.b32.xlu0 %v5199_v13, %s4983_s26 }
  0xd9   :  { %4258 = vmatpush1.bf16.msra.mxu0 %v4257_v59 }
  0xda   :  { %v5548_v35 = vpop.permute.xlu1 %319  ;;  %v5550_v56 = vpop.permute.xlu0 %317 }
  0xdb   :  { %8126 = vst [vmem:[#allocation15_spill] sm:$0xff] %v5548_v35  ;;  %8127 = vst [vmem:[#allocation16_spill] sm:$0xff] %v5550_v56  ;;  %v349_v47 = vsel %vm337_vm3, %v312_v54, %v5548_v35  ;;  %v348_v31 = vsel %vm337_vm3, %v310_v14, %v5550_v56 }
  0xdc   :  { %v383_v23 = vmul.f32 %v5506_v57, %v349_v47  ;;  %v379_v22 = vmul.f32 %v5506_v57, %v348_v31  ;;  %165 = vrot.lane.b32.xlu1 %v5218_v16, %s4983_s26  ;;  %163 = vrot.lane.b32.xlu0 %v5223_v17, %s4983_s26 }
  0xde   :  { %v5564_v59 = vpop.permute.xlu1 %335  ;;  %v5566_v53 = vpop.permute.xlu0 %333  ;;  %v4259_v52 = vpack.c.bf16 %v383_v23, %v379_v22  ;;  %v5581_v23 = vsub.s32 5, %v5213_v15 }
  0xdf   :  { %v353_v35 = vsel %vm337_vm3, %v5564_v59, %v312_v54  ;;  %v352_v47 = vsel %vm337_vm3, %v5566_v53, %v310_v14  ;;  %v4263_v14 = vpack.c.bf16 %v5048_v2, %v5034_v0  ;;  %v4267_v0 = vpack.c.bf16 %v5090_v8, %v5095_v9 }
  0xe0   :  { %v382_v31 = vmul.f32 %v5526_v36, %v353_v35  ;;  %v378_v57 = vmul.f32 %v5526_v36, %v352_v47  ;;  %242 = vrot.lane.b32.xlu1 %v5194_v12, %s4984_s27  ;;  %240 = vrot.lane.b32.xlu0 %v5199_v13, %s4984_s27  ;;  %v5592_v35 = vrot.slane %v5237_v20, %v5581_v23 }
  0xe1   :  { %4260 = vmatprep.subr.bf16.mxu0 %v4259_v52  ;;  %v4265_v52 = vpack.c.bf16 %v5053_v3, %v5039_v1  ;;  %v5616_v3 = vrot.slane %v5256_v25, %v5581_v23  ;;  %v4269_v8 = vpack.c.bf16 %v5076_v6, %v5081_v7 }
  0xe2   :  { %v397_v22 = vpop.permute.xlu1 %396  ;;  %v395_v54 = vpop.permute.xlu0 %394  ;;  %v4261_v56 = vpack.c.bf16 %v382_v31, %v378_v57  ;;  %8128 = vst [vmem:[#allocation17_spill] sm:$0xff] %v5592_v35 }
  0xe3   :  { %8129 = vst [vmem:[#allocation18_spill] sm:$0xff] %v5616_v3 }
  0xe4   :  { %246 = vrot.lane.b32.xlu1 %v5218_v16, %s4984_s27  ;;  %244 = vrot.lane.b32.xlu0 %v5223_v17, %s4984_s27 }
  0xe5   :  { %4262 = vmatpush1.bf16.msra.mxu0 %v4261_v56 }
  0xe6   :  { %v5596_v57 = vpop.permute.xlu1 %404  ;;  %v5598_v47 = vpop.permute.xlu0 %402  ;;  %4264 = vmatprep.subr.bf16.mxu0 %v4263_v14 }
  0xe7   :  { %v424_v2 = vsel %vm418_vm4, %v397_v22, %v5596_v57  ;;  %v423_v31 = vsel %vm418_vm4, %v395_v54, %v5598_v47 }
  0xe8   :  { %v456_v56 = vmul.f32 %v5592_v35, %v424_v2  ;;  %v452_v1 = vmul.f32 %v5592_v35, %v423_v31  ;;  %323 = vrot.lane.b32.xlu1 %v5194_v12, %s4985_s28  ;;  %321 = vrot.lane.b32.xlu0 %v5199_v13, %s4985_s28 }
  0xe9   :  { %4266 = vmatpush1.bf16.msra.mxu0 %v4265_v52 }
  0xea   :  { %v5620_v9 = vpop.permute.xlu1 %388  ;;  %v5622_v14 = vpop.permute.xlu0 %386  ;;  %4268 = vmatprep.subr.bf16.mxu0 %v4267_v0  ;;  %v4271_v2 = vpack.c.bf16 %v456_v56, %v452_v1 }
  0xeb   :  { %v428_v12 = vsel %vm418_vm4, %v5620_v9, %v397_v22  ;;  %v427_v13 = vsel %vm418_vm4, %v5622_v14, %v395_v54 }
  0xec   :  { %v455_v31 = vmul.f32 %v5616_v3, %v428_v12  ;;  %v451_v52 = vmul.f32 %v5616_v3, %v427_v13  ;;  %327 = vrot.lane.b32.xlu1 %v5218_v16, %s4985_s28  ;;  %325 = vrot.lane.b32.xlu0 %v5223_v17, %s4985_s28 }
  0xed   :  { %4270 = vmatpush1.bf16.msra.mxu0 %v4269_v8 }
  0xee   :  { %4272 = vmatprep.subr.bf16.mxu0 %v4271_v2  ;;  %v401_v6 = vpop.permute.xlu1 %400  ;;  %v399_v7 = vpop.permute.xlu0 %398  ;;  %v4273_v0 = vpack.c.bf16 %v455_v31, %v451_v52 }
  0xf0   :  { %410 = vrot.lane.b32.xlu1 %v5067_v5, %s4986_s5 }
  0xf1   :  { %4274 = vmatpush1.bf16.msra.mxu0 %v4273_v0 }
  0xf2   :  { %v5638_v22 = vpop.permute.xlu1 %408  ;;  %v5640_v54 = vpop.permute.xlu0 %406 }
  0xf3   :  { %8130 = vst [vmem:[#allocation19_spill] sm:$0xff] %v5638_v22  ;;  %v426_v16 = vsel %vm418_vm4, %v401_v6, %v5638_v22  ;;  %v425_v17 = vsel %vm418_vm4, %v399_v7, %v5640_v54 }
  0xf4   :  { %v464_v56 = vmul.f32 %v5592_v35, %v426_v16  ;;  %v460_v1 = vmul.f32 %v5592_v35, %v425_v17  ;;  %412 = vrot.lane.b32.xlu1 %v5062_v4, %s4986_s5  ;;  %v5667_v16 = vsub.s32 6, %v5213_v15 }
  0xf6   :  { %v5652_v8 = vpop.permute.xlu1 %392  ;;  %v5654_v2 = vpop.permute.xlu0 %390  ;;  %v4275_v12 = vpack.c.bf16 %v464_v56, %v460_v1  ;;  %8132 = vst [vmem:[#allocation21_spill] sm:$0xff] %v5667_v16 }
  0xf7   :  { %8131 = vst [vmem:[#allocation20_spill] sm:$0xff] %v5652_v8  ;;  %v430_v13 = vsel %vm418_vm4, %v5652_v8, %v401_v6  ;;  %v429_v31 = vsel %vm418_vm4, %v5654_v2, %v399_v7  ;;  %v5674_v6 = vrot.slane %v5237_v20, %v5667_v16 }
  0xf8   :  { %v463_v52 = vmul.f32 %v5616_v3, %v430_v13  ;;  %v459_v0 = vmul.f32 %v5616_v3, %v429_v31  ;;  %414 = vrot.lane.b32.xlu1 %v5109_v11, %s4986_s5  ;;  %4276 = vmatprep.subr.bf16.mxu0 %v4275_v12 }
  0xf9   :  { %8133 = vst [vmem:[#allocation22_spill] sm:$0xff] %v5674_v6 }
  0xfa   :  { %v478_v17 = vpop.permute.xlu1 %477  ;;  %v476_v56 = vpop.permute.xlu0 %475  ;;  %v4277_v1 = vpack.c.bf16 %v463_v52, %v459_v0 }
  0xfc   :  { %416 = vrot.lane.b32.xlu1 %v5104_v10, %s4986_s5  ;;  %4278 = vmatpush1.bf16.msra.mxu0 %v4277_v1  ;;  %v5692_v1 = vrot.slane %v5256_v25, %v5667_v16 }
  0xfe   :  { %v5676_v7 = vpop.permute.xlu1 %485  ;;  %v5678_v13 = vpop.permute.xlu0 %483  ;;  %8136 = vst [vmem:[#allocation25_spill] sm:$0xff] %v5692_v1 }
  0xff   :  { %8134 = vst [vmem:[#allocation23_spill] sm:$0xff] %v5676_v7  ;;  %8135 = vst [vmem:[#allocation24_spill] sm:$0xff] %v5678_v13  ;;  %v505_v12 = vsel %vm499_vm5, %v478_v17, %v5676_v7  ;;  %v504_v31 = vsel %vm499_vm5, %v476_v56, %v5678_v13 }
 0x100   :  { %v537_v52 = vmul.f32 %v5674_v6, %v505_v12  ;;  %v533_v0 = vmul.f32 %v5674_v6, %v504_v31  ;;  %491 = vrot.lane.b32.xlu1 %v5067_v5, %s4987_s18 }
 0x102   :  { %v5694_v35 = vpop.permute.xlu1 %469  ;;  %v5696_v36 = vpop.permute.xlu0 %467  ;;  %v4279_v3 = vpack.c.bf16 %v537_v52, %v533_v0 }
 0x103   :  { %v509_v7 = vsel %vm499_vm5, %v5694_v35, %v478_v17  ;;  %v508_v12 = vsel %vm499_vm5, %v5696_v36, %v476_v56 }
 0x104   :  { %v536_v31 = vmul.f32 %v5692_v1, %v509_v7  ;;  %v532_v13 = vmul.f32 %v5692_v1, %v508_v12  ;;  %493 = vrot.lane.b32.xlu1 %v5062_v4, %s4987_s18  ;;  %4280 = vmatprep.subr.bf16.mxu0 %v4279_v3 }
 0x106   :  { %v482_v16 = vpop.permute.xlu1 %481  ;;  %v480_v8 = vpop.permute.xlu0 %479  ;;  %v4281_v22 = vpack.c.bf16 %v536_v31, %v532_v13 }
 0x108   :  { %495 = vrot.lane.b32.xlu1 %v5109_v11, %s4987_s18  ;;  %4282 = vmatpush1.bf16.msra.mxu0 %v4281_v22 }
 0x10a   :  { %v5710_v17 = vpop.permute.xlu1 %489  ;;  %v5712_v52 = vpop.permute.xlu0 %487 }
 0x10b   :  { %8137 = vst [vmem:[#allocation26_spill] sm:$0xff] %v5710_v17  ;;  %8138 = vst [vmem:[#allocation27_spill] sm:$0xff] %v5712_v52  ;;  %v507_v56 = vsel %vm499_vm5, %v482_v16, %v5710_v17  ;;  %v506_v7 = vsel %vm499_vm5, %v480_v8, %v5712_v52 }
 0x10c   :  { %v545_v3 = vmul.f32 %v5674_v6, %v507_v56  ;;  %v541_v13 = vmul.f32 %v5674_v6, %v506_v7  ;;  %497 = vrot.lane.b32.xlu1 %v5104_v10, %s4987_s18  ;;  %v5739_v6 = vsub.s32 7, %v5213_v15 }
 0x10e   :  { %v5724_v22 = vpop.permute.xlu1 %473  ;;  %v5726_v0 = vpop.permute.xlu0 %471  ;;  %v4283_v12 = vpack.c.bf16 %v545_v3, %v541_v13  ;;  %8140 = vst [vmem:[#allocation29_spill] sm:$0xff] %v5739_v6 }
 0x10f   :  { %8139 = vst [vmem:[#allocation28_spill] sm:$0xff] %v5724_v22  ;;  %v511_v31 = vsel %vm499_vm5, %v5724_v22, %v482_v16  ;;  %v510_v17 = vsel %vm499_vm5, %v5726_v0, %v480_v8  ;;  %v5746_v8 = vrot.slane %v5237_v20, %v5739_v6  ;;  %v5764_v20 = vrot.slane %v5256_v25, %v5739_v6 }
 0x110   :  { %v544_v56 = vmul.f32 %v5692_v1, %v511_v31  ;;  %v540_v7 = vmul.f32 %v5692_v1, %v510_v17  ;;  %574 = vrot.lane.b32.xlu1 %v5062_v4, %s4988_s19  ;;  %4284 = vmatprep.subr.bf16.mxu0 %v4283_v12 }
 0x111   :  { %8141 = vst [vmem:[#allocation30_spill] sm:$0xff] %v5746_v8  ;;  %8144 = vst [vmem:[#allocation33_spill] sm:$0xff] %v5764_v20 }
 0x112   :  { %v559_v3 = vpop.permute.xlu1 %558  ;;  %v557_v13 = vpop.permute.xlu0 %556  ;;  %v4285_v52 = vpack.c.bf16 %v544_v56, %v540_v7 }
 0x114   :  { %576 = vrot.lane.b32.xlu1 %v5109_v11, %s4988_s19  ;;  %4286 = vmatpush1.bf16.msra.mxu0 %v4285_v52 }
 0x116   :  { %v5748_v16 = vpop.permute.xlu1 %566  ;;  %v5750_v17 = vpop.permute.xlu0 %564 }
 0x117   :  { %8142 = vst [vmem:[#allocation31_spill] sm:$0xff] %v5748_v16  ;;  %8143 = vst [vmem:[#allocation32_spill] sm:$0xff] %v5750_v17  ;;  %v586_v15 = vsel %vm580_vm6, %v559_v3, %v5748_v16  ;;  %v585_v12 = vsel %vm580_vm6, %v557_v13, %v5750_v17 }
 0x118   :  { %v618_v52 = vmul.f32 %v5746_v8, %v586_v15  ;;  %v614_v31 = vmul.f32 %v5746_v8, %v585_v12  ;;  %578 = vrot.lane.b32.xlu1 %v5104_v10, %s4988_s19 }
 0x11a   :  { %v5766_v56 = vpop.permute.xlu1 %550  ;;  %v5768_v7 = vpop.permute.xlu0 %548  ;;  %v4287_v1 = vpack.c.bf16 %v618_v52, %v614_v31 }
 0x11b   :  { %8145 = vst [vmem:[#allocation34_spill] sm:$0xff] %v5768_v7  ;;  %v590_v17 = vsel %vm580_vm6, %v5766_v56, %v559_v3  ;;  %v589_v15 = vsel %vm580_vm6, %v5768_v7, %v557_v13 }
 0x11c   :  { %v617_v12 = vmul.f32 %v5764_v20, %v590_v17  ;;  %v613_v16 = vmul.f32 %v5764_v20, %v589_v15  ;;  %653 = vrot.lane.b32.xlu1 %v5067_v5, %s4989_s22  ;;  %4288 = vmatprep.subr.bf16.mxu0 %v4287_v1 }
 0x11e   :  { %v563_v25 = vpop.permute.xlu1 %562  ;;  %v561_v6 = vpop.permute.xlu0 %560  ;;  %v4289_v22 = vpack.c.bf16 %v617_v12, %v613_v16 }
 0x120   :  { %655 = vrot.lane.b32.xlu1 %v5062_v4, %s4989_s22  ;;  %4290 = vmatpush1.bf16.msra.mxu0 %v4289_v22 }
 0x122   :  { %v5782_v3 = vpop.permute.xlu1 %570  ;;  %v5784_v52 = vpop.permute.xlu0 %568 }
 0x123   :  { %8146 = vst [vmem:[#allocation35_spill] sm:$0xff] %v5782_v3  ;;  %8147 = vst [vmem:[#allocation36_spill] sm:$0xff] %v5784_v52  ;;  %v588_v13 = vsel %vm580_vm6, %v563_v25, %v5782_v3  ;;  %v587_v5 = vsel %vm580_vm6, %v561_v6, %v5784_v52 }
 0x124   :  { %v626_v1 = vmul.f32 %v5746_v8, %v588_v13  ;;  %v622_v16 = vmul.f32 %v5746_v8, %v587_v5  ;;  %657 = vrot.lane.b32.xlu1 %v5109_v11, %s4989_s22 }
 0x126   :  { %v5796_v4 = vpop.permute.xlu1 %554  ;;  %v5798_v22 = vpop.permute.xlu0 %552  ;;  %v4291_v17 = vpack.c.bf16 %v626_v1, %v622_v16 }
 0x127   :  { %8148 = vst [vmem:[#allocation37_spill] sm:$0xff] %v5798_v22  ;;  %v592_v31 = vsel %vm580_vm6, %v5796_v4, %v563_v25  ;;  %v591_v15 = vsel %vm580_vm6, %v5798_v22, %v561_v6  ;;  %v5814_v25 = vld [vmem:[%s7973_s1] sm:$0xff]  ;;  %v4121_v6 = vld [vmem:[%s7976_s4 + $0x28] ss:$0 sm:$0xff] }
 0x128   :  { %v625_v12 = vmul.f32 %v5764_v20, %v592_v31  ;;  %v621_v13 = vmul.f32 %v5764_v20, %v591_v15  ;;  %659 = vrot.lane.b32.xlu1 %v5104_v10, %s4989_s22  ;;  %4292 = vmatprep.subr.bf16.mxu0 %v4291_v17  ;;  %8149 = vst [vmem:[#allocation38_spill] sm:$0xff] %v5814_v25  ;;  %v8012_v15 = vmov 0.0  }
 0x12a   :  { %v640_v11 = vpop.permute.xlu1 %639  ;;  %v638_v5 = vpop.permute.xlu0 %637  ;;  %v4293_v8 = vpack.c.bf16 %v625_v12, %v621_v13  ;;  %v4120_v12 = vld [vmem:[%s7976_s4 + $0x20] ss:$0 sm:$0xff] }
 0x12c   :  { %4294 = vmatpush1.bf16.msra.mxu0 %v4293_v8 }
 0x12e   :  { %v5819_v1 = vpop.permute.xlu1 %647  ;;  %v5821_v16 = vpop.permute.xlu0 %645 }
 0x12f   :  { %8150 = vst [vmem:[#allocation39_spill] sm:$0xff] %v5819_v1  ;;  %8151 = vst [vmem:[#allocation40_spill] sm:$0xff] %v5821_v16  ;;  %v667_v10 = vsel %vm661_vm7, %v640_v11, %v5819_v1  ;;  %v666_v8 = vsel %vm661_vm7, %v638_v5, %v5821_v16  ;;  %786 = vmatmul.mubr.f32.vlgmr.msra.gmra.mrb[0].mxu0 %v5814_v25 }
 0x130   :  { %v699_v17 = vmul.f32 %v4121_v6, %v667_v10  ;;  %v695_v31 = vmul.f32 %v4121_v6, %v666_v8  ;;  %856 = vmatprep.mubr.f32.mxu0 %v8012_v15 }
 0x132   :  { %v5834_v13 = vpop.permute.xlu1 %631  ;;  %v5836_v20 = vpop.permute.xlu0 %629  ;;  %v4295_v1 = vpack.c.bf16 %v699_v17, %v695_v31 }
 0x133   :  { %8152 = vst [vmem:[#allocation41_spill] sm:$0xff] %v5836_v20  ;;  %v671_v16 = vsel %vm661_vm7, %v5834_v13, %v640_v11  ;;  %v670_v10 = vsel %vm661_vm7, %v5836_v20, %v638_v5 }
 0x134   :  { %v698_v8 = vmul.f32 %v4120_v12, %v671_v16  ;;  %v694_v25 = vmul.f32 %v4120_v12, %v670_v10  ;;  %4296 = vmatprep.subr.bf16.mxu0 %v4295_v1  ;;  %v5862_v1 = vld [vmem:[%s7976_s4 + $0x18] sm:$0xff] }
 0x136   :  { %v4297_v15 = vpack.c.bf16 %v698_v8, %v694_v25  ;;  %v644_v52 = vpop.permute.xlu1 %643  ;;  %v642_v3 = vpop.permute.xlu0 %641  ;;  %v5857_v25 = vld [vmem:[%s7976_s4 + $0x10] sm:$0xff] }
 0x138   :  { %4298 = vmatpush1.bf16.msra.mxu0 %v4297_v15 }
 0x13a   :  { %v5844_v7 = vpop.permute.xlu1 %651  ;;  %v5846_v22 = vpop.permute.xlu0 %649 }
 0x13b   :  { %8153 = vst [vmem:[#allocation42_spill] sm:$0xff] %v5844_v7  ;;  %8154 = vst [vmem:[#allocation43_spill] sm:$0xff] %v5846_v22  ;;  %v669_v17 = vsel %vm661_vm7, %v644_v52, %v5844_v7  ;;  %v668_v11 = vsel %vm661_vm7, %v642_v3, %v5846_v22  ;;  %v5876_v22 = vrot.slane %v5857_v25, %v5232_v19 }
 0x13c   :  { %v707_v5 = vmul.f32 %v4121_v6, %v669_v17  ;;  %v703_v16 = vmul.f32 %v4121_v6, %v668_v11  ;;  %v5880_v7 = vrot.slane %v5862_v1, %v5232_v19 }
 0x13d   :  { %8155 = vst [vmem:[#allocation44_spill] sm:$0xff] %v5876_v22 }
 0x13e   :  { %v5864_v31 = vpop.permute.xlu1 %635  ;;  %v5866_v15 = vpop.permute.xlu0 %633  ;;  %v4299_v10 = vpack.c.bf16 %v707_v5, %v703_v16  ;;  %8156 = vst [vmem:[#allocation45_spill] sm:$0xff] %v5880_v7 }
 0x13f   :  { %v673_v8 = vsel %vm661_vm7, %v5864_v31, %v644_v52  ;;  %v672_v6 = vsel %vm661_vm7, %v5866_v15, %v642_v3 }
 0x140   :  { %v706_v17 = vmul.f32 %v4120_v12, %v673_v8  ;;  %v702_v11 = vmul.f32 %v4120_v12, %v672_v6  ;;  %4300 = vmatprep.subr.bf16.mxu0 %v4299_v10 }
 0x142   :  { %v4301_v5 = vpack.c.bf16 %v706_v17, %v702_v11  ;;  %v79_v16 = vpop.permute.xlu1 %78  ;;  %v77_v20 = vpop.permute.xlu0 %76  ;;  %v8021_v17 = vmov 1.0  }
 0x143   :  { %v100_v52 = vsel %vm94_vm0, %v5258_v26, %v79_v16  ;;  %v99_v3 = vsel %vm94_vm0, %v5239_v21, %v77_v20  ;;  %v95_v12 = vsel %vm94_vm0, %v77_v20, %v5275_v33  ;;  %v96_v19 = vsel %vm94_vm0, %v79_v16, %v5273_v32  ;;  %v5903_v32 = vld [vmem:[%s7973_s1 + $0x10] sm:$0xff] }
 0x144   :  { %4302 = vmatpush1.bf16.msra.mxu0 %v4301_v5  ;;  %v130_v10 = vmul.f32 %v5880_v7, %v95_v12  ;;  %v134_v8 = vmul.f32 %v5880_v7, %v96_v19  ;;  %v129_v6 = vmul.f32 %v5876_v22, %v99_v3  ;;  %v133_v26 = vmul.f32 %v5876_v22, %v100_v52 }
 0x145   :  { %4124 = vmatprep.subr.msk.mxu0 %vm717_vm8, %v8021_v17  ;;  %v5907_v5 = vrot.slane %v5857_v25, %v5326_v55  ;;  %v5911_v16 = vrot.slane %v5862_v1, %v5326_v55 }
 0x146   :  { %v83_v21 = vpop.permute.xlu1 %82  ;;  %v81_v33 = vpop.permute.xlu0 %80  ;;  %v4303_v20 = vpack.c.bf16 %v134_v8, %v130_v10  ;;  %v4305_v11 = vpack.c.bf16 %v133_v26, %v129_v6  ;;  %v8159_v26 = vmov 0.0  }
 0x147   :  { %8157 = vst [vmem:[#allocation46_spill] sm:$0xff] %v5907_v5  ;;  %8158 = vst [vmem:[#allocation47_spill] sm:$0xff] %v5911_v16  ;;  %v98_v52 = vsel %vm94_vm0, %v83_v21, %v5309_v48  ;;  %v102_v3 = vsel %vm94_vm0, %v5293_v42, %v83_v21  ;;  %v97_v12 = vsel %vm94_vm0, %v81_v33, %v5311_v49 }
 0x148   :  { %v101_v19 = vsel %vm94_vm0, %v5295_v43, %v81_v33  ;;  %v141_v10 = vmul.f32 %v5876_v22, %v102_v3  ;;  %v142_v55 = vmul.f32 %v5880_v7, %v98_v52  ;;  %v138_v48 = vmul.f32 %v5880_v7, %v97_v12  ;;  %4125 = vmatpush1.msk.msra.mxu0 %vm717_vm8, %v8021_v17 }
 0x149   :  { %v137_v8 = vmul.f32 %v5876_v22, %v101_v19  ;;  %4304 = vmatprep.subr.bf16.mxu1 %v4303_v20  ;;  %4126 = vmatmul.mubr.msk.f32.vlgmr.msra.gmra.mrb[0].mxu0 %vm713_vm9, %v5903_v32 }
 0x14a   :  { %4306 = vmatpush1.bf16.msra.mxu1 %v4305_v11  ;;  %v162_v42 = vpop.permute.xlu1 %161  ;;  %v160_v49 = vpop.permute.xlu0 %159  ;;  %v4307_v6 = vpack.c.bf16 %v142_v55, %v138_v48  ;;  %1104 = vmatprep.mubr.f32.mxu0 %v8159_v26 }
 0x14b   :  { %v4309_v43 = vpack.c.bf16 %v141_v10, %v137_v8  ;;  %v177_v21 = vsel %vm175_vm1, %v162_v42, %v5357_v27  ;;  %v181_v33 = vsel %vm175_vm1, %v5337_v60, %v162_v42  ;;  %v176_v20 = vsel %vm175_vm1, %v160_v49, %v5359_v28 }
 0x14c   :  { %v180_v11 = vsel %vm175_vm1, %v5339_v61, %v160_v49  ;;  %v214_v52 = vmul.f32 %v5907_v5, %v181_v33  ;;  %v215_v3 = vmul.f32 %v5911_v16, %v177_v21  ;;  %v211_v27 = vmul.f32 %v5911_v16, %v176_v20  ;;  %4308 = vmatprep.subr.bf16.mxu1 %v4307_v6 }
 0x14d   :  { %v210_v12 = vmul.f32 %v5907_v5, %v180_v11  ;;  %v5952_v28 = vrot.slane %v5857_v25, %v5410_v58  ;;  %v5956_v61 = vrot.slane %v5862_v1, %v5410_v58 }
 0x14e   :  { %4310 = vmatpush1.bf16.msra.mxu1 %v4309_v43  ;;  %v166_v19 = vpop.permute.xlu1 %165  ;;  %v164_v60 = vpop.permute.xlu0 %163  ;;  %v4311_v10 = vpack.c.bf16 %v215_v3, %v211_v27 }
 0x14f   :  { %v4313_v55 = vpack.c.bf16 %v214_v52, %v210_v12  ;;  %8160 = vst [vmem:[#allocation48_spill] sm:$0xff] %v5952_v28  ;;  %8161 = vst [vmem:[#allocation49_spill] sm:$0xff] %v5956_v61  ;;  %v179_v8 = vsel %vm175_vm1, %v166_v19, %v5393_v50  ;;  %v183_v48 = vsel %vm175_vm1, %v5377_v40, %v166_v19 }
 0x150   :  { %v178_v42 = vsel %vm175_vm1, %v164_v60, %v5395_v51  ;;  %v182_v49 = vsel %vm175_vm1, %v5379_v41, %v164_v60  ;;  %v222_v6 = vmul.f32 %v5907_v5, %v183_v48  ;;  %v223_v58 = vmul.f32 %v5911_v16, %v179_v8  ;;  %4312 = vmatprep.subr.bf16.mxu1 %v4311_v10 }
 0x151   :  { %v218_v43 = vmul.f32 %v5907_v5, %v182_v49  ;;  %v219_v50 = vmul.f32 %v5911_v16, %v178_v42 }
 0x152   :  { %4314 = vmatpush1.bf16.msra.mxu1 %v4313_v55  ;;  %v243_v21 = vpop.permute.xlu1 %242  ;;  %v241_v40 = vpop.permute.xlu0 %240 }
 0x153   :  { %v4315_v33 = vpack.c.bf16 %v223_v58, %v219_v50  ;;  %v4317_v20 = vpack.c.bf16 %v222_v6, %v218_v43  ;;  %v258_v51 = vsel %vm256_vm2, %v243_v21, %v5444_v44  ;;  %v262_v41 = vsel %vm256_vm2, %v5421_v29, %v243_v21 }
 0x154   :  { %v257_v11 = vsel %vm256_vm2, %v241_v40, %v5446_v45  ;;  %v261_v52 = vsel %vm256_vm2, %v5423_v30, %v241_v40  ;;  %v295_v3 = vmul.f32 %v5952_v28, %v262_v41  ;;  %v296_v12 = vmul.f32 %v5956_v61, %v258_v51  ;;  %v8164_v40 = vld [vmem:[#allocation13_spill] sm:$0xff] }
 0x155   :  { %v291_v27 = vmul.f32 %v5952_v28, %v261_v52  ;;  %v292_v44 = vmul.f32 %v5956_v61, %v257_v11  ;;  %4316 = vmatprep.subr.bf16.mxu1 %v4315_v33  ;;  %v5992_v45 = vrot.slane %v5857_v25, %v5497_v34  ;;  %v5996_v30 = vrot.slane %v5862_v1, %v5497_v34 }
 0x156   :  { %4318 = vmatpush1.bf16.msra.mxu1 %v4317_v20  ;;  %v247_v19 = vpop.permute.xlu1 %246  ;;  %v245_v29 = vpop.permute.xlu0 %244 }
 0x157   :  { %v4319_v60 = vpack.c.bf16 %v296_v12, %v292_v44  ;;  %v4321_v10 = vpack.c.bf16 %v295_v3, %v291_v27  ;;  %8162 = vst [vmem:[#allocation50_spill] sm:$0xff] %v5992_v45  ;;  %8163 = vst [vmem:[#allocation51_spill] sm:$0xff] %v5996_v30  ;;  %v260_v55 = vsel %vm256_vm2, %v247_v19, %v5480_v38  ;;  %v8165_v12 = vld [vmem:[#allocation15_spill] sm:$0xff] }
 0x158   :  { %v264_v8 = vsel %vm256_vm2, %v5464_v62, %v247_v19  ;;  %v259_v48 = vsel %vm256_vm2, %v245_v29, %v5482_v46  ;;  %v263_v42 = vsel %vm256_vm2, %v5466_v63, %v245_v29  ;;  %v304_v34 = vmul.f32 %v5956_v61, %v260_v55  ;;  %v8166_v19 = vld [vmem:[#allocation16_spill] sm:$0xff] }
 0x159   :  { %v303_v49 = vmul.f32 %v5952_v28, %v264_v8  ;;  %v299_v6 = vmul.f32 %v5952_v28, %v263_v42  ;;  %v300_v38 = vmul.f32 %v5956_v61, %v259_v48  ;;  %4320 = vmatprep.subr.bf16.mxu1 %v4319_v60 }
 0x15a   :  { %4322 = vmatpush1.bf16.msra.mxu1 %v4321_v10  ;;  %v324_v58 = vpop.permute.xlu1 %323  ;;  %v322_v62 = vpop.permute.xlu0 %321 }
 0x15b   :  { %v4323_v43 = vpack.c.bf16 %v304_v34, %v300_v38  ;;  %v4325_v50 = vpack.c.bf16 %v303_v49, %v299_v6  ;;  %v339_v46 = vsel %vm337_vm3, %v324_v58, %v5528_v39  ;;  %v343_v63 = vsel %vm337_vm3, %v5508_v37, %v324_v58  ;;  %v6052_v49 = vld [vmem:[%s7972_s0 + $0x18] sm:$0xff]  ;;  %v4957_v38 = vld [vmem:[%s7972_s0 + $0x30] sm:$0xff] }
 0x15c   :  { %v338_v21 = vsel %vm337_vm3, %v322_v62, %v5530_v24  ;;  %v342_v33 = vsel %vm337_vm3, %v8164_v40, %v322_v62  ;;  %v376_v20 = vmul.f32 %v5992_v45, %v343_v63  ;;  %v377_v51 = vmul.f32 %v5996_v30, %v339_v46  ;;  %v4958_v58 = vld [vmem:[%s7972_s0 + $0x10] sm:$0xff]  ;;  %v4959_v46 = vld [vmem:[%s7972_s0 + $0x78] sm:$0xff] }
 0x15d   :  { %v372_v41 = vmul.f32 %v5992_v45, %v342_v33  ;;  %v373_v39 = vmul.f32 %v5996_v30, %v338_v21  ;;  %4324 = vmatprep.subr.bf16.mxu1 %v4323_v43  ;;  %v4337_v62 = vpack.c.bf16 %v4957_v38, %v4958_v58  ;;  %v6063_v43 = vrot.slane %v5862_v1, %v5581_v23  ;;  %v4960_v63 = vld [vmem:[%s7972_s0 + $0x58] sm:$0xff] }
 0x15e   :  { %4326 = vmatpush1.bf16.msra.mxu1 %v4325_v50  ;;  %v328_v11 = vpop.permute.xlu1 %327  ;;  %v326_v37 = vpop.permute.xlu0 %325  ;;  %v4339_v21 = vpack.c.bf16 %v4959_v46, %v4960_v63 }
 0x15f   :  { %v4327_v52 = vpack.c.bf16 %v377_v51, %v373_v39  ;;  %v4329_v3 = vpack.c.bf16 %v376_v20, %v372_v41  ;;  %v341_v24 = vsel %vm337_vm3, %v328_v11, %v5564_v59  ;;  %v345_v27 = vsel %vm337_vm3, %v8165_v12, %v328_v11  ;;  %8167 = vst [vmem:[#allocation13_spill] sm:$0xff] %v6063_v43  ;;  %v8169_v12 = vld [vmem:[#allocation19_spill] sm:$0xff] }
 0x160   :  { %v340_v44 = vsel %vm337_vm3, %v326_v37, %v5566_v53  ;;  %v344_v29 = vsel %vm337_vm3, %v8166_v19, %v326_v37  ;;  %v384_v60 = vmul.f32 %v5992_v45, %v345_v27  ;;  %v385_v10 = vmul.f32 %v5996_v30, %v341_v24  ;;  %v4955_v53 = vld [vmem:[%s7972_s0 + $0x38] sm:$0xff] }
 0x161   :  { %v380_v55 = vmul.f32 %v5992_v45, %v344_v29  ;;  %v381_v59 = vmul.f32 %v5996_v30, %v340_v44  ;;  %4328 = vmatprep.subr.bf16.mxu1 %v4327_v52  ;;  %v4335_v34 = vpack.c.bf16 %v4955_v53, %v6052_v49  ;;  %v8170_v44 = vld [vmem:[#allocation20_spill] sm:$0xff] }
 0x162   :  { %4330 = vmatpush1.bf16.msra.mxu1 %v4329_v3  ;;  %v411_v8 = vpop.permute.xlu1 %410 }
 0x163   :  { %v4331_v48 = vpack.c.bf16 %v385_v10, %v381_v59  ;;  %v4333_v42 = vpack.c.bf16 %v384_v60, %v380_v55  ;;  %v431_v40 = vsel %vm418_vm4, %v411_v8, %v5622_v14  ;;  %v419_v51 = vsel %vm418_vm4, %v5598_v47, %v411_v8  ;;  %v4961_v14 = vld [vmem:[%s7972_s0 + $0x70] sm:$0xff] }
 0x165   :  { %4332 = vmatprep.subr.bf16.mxu1 %v4331_v48  ;;  %v8171_v48 = vld [vmem:[#allocation21_spill] sm:$0xff] }
 0x166   :  { %4334 = vmatpush1.bf16.msra.mxu1 %v4333_v42  ;;  %v413_v6 = vpop.permute.xlu1 %412  ;;  %v6115_v42 = vrot.slane %v5857_v25, %v8171_v48  ;;  %v6119_v53 = vrot.slane %v5862_v1, %v8171_v48 }
 0x167   :  { %v432_v50 = vsel %vm418_vm4, %v413_v6, %v5620_v9  ;;  %4336 = vmatprep.subr.bf16.mxu1 %v4335_v34  ;;  %v420_v33 = vsel %vm418_vm4, %v5596_v57, %v413_v6  ;;  %v6082_v9 = vrot.slane %v5857_v25, %v5581_v23  ;;  %v4962_v57 = vld [vmem:[%s7972_s0 + $0x50] sm:$0xff]  ;;  %v454_v23 = vmul.f32 %v6063_v43, %v431_v40  ;;  %v8174_v34 = vld [vmem:[#allocation24_spill] sm:$0xff] }
 0x168   :  { %v458_v20 = vmul.f32 %v6063_v43, %v432_v50  ;;  %v4341_v39 = vpack.c.bf16 %v4961_v14, %v4962_v57  ;;  %8172 = vst [vmem:[#allocation16_spill] sm:$0xff] %v6115_v42  ;;  %8173 = vst [vmem:[#allocation19_spill] sm:$0xff] %v6119_v53 }
 0x169   :  { %8168 = vst [vmem:[#allocation15_spill] sm:$0xff] %v6082_v9  ;;  %v457_v11 = vmul.f32 %v6082_v9, %v420_v33  ;;  %v453_v37 = vmul.f32 %v6082_v9, %v419_v51 }
 0x16a   :  { %4338 = vmatpush1.bf16.msra.mxu1 %v4337_v62  ;;  %v415_v41 = vpop.permute.xlu1 %414  ;;  %v4343_v3 = vpack.c.bf16 %v458_v20, %v454_v23  ;;  %v8175_v62 = vld [vmem:[#allocation23_spill] sm:$0xff] }
 0x16b   :  { %4340 = vmatprep.subr.bf16.mxu1 %v4339_v21  ;;  %v421_v47 = vsel %vm418_vm4, %v5640_v54, %v415_v41  ;;  %v433_v52 = vsel %vm418_vm4, %v415_v41, %v5654_v2  ;;  %v4345_v29 = vpack.c.bf16 %v457_v11, %v453_v37  ;;  %v8176_v41 = vld [vmem:[#allocation27_spill] sm:$0xff]  ;;  %v8178_v11 = vld [vmem:[#allocation28_spill] sm:$0xff] }
 0x16c   :  { %v461_v60 = vmul.f32 %v6082_v9, %v421_v47  ;;  %v462_v54 = vmul.f32 %v6063_v43, %v433_v52 }
 0x16e   :  { %4342 = vmatpush1.bf16.msra.mxu1 %v4341_v39  ;;  %v417_v24 = vpop.permute.xlu1 %416  ;;  %v8177_v39 = vld [vmem:[#allocation26_spill] sm:$0xff] }
 0x16f   :  { %v422_v27 = vsel %vm418_vm4, %v8169_v12, %v417_v24  ;;  %v434_v19 = vsel %vm418_vm4, %v417_v24, %v8170_v44  ;;  %4344 = vmatprep.subr.bf16.mxu1 %v4343_v3 }
 0x170   :  { %v465_v10 = vmul.f32 %v6082_v9, %v422_v27  ;;  %v466_v2 = vmul.f32 %v6063_v43, %v434_v19 }
 0x172   :  { %4346 = vmatpush1.bf16.msra.mxu1 %v4345_v29  ;;  %v492_v55 = vpop.permute.xlu1 %491  ;;  %v4347_v59 = vpack.c.bf16 %v466_v2, %v462_v54  ;;  %v4349_v8 = vpack.c.bf16 %v465_v10, %v461_v60  ;;  %v6162_v54 = vld [vmem:[%s7975_s3] sm:$0xff]  ;;  %v6174_v2 = vld [vmem:[%s7975_s3 + $0x8] sm:$0xf] }
 0x173   :  { %v500_v6 = vsel %vm499_vm5, %v8174_v34, %v492_v55  ;;  %v512_v38 = vsel %vm499_vm5, %v492_v55, %v5696_v36 }
 0x174   :  { %4348 = vmatprep.subr.bf16.mxu1 %v4347_v59  ;;  %v534_v63 = vmul.f32 %v6115_v42, %v500_v6  ;;  %v535_v21 = vmul.f32 %v6119_v53, %v512_v38 }
 0x176   :  { %4350 = vmatpush1.bf16.msra.mxu1 %v4349_v8  ;;  %v494_v58 = vpop.permute.xlu1 %493 }
 0x177   :  { %v501_v50 = vsel %vm499_vm5, %v8175_v62, %v494_v58  ;;  %v513_v46 = vsel %vm499_vm5, %v494_v58, %v5694_v35 }
 0x178   :  { %v538_v40 = vmul.f32 %v6115_v42, %v501_v50  ;;  %v539_v33 = vmul.f32 %v6119_v53, %v513_v46 }
 0x17a   :  { %v496_v20 = vpop.permute.xlu1 %495  ;;  %v4351_v36 = vpack.c.bf16 %v539_v33, %v535_v21  ;;  %v4353_v51 = vpack.c.bf16 %v538_v40, %v534_v63 }
 0x17b   :  { %v502_v14 = vsel %vm499_vm5, %v8176_v41, %v496_v20  ;;  %v514_v35 = vsel %vm499_vm5, %v496_v20, %v5726_v0 }
 0x17c   :  { %4352 = vmatprep.subr.bf16.mxu1 %v4351_v36  ;;  %v542_v47 = vmul.f32 %v6115_v42, %v502_v14  ;;  %v543_v52 = vmul.f32 %v6119_v53, %v514_v35 }
 0x17d   :  { %4354 = vmatpush1.bf16.msra.mxu1 %v4353_v51 }
 0x17e   :  { %v498_v57 = vpop.permute.xlu1 %497 }
 0x17f   :  { %v503_v23 = vsel %vm499_vm5, %v8177_v39, %v498_v57  ;;  %v515_v37 = vsel %vm499_vm5, %v498_v57, %v8178_v11 }
 0x180   :  { %v546_v3 = vmul.f32 %v6115_v42, %v503_v23  ;;  %v547_v24 = vmul.f32 %v6119_v53, %v515_v37 }
 0x182   :  { %v4355_v12 = vpack.c.bf16 %v547_v24, %v543_v52  ;;  %v4357_v0 = vpack.c.bf16 %v546_v3, %v542_v47  ;;  %v6188_v6 = vpop.permute.xlu1 %574 }
 0x184   :  { %4356 = vmatprep.subr.bf16.mxu1 %v4355_v12 }
 0x185   :  { %4358 = vmatpush1.bf16.msra.mxu1 %v4357_v0 }
 0x186   :  { %v6190_v38 = vpop.permute.xlu1 %576 }
 0x21c   :  { %v858_v27 = vpop.f32.mrb[0].mxu0 }
 0x21d   :  { %v6153_v44 = vmax.f32 %v858_v27, 0.0  ;;  %v860_v19 = vpop.f32.mrb[1].mxu0 }
 0x21e   :  { %v6155_v29 = vmax.f32 %v860_v19, 0.0 }
 0x21f   :  { %8179 = vst [vmem:[#allocation20_spill] sm:$0xff] %v6153_v44  ;;  %v1016_v10 = vsel %vm1015_vm10, %v6153_v44, 1.0  ;;  %v6193_v58 = vrot.slane %v6153_v44, 4 }
 0x220   :  { %8180 = vst [vmem:[#allocation21_spill] sm:$0xff] %v6155_v29  ;;  %v1017_v60 = vsel %vm1015_vm10, %v6155_v29, 1.0  ;;  %v6180_v48 = vrot.slane %v6155_v29, 4 }
 0x221   :  { %4130 = vmatprep.subr.msk.mxu0 %vm1027_vm11, %v1017_v60  ;;  %8182 = vst [vmem:[#allocation23_spill] sm:$0xff] %v6193_v58 }
 0x222   :  { %4131 = vmatpush1.msk.msra.mxu0 %vm1027_vm11, %v1016_v10  ;;  %8181 = vst [vmem:[#allocation24_spill] sm:$0xff] %v6180_v48 }
 0x223   :  { %4132 = vmatmul.mubr.msk.f32.vlgmr.msra.gmra.mrb[2].mxu0 %vm1020_vm12, %v6162_v54 }
 0x224   :  { %1110 = vmatprep.mubr.f32.mxu0 %v8159_v26 }
 0x227   :  { %4133 = vmatmul.mubr.msk.f32.gmra.mrb[4].mxu0 %vm1020_vm12, %v6174_v2 }
 0x228   :  { %1431 = vmatprep.mubr.f32.mxu0 %v8159_v26 }
 0x2f6   :  { %v1106_v55 = vpop.f32.mrb[2].mxu0 }
 0x2f7   :  { %v1198_v59 = vrot.slane %v1106_v55, 4  ;;  %v1108_v8 = vpop.f32.mrb[3].mxu0 }
 0x2f8   :  { %v1199_v34 = vrot.slane %v1108_v8, 4  ;;  %4139 = vmatprep.subr.msk.mxu0 %vm1015_vm10, %v1108_v8 }
 0x2f9   :  { %1202 = vxpose.xlu0.b32.start.end [1/1] (short) %v1198_v59, 128  ;;  %4140 = vmatpush1.msk.msra.mxu0 %vm1015_vm10, %v1106_v55 }
 0x2fa   :  { %4173 = vmatprep.subr.msk.mxu0 %vm1015_vm10, %v6180_v48  ;;  %1234 = vxpose.xlu1.b32.start.end [1/1] (short) %v1199_v34, 128  ;;  %v6236_v0 = vpop.f32.mrb[4].mxu0  ;;  %v8184_v34 = vld [vmem:[#allocation29_spill] sm:$0xff] }
 0x2fb   :  { %8183 = vst [vmem:[#allocation27_spill] sm:$0xff] %v6236_v0  ;;  %v6239_v19 = vpop.f32.mrb[5].mxu0 }
 0x35e   :  { %572 = vrot.lane.b32.xlu0 %v6052_v49, %s4988_s19  ;;  %v6200_v49 = vpop.permute.xlu1 %578 }
 0x362   :  { %v6205_v63 = vpop.permute.xlu1 %653 }
 0x366   :  { %v6210_v33 = vpop.permute.xlu1 %655 }
 0x36a   :  { %v6215_v36 = vpop.permute.xlu1 %657 }
 0x36e   :  { %v6220_v14 = vpop.permute.xlu1 %659 }
 0x379   :  { %v1218_v62 = vpop.trf.xlu0 }
 0x37a   :  { %4141 = vmatmul.mubr.msk.f32.vlgmr.msra.gmra.mrb[6].mxu0 %vm1266_vm13, %v1218_v62  ;;  %v1250_v57 = vpop.trf.xlu1  ;;  %v6255_v62 = vrot.slane %v5857_v25, %v8184_v34  ;;  %v596_v25 = vsel %vm580_vm6, %v6200_v49, %v5796_v4 }
 0x37b   :  { %4174 = vmatpush1.msk.msra.mxu0 %vm1015_vm10, %v6193_v58  ;;  %1437 = vmatprep.mubr.f32.mxu0 %v8159_v26 }
 0x37c   :  { %8185 = vst [vmem:[#allocation26_spill] sm:$0xff] %v6255_v62 }
 0x37d   :  { %v1219_v50 = vpop.trf.xlu0 }
 0x37e   :  { %4142 = vmatmul.mubr.msk.f32.gmra.mrb[8].mxu0 %vm1266_vm13, %v1219_v50  ;;  %v1251_v11 = vpop.trf.xlu1  ;;  %v6259_v50 = vrot.slane %v5862_v1, %v8184_v34  ;;  %v8193_v34 = vld [vmem:[#allocation41_spill] sm:$0xff] }
 0x37f   :  { %1443 = vmatprep.mubr.f32.mxu0 %v8159_v26 }
 0x380   :  { %8186 = vst [vmem:[#allocation28_spill] sm:$0xff] %v6259_v50 }
 0x381   :  { %v1220_v46 = vpop.trf.xlu0 }
 0x382   :  { %4143 = vmatmul.mubr.msk.f32.gmra.mrb[10].mxu0 %vm1266_vm13, %v1220_v46  ;;  %v1252_v47 = vpop.trf.xlu1  ;;  %v8187_v46 = vld [vmem:[#allocation31_spill] sm:$0xff] }
 0x383   :  { %1449 = vmatprep.mubr.f32.mxu0 %v8159_v26 }
 0x385   :  { %v1221_v21 = vpop.trf.xlu0 }
 0x386   :  { %4144 = vmatmul.mubr.msk.f32.gmra.mrb[12].mxu0 %vm1266_vm13, %v1221_v21  ;;  %v1253_v24 = vpop.trf.xlu1  ;;  %v582_v21 = vsel %vm580_vm6, %v8187_v46, %v6188_v6 }
 0x387   :  { %1455 = vmatprep.mubr.f32.mxu0 %v8159_v26 }
 0x389   :  { %v1222_v40 = vpop.trf.xlu0 }
 0x38a   :  { %4145 = vmatmul.mubr.msk.f32.gmra.mrb[14].mxu0 %vm1266_vm13, %v1222_v40  ;;  %v1254_v27 = vpop.trf.xlu1  ;;  %v594_v40 = vsel %vm580_vm6, %v6188_v6, %v5766_v56  ;;  %v8189_v6 = vld [vmem:[#allocation32_spill] sm:$0xff] }
 0x38b   :  { %1461 = vmatprep.mubr.f32.mxu0 %v8159_v26 }
 0x38d   :  { %v1223_v20 = vpop.trf.xlu0 }
 0x38e   :  { %4146 = vmatmul.mubr.msk.f32.gmra.mrb[16].mxu0 %vm1266_vm13, %v1223_v20  ;;  %v1255_v10 = vpop.trf.xlu1  ;;  %v619_v20 = vmul.f32 %v6255_v62, %v582_v21  ;;  %v8194_v21 = vld [vmem:[#allocation39_spill] sm:$0xff] }
 0x38f   :  { %1467 = vmatprep.mubr.f32.mxu0 %v8159_v26 }
 0x391   :  { %v1224_v51 = vpop.trf.xlu0 }
 0x392   :  { %4147 = vmatmul.mubr.msk.f32.gmra.mrb[18].mxu0 %vm1266_vm13, %v1224_v51  ;;  %v1256_v55 = vpop.trf.xlu1 }
 0x393   :  { %1473 = vmatprep.mubr.f32.mxu0 %v8159_v26 }
 0x395   :  { %v1225_v41 = vpop.trf.xlu0 }
 0x396   :  { %4148 = vmatmul.mubr.msk.f32.gmra.mrb[20].mxu0 %vm1266_vm13, %v1225_v41  ;;  %v1257_v59 = vpop.trf.xlu1  ;;  %v620_v41 = vmul.f32 %v6259_v50, %v594_v40 }
 0x397   :  { %1479 = vmatprep.mubr.f32.mxu0 %v8159_v26 }
 0x399   :  { %v1226_v35 = vpop.trf.xlu0 }
 0x39a   :  { %4149 = vmatmul.mubr.msk.f32.gmra.mrb[22].mxu0 %vm1266_vm13, %v1226_v35  ;;  %v1258_v8 = vpop.trf.xlu1  ;;  %v8188_v35 = vld [vmem:[#allocation37_spill] sm:$0xff] }
 0x39b   :  { %1485 = vmatprep.mubr.f32.mxu0 %v8159_v26  ;;  %v595_v56 = vsel %vm580_vm6, %v6190_v38, %v8188_v35 }
 0x39d   :  { %v1227_v39 = vpop.trf.xlu0 }
 0x39e   :  { %4150 = vmatmul.mubr.msk.f32.gmra.mrb[24].mxu0 %vm1266_vm13, %v1227_v39  ;;  %v1259_v1 = vpop.trf.xlu1  ;;  %v8190_v39 = vld [vmem:[#allocation34_spill] sm:$0xff] }
 0x39f   :  { %1491 = vmatprep.mubr.f32.mxu0 %v8159_v26 }
 0x3a1   :  { %v1228_v23 = vpop.trf.xlu0 }
 0x3a2   :  { %4151 = vmatmul.mubr.msk.f32.gmra.mrb[26].mxu0 %vm1266_vm13, %v1228_v23  ;;  %v8191_v23 = vld [vmem:[#allocation35_spill] sm:$0xff]  ;;  %v1260_v46 = vpop.trf.xlu1 }
 0x3a3   :  { %1497 = vmatprep.mubr.f32.mxu0 %v8159_v26 }
 0x3a5   :  { %v1229_v37 = vpop.trf.xlu0 }
 0x3a6   :  { %4152 = vmatmul.mubr.msk.f32.gmra.mrb[28].mxu0 %vm1266_vm13, %v1229_v37  ;;  %v628_v37 = vmul.f32 %v6259_v50, %v596_v25 }
 0x3a7   :  { %1503 = vmatprep.mubr.f32.mxu0 %v8159_v26 }
 0x3a9   :  { %v1230_v52 = vpop.trf.xlu0 }
 0x3aa   :  { %4153 = vmatmul.mubr.msk.f32.gmra.mrb[30].mxu0 %vm1266_vm13, %v1230_v52 }
 0x3ab   :  { %1509 = vmatprep.mubr.f32.mxu0 %v8159_v26 }
 0x3ad   :  { %v1231_v3 = vpop.trf.xlu0 }
 0x3ae   :  { %4154 = vmatmul.mubr.msk.f32.gmra.mrb[32].mxu0 %vm1266_vm13, %v1231_v3  ;;  %v675_v3 = vsel %vm661_vm7, %v6210_v33, %v5834_v13  ;;  %v674_v13 = vsel %vm661_vm7, %v6205_v63, %v8193_v34 }
 0x3af   :  { %1515 = vmatprep.mubr.f32.mxu0 %v8159_v26 }
 0x3b1   :  { %v1232_v12 = vpop.trf.xlu0 }
 0x3b2   :  { %4155 = vmatmul.mubr.msk.f32.gmra.mrb[34].mxu0 %vm1266_vm13, %v1232_v12  ;;  %v624_v12 = vmul.f32 %v6259_v50, %v595_v56 }
 0x3b3   :  { %1521 = vmatprep.mubr.f32.mxu0 %v8159_v26 }
 0x3b4   :  { %v4363_v25 = vpack.c.bf16 %v628_v37, %v624_v12  ;;  %v8197_v37 = vld [vmem:[#allocation43_spill] sm:$0xff] }
 0x3b5   :  { %v1233_v60 = vpop.trf.xlu0 }
 0x3b6   :  { %4156 = vmatmul.mubr.msk.f32.gmra.mrb[36].mxu0 %vm1266_vm13, %v1233_v60 }
 0x3b7   :  { %1527 = vmatprep.mubr.f32.mxu0 %v8159_v26 }
 0x3ba   :  { %4157 = vmatmul.mubr.msk.f32.gmra.mrb[38].mxu0 %vm1266_vm13, %v1250_v57 }
 0x3bb   :  { %1533 = vmatprep.mubr.f32.mxu0 %v8159_v26 }
 0x3be   :  { %4158 = vmatmul.mubr.msk.f32.gmra.mrb[40].mxu0 %vm1266_vm13, %v1251_v11  ;;  %v584_v11 = vsel %vm580_vm6, %v8191_v23, %v6200_v49 }
 0x3bf   :  { %1539 = vmatprep.mubr.f32.mxu0 %v8159_v26 }
 0x3c2   :  { %4159 = vmatmul.mubr.msk.f32.gmra.mrb[42].mxu0 %vm1266_vm13, %v1252_v47 }
 0x3c3   :  { %1545 = vmatprep.mubr.f32.mxu0 %v8159_v26 }
 0x3c6   :  { %4160 = vmatmul.mubr.msk.f32.gmra.mrb[44].mxu0 %vm1266_vm13, %v1253_v24  ;;  %v8192_v24 = vld [vmem:[#allocation36_spill] sm:$0xff] }
 0x3c7   :  { %1551 = vmatprep.mubr.f32.mxu0 %v8159_v26  ;;  %v583_v49 = vsel %vm580_vm6, %v8192_v24, %v6190_v38  ;;  %v663_v38 = vsel %vm661_vm7, %v8194_v21, %v6210_v33  ;;  %v8195_v33 = vld [vmem:[#allocation40_spill] sm:$0xff]  ;;  %v8198_v24 = vld [vmem:[#allocation38_spill] sm:$0xff] }
 0x3ca   :  { %4161 = vmatmul.mubr.msk.f32.gmra.mrb[46].mxu0 %vm1266_vm13, %v1254_v27 }
 0x3cb   :  { %1557 = vmatprep.mubr.f32.mxu0 %v8159_v26 }
 0x3ce   :  { %4162 = vmatmul.mubr.msk.f32.gmra.mrb[48].mxu0 %vm1266_vm13, %v1255_v10  ;;  %v627_v10 = vmul.f32 %v6255_v62, %v584_v11 }
 0x3cf   :  { %1563 = vmatprep.mubr.f32.mxu0 %v8159_v26 }
 0x3d0   :  { %v573_v51 = vpop.permute.xlu0 %572 }
 0x3d1   :  { %v581_v57 = vsel %vm580_vm6, %v8189_v6, %v573_v51  ;;  %v593_v4 = vsel %vm580_vm6, %v573_v51, %v8190_v39  ;;  %v677_v51 = vsel %vm661_vm7, %v6220_v14, %v5864_v31  ;;  %v676_v31 = vsel %vm661_vm7, %v6215_v36, %v5866_v15 }
 0x3d2   :  { %v615_v47 = vmul.f32 %v6255_v62, %v581_v57  ;;  %v616_v52 = vmul.f32 %v6259_v50, %v593_v4  ;;  %4163 = vmatmul.mubr.msk.f32.gmra.mrb[50].mxu0 %vm1266_vm13, %v1256_v55  ;;  %v4123_v55 = vld [vmem:[%s7976_s4 + $0x38] ss:$0 sm:$0xff]  ;;  %v8196_v57 = vld [vmem:[#allocation42_spill] sm:$0xff]  ;;  %v664_v15 = vsel %vm661_vm7, %v8197_v37, %v6215_v36 }
 0x3d3   :  { %1569 = vmatprep.mubr.f32.mxu0 %v8159_v26  ;;  %v701_v40 = vmul.f32 %v4123_v55, %v675_v3  ;;  %v697_v35 = vmul.f32 %v4123_v55, %v674_v13  ;;  %v665_v39 = vsel %vm661_vm7, %v8196_v57, %v6220_v14  ;;  %v709_v4 = vmul.f32 %v4123_v55, %v677_v51 }
 0x3d4   :  { %v4359_v27 = vpack.c.bf16 %v620_v41, %v616_v52  ;;  %v4361_v60 = vpack.c.bf16 %v619_v20, %v615_v47  ;;  %v623_v20 = vmul.f32 %v6255_v62, %v583_v49  ;;  %v4122_v41 = vld [vmem:[%s7976_s4 + $0x30] ss:$0 sm:$0xff]  ;;  %v705_v47 = vmul.f32 %v4123_v55, %v676_v31 }
 0x3d5   :  { %v700_v56 = vmul.f32 %v4122_v41, %v663_v38  ;;  %v4367_v23 = vpack.c.bf16 %v701_v40, %v697_v35  ;;  %v708_v3 = vmul.f32 %v4122_v41, %v665_v39 }
 0x3d6   :  { %4360 = vmatprep.subr.bf16.mxu1 %v4359_v27  ;;  %4164 = vmatmul.mubr.msk.f32.gmra.mrb[52].mxu0 %vm1266_vm13, %v1257_v59  ;;  %v662_v59 = vsel %vm661_vm7, %v8195_v33, %v6205_v63  ;;  %v4365_v6 = vpack.c.bf16 %v627_v10, %v623_v20  ;;  %v1261_v63 = vpop.trf.xlu1  ;;  %v4371_v14 = vpack.c.bf16 %v709_v4, %v705_v47 }
 0x3d7   :  { %4362 = vmatpush1.bf16.msra.mxu1 %v4361_v60  ;;  %1575 = vmatprep.mubr.f32.mxu0 %v8159_v26  ;;  %v696_v11 = vmul.f32 %v4122_v41, %v662_v59 }
 0x3d8   :  { %4364 = vmatprep.subr.bf16.mxu1 %v4363_v25 }
 0x3d9   :  { %v4369_v52 = vpack.c.bf16 %v700_v56, %v696_v11 }
 0x3da   :  { %4165 = vmatmul.mubr.msk.f32.gmra.mrb[54].mxu0 %vm1266_vm13, %v1258_v8  ;;  %v704_v8 = vmul.f32 %v4122_v41, %v664_v15  ;;  %v1262_v12 = vpop.trf.xlu1 }
 0x3db   :  { %4366 = vmatpush1.bf16.msra.mxu1 %v4365_v6  ;;  %1581 = vmatprep.mubr.f32.mxu0 %v8159_v26 }
 0x3dc   :  { %4368 = vmatprep.subr.bf16.mxu1 %v4367_v23  ;;  %v4373_v49 = vpack.c.bf16 %v708_v3, %v704_v8 }
 0x3de   :  { %928 = vmatmul.mubr.f32.vlgmr.msra.gmra.mrb[0].mxu1 %v8198_v24  ;;  %4166 = vmatmul.mubr.msk.f32.gmra.mrb[56].mxu0 %vm1266_vm13, %v1259_v1  ;;  %v1263_v36 = vpop.trf.xlu1 }
 0x3df   :  { %4370 = vmatpush1.bf16.msra.mxu1 %v4369_v52  ;;  %998 = vmatprep.mubr.f32.mxu1 %v8159_v26 }
 0x3e0   :  { %4372 = vmatprep.subr.bf16.mxu1 %v4371_v14  ;;  %1587 = vmatprep.mubr.f32.mxu0 %v8159_v26 }
 0x3e2   :  { %4167 = vmatmul.mubr.msk.f32.gmra.mrb[58].mxu0 %vm1266_vm13, %v1260_v46  ;;  %v1264_v1 = vpop.trf.xlu1 }
 0x3e3   :  { %4374 = vmatpush1.bf16.msra.mxu1 %v4373_v49  ;;  %1593 = vmatprep.mubr.f32.mxu0 %v8159_v26 }
 0x3e4   :  { %4127 = vmatprep.subr.msk.mxu1 %vm717_vm8, %v8021_v17 }
 0x3e6   :  { %4168 = vmatmul.mubr.msk.f32.gmra.mrb[60].mxu0 %vm1266_vm13, %v1261_v63  ;;  %v1265_v27 = vpop.trf.xlu1 }
 0x3e7   :  { %4128 = vmatpush1.msk.msra.mxu1 %vm717_vm8, %v8021_v17  ;;  %1599 = vmatprep.mubr.f32.mxu0 %v8159_v26 }
 0x3e8   :  { %4129 = vmatmul.mubr.msk.f32.vlgmr.msra.gmra.mrb[0].mxu1 %vm713_vm9, %v5903_v32 }
 0x3e9   :  { %1181 = vmatprep.mubr.f32.mxu1 %v8159_v26 }
 0x3ea   :  { %4169 = vmatmul.mubr.msk.f32.gmra.mrb[62].mxu0 %vm1266_vm13, %v1262_v12 }
 0x3eb   :  { %1605 = vmatprep.mubr.f32.mxu0 %v8159_v26 }
 0x3ee   :  { %4170 = vmatmul.mubr.msk.f32.gmra.mrb[64].mxu0 %vm1266_vm13, %v1263_v36 }
 0x3ef   :  { %1611 = vmatprep.mubr.f32.mxu0 %v8159_v26 }
 0x3f2   :  { %4171 = vmatmul.mubr.msk.f32.gmra.mrb[66].mxu0 %vm1266_vm13, %v1264_v1 }
 0x3f3   :  { %1617 = vmatprep.mubr.f32.mxu0 %v8159_v26 }
 0x3f6   :  { %4172 = vmatmul.mubr.msk.f32.gmra.mrb[68].mxu0 %vm1266_vm13, %v1265_v27 }
 0x3f7   :  { %2366 = vmatprep.mubr.f32.mxu0 %v8159_v26 }
 0x44d   :  { %v6368_v32 = vpop.f32.mrb[6].mxu0 }
 0x44e   :  { %v6370_v60 = vpop.f32.mrb[7].mxu0 }
 0x44f   :  { %v1624_v10 = vmax.f32 %v6368_v32, %v6370_v60 }
 0x451   :  { %1625 = vmax.xlane.f32.xlu1 %v1624_v10  ;;  %v6374_v55 = vpop.f32.mrb[8].mxu0 }
 0x452   :  { %v6376_v34 = vpop.f32.mrb[9].mxu0 }
 0x453   :  { %v1627_v13 = vmax.f32 %v6374_v55, %v6376_v34 }
 0x455   :  { %1628 = vmax.xlane.f32.xlu0 %v1627_v13  ;;  %v6380_v46 = vpop.f32.mrb[10].mxu0 }
 0x456   :  { %v6382_v21 = vpop.f32.mrb[11].mxu0 }
 0x457   :  { %v1630_v38 = vmax.f32 %v6380_v46, %v6382_v21 }
 0x459   :  { %1631 = vmax.xlane.f32.xlu0 %v1630_v38  ;;  %v6386_v40 = vpop.f32.mrb[12].mxu0 }
 0x45a   :  { %v6388_v25 = vpop.f32.mrb[13].mxu0 }
 0x45b   :  { %v1633_v20 = vmax.f32 %v6386_v40, %v6388_v25 }
 0x45d   :  { %1634 = vmax.xlane.f32.xlu0 %v1633_v20  ;;  %v6392_v51 = vpop.f32.mrb[14].mxu0 }
 0x45e   :  { %v6394_v41 = vpop.f32.mrb[15].mxu0 }
 0x45f   :  { %v1636_v33 = vmax.f32 %v6392_v51, %v6394_v41 }
 0x461   :  { %1637 = vmax.xlane.f32.xlu0 %v1636_v33  ;;  %v6398_v59 = vpop.f32.mrb[16].mxu0 }
 0x462   :  { %v6400_v35 = vpop.f32.mrb[17].mxu0 }
 0x463   :  { %v1639_v56 = vmax.f32 %v6398_v59, %v6400_v35 }
 0x465   :  { %1640 = vmax.xlane.f32.xlu0 %v1639_v56  ;;  %v6404_v31 = vpop.f32.mrb[18].mxu0 }
 0x466   :  { %v6406_v6 = vpop.f32.mrb[19].mxu0 }
 0x467   :  { %v1642_v57 = vmax.f32 %v6404_v31, %v6406_v6 }
 0x469   :  { %1643 = vmax.xlane.f32.xlu0 %v1642_v57  ;;  %v6410_v39 = vpop.f32.mrb[20].mxu0 }
 0x46a   :  { %v6412_v4 = vpop.f32.mrb[21].mxu0 }
 0x46b   :  { %v1645_v23 = vmax.f32 %v6410_v39, %v6412_v4 }
 0x46d   :  { %1646 = vmax.xlane.f32.xlu0 %v1645_v23  ;;  %v6416_v11 = vpop.f32.mrb[22].mxu0 }
 0x46e   :  { %v6418_v63 = vpop.f32.mrb[23].mxu0 }
 0x46f   :  { %v1648_v37 = vmax.f32 %v6416_v11, %v6418_v63 }
 0x471   :  { %1649 = vmax.xlane.f32.xlu0 %v1648_v37  ;;  %v6422_v15 = vpop.f32.mrb[24].mxu0 }
 0x472   :  { %v6424_v47 = vpop.f32.mrb[25].mxu0 }
 0x473   :  { %v1651_v52 = vmax.f32 %v6422_v15, %v6424_v47 }
 0x475   :  { %1652 = vmax.xlane.f32.xlu0 %v1651_v52  ;;  %v6428_v3 = vpop.f32.mrb[26].mxu0 }
 0x476   :  { %v6430_v24 = vpop.f32.mrb[27].mxu0 }
 0x477   :  { %v1654_v14 = vmax.f32 %v6428_v3, %v6430_v24 }
 0x479   :  { %1655 = vmax.xlane.f32.xlu0 %v1654_v14  ;;  %v6434_v8 = vpop.f32.mrb[28].mxu0 }
 0x47a   :  { %v6436_v49 = vpop.f32.mrb[29].mxu0 }
 0x47b   :  { %v1657_v12 = vmax.f32 %v6434_v8, %v6436_v49 }
 0x47d   :  { %1658 = vmax.xlane.f32.xlu0 %v1657_v12  ;;  %v6440_v36 = vpop.f32.mrb[30].mxu0 }
 0x47e   :  { %v6442_v1 = vpop.f32.mrb[31].mxu0 }
 0x47f   :  { %v1660_v27 = vmax.f32 %v6440_v36, %v6442_v1 }
 0x481   :  { %1661 = vmax.xlane.f32.xlu1 %v1660_v27  ;;  %v6446_v10 = vpop.f32.mrb[32].mxu0 }
 0x482   :  { %v6448_v13 = vpop.f32.mrb[33].mxu0 }
 0x483   :  { %v1663_v38 = vmax.f32 %v6446_v10, %v6448_v13 }
 0x485   :  { %1664 = vmax.xlane.f32.xlu0 %v1663_v38  ;;  %v6452_v20 = vpop.f32.mrb[34].mxu0 }
 0x486   :  { %v6454_v33 = vpop.f32.mrb[35].mxu0 }
 0x487   :  { %v1666_v56 = vmax.f32 %v6452_v20, %v6454_v33 }
 0x489   :  { %1667 = vmax.xlane.f32.xlu1 %v1666_v56  ;;  %v6458_v57 = vpop.f32.mrb[36].mxu0 }
 0x48a   :  { %v6460_v23 = vpop.f32.mrb[37].mxu0 }
 0x48b   :  { %v1669_v37 = vmax.f32 %v6458_v57, %v6460_v23 }
 0x48d   :  { %1670 = vmax.xlane.f32.xlu0 %v1669_v37  ;;  %v6464_v52 = vpop.f32.mrb[38].mxu0 }
 0x48e   :  { %v6466_v14 = vpop.f32.mrb[39].mxu0 }
 0x48f   :  { %v1672_v12 = vmax.f32 %v6464_v52, %v6466_v14 }
 0x491   :  { %1673 = vmax.xlane.f32.xlu1 %v1672_v12  ;;  %v6470_v27 = vpop.f32.mrb[40].mxu0 }
 0x492   :  { %v6472_v38 = vpop.f32.mrb[41].mxu0 }
 0x493   :  { %8199 = vst [vmem:[#allocation29_spill] sm:$0xff] %v6472_v38  ;;  %v1675_v56 = vmax.f32 %v6470_v27, %v6472_v38 }
 0x495   :  { %1676 = vmax.xlane.f32.xlu0 %v1675_v56  ;;  %v6476_v17 = vpop.f32.mrb[42].mxu0 }
 0x496   :  { %8200 = vst [vmem:[#allocation31_spill] sm:$0xff] %v6476_v17  ;;  %v6478_v42 = vpop.f32.mrb[43].mxu0 }
 0x497   :  { %8201 = vst [vmem:[#allocation37_spill] sm:$0xff] %v6478_v42  ;;  %v1678_v37 = vmax.f32 %v6476_v17, %v6478_v42 }
 0x499   :  { %1679 = vmax.xlane.f32.xlu1 %v1678_v37  ;;  %v6482_v62 = vpop.f32.mrb[44].mxu0 }
 0x49a   :  { %8202 = vst [vmem:[#allocation32_spill] sm:$0xff] %v6482_v62  ;;  %v6484_v53 = vpop.f32.mrb[45].mxu0 }
 0x49b   :  { %8203 = vst [vmem:[#allocation34_spill] sm:$0xff] %v6484_v53  ;;  %v1681_v12 = vmax.f32 %v6482_v62, %v6484_v53 }
 0x49d   :  { %1682 = vmax.xlane.f32.xlu0 %v1681_v12  ;;  %v6488_v9 = vpop.f32.mrb[46].mxu0 }
 0x49e   :  { %8204 = vst [vmem:[#allocation35_spill] sm:$0xff] %v6488_v9  ;;  %v6490_v50 = vpop.f32.mrb[47].mxu0 }
 0x49f   :  { %8205 = vst [vmem:[#allocation36_spill] sm:$0xff] %v6490_v50  ;;  %v1684_v56 = vmax.f32 %v6488_v9, %v6490_v50 }
 0x4a1   :  { %1685 = vmax.xlane.f32.xlu1 %v1684_v56  ;;  %v6494_v28 = vpop.f32.mrb[48].mxu0 }
 0x4a2   :  { %8206 = vst [vmem:[#allocation41_spill] sm:$0xff] %v6494_v28  ;;  %v6496_v61 = vpop.f32.mrb[49].mxu0 }
 0x4a3   :  { %8207 = vst [vmem:[#allocation39_spill] sm:$0xff] %v6496_v61  ;;  %v1687_v37 = vmax.f32 %v6494_v28, %v6496_v61 }
 0x4a5   :  { %1688 = vmax.xlane.f32.xlu0 %v1687_v37  ;;  %v6500_v30 = vpop.f32.mrb[50].mxu0 }
 0x4a6   :  { %8208 = vst [vmem:[#allocation40_spill] sm:$0xff] %v6500_v30  ;;  %v6502_v45 = vpop.f32.mrb[51].mxu0 }
 0x4a7   :  { %8209 = vst [vmem:[#allocation42_spill] sm:$0xff] %v6502_v45  ;;  %v1690_v12 = vmax.f32 %v6500_v30, %v6502_v45 }
 0x4a9   :  { %1691 = vmax.xlane.f32.xlu1 %v1690_v12  ;;  %v6506_v43 = vpop.f32.mrb[52].mxu0 }
 0x4aa   :  { %8210 = vst [vmem:[#allocation43_spill] sm:$0xff] %v6506_v43  ;;  %v6508_v16 = vpop.f32.mrb[53].mxu0 }
 0x4ab   :  { %8211 = vst [vmem:[#allocation38_spill] sm:$0xff] %v6508_v16  ;;  %v1693_v56 = vmax.f32 %v6506_v43, %v6508_v16 }
 0x4ad   :  { %1694 = vmax.xlane.f32.xlu0 %v1693_v56  ;;  %v6512_v7 = vpop.f32.mrb[54].mxu0 }
 0x4ae   :  { %v6514_v22 = vpop.f32.mrb[55].mxu0 }
 0x4b1   :  { %v6518_v5 = vpop.f32.mrb[56].mxu0 }
 0x4b2   :  { %v6520_v18 = vpop.f32.mrb[57].mxu0 }
 0x4b5   :  { %v6524_v29 = vpop.f32.mrb[58].mxu0 }
 0x4b6   :  { %v6526_v44 = vpop.f32.mrb[59].mxu0 }
 0x4b9   :  { %v6530_v58 = vpop.f32.mrb[60].mxu0 }
 0x4ba   :  { %v6532_v0 = vpop.f32.mrb[61].mxu0 }
 0x4bb   :  { %v1000_v48 = vpop.f32.mrb[0].mxu1 }
 0x4bc   :  { %v6536_v16 = vmax.f32 %v1000_v48, 0.0  ;;  %v1002_v43 = vpop.f32.mrb[1].mxu1 }
 0x4bd   :  { %v6538_v45 = vmax.f32 %v1002_v43, 0.0  ;;  %v6540_v12 = vpop.f32.mrb[62].mxu0 }
 0x4be   :  { %8212 = vst [vmem:[#allocation52_spill] sm:$0xff] %v6536_v16  ;;  %v1018_v30 = vsel %vm1015_vm10, %v6536_v16, 1.0  ;;  %v6544_v61 = vpop.f32.mrb[63].mxu0 }
 0x4bf   :  { %8213 = vst [vmem:[#allocation53_spill] sm:$0xff] %v6538_v45  ;;  %v1019_v56 = vsel %vm1015_vm10, %v6538_v45, 1.0 }
 0x4c0   :  { %4134 = vmatprep.subr.msk.mxu1 %vm1027_vm11, %v1019_v56 }
 0x4c1   :  { %4135 = vmatpush1.msk.msra.mxu1 %vm1027_vm11, %v1018_v30  ;;  %v6552_v48 = vpop.f32.mrb[64].mxu0 }
 0x4c2   :  { %4136 = vmatmul.mubr.msk.f32.vlgmr.msra.gmra.mrb[2].mxu1 %vm1020_vm12, %v6162_v54  ;;  %v6556_v43 = vpop.f32.mrb[65].mxu0 }
 0x4c3   :  { %1187 = vmatprep.mubr.f32.mxu1 %v8159_v26 }
 0x4c5   :  { %v6561_v16 = vpop.f32.mrb[66].mxu0 }
 0x4c6   :  { %4137 = vmatmul.mubr.msk.f32.gmra.mrb[4].mxu1 %vm1020_vm12, %v6174_v2  ;;  %v6565_v56 = vpop.f32.mrb[67].mxu0 }
 0x4c7   :  { %2168 = vmatprep.mubr.f32.mxu1 %v6239_v19 }
 0x4c9   :  { %v6570_v54 = vpop.f32.mrb[68].mxu0 }
 0x4ca   :  { %v6572_v28 = vpop.f32.mrb[69].mxu0 }
 0x4de   :  { %v1626_v37 = vpop.xlane.xlu1 %1625 }
 0x4df   :  { %v1720_v45 = vsub.f32 %v6368_v32, %v1626_v37  ;;  %v1721_v50 = vsub.f32 %v6370_v60, %v1626_v37 }
 0x4e1   :  { %v1784_v2 = vmul.f32 1.442695, %v1720_v45  ;;  %v1786_v9 = vmul.f32 1.442695, %v1721_v50 }
 0x4e2   :  { %v1629_v53 = vpop.xlane.xlu0 %1628 }
 0x4e3   :  { %4563 = vpow2.f32 %v1784_v2  ;;  %v1722_v19 = vsub.f32 %v6374_v55, %v1629_v53  ;;  %v1723_v30 = vsub.f32 %v6376_v34, %v1629_v53 }
 0x4e4   :  { %4565 = vpow2.f32 %v1786_v9 }
 0x4e5   :  { %v1788_v62 = vmul.f32 1.442695, %v1722_v19  ;;  %v1790_v42 = vmul.f32 1.442695, %v1723_v30 }
 0x4e6   :  { %v1632_v17 = vpop.xlane.xlu0 %1631 }
 0x4e7   :  { %4567 = vpow2.f32 %v1788_v62  ;;  %v1724_v26 = vsub.f32 %v6380_v46, %v1632_v17  ;;  %v1725_v38 = vsub.f32 %v6382_v21, %v1632_v17 }
 0x4e8   :  { %4569 = vpow2.f32 %v1790_v42 }
 0x4e9   :  { %v1792_v32 = vmul.f32 1.442695, %v1724_v26  ;;  %v1794_v60 = vmul.f32 1.442695, %v1725_v38 }
 0x4ea   :  { %v1635_v45 = vpop.xlane.xlu0 %1634 }
 0x4eb   :  { %4571 = vpow2.f32 %v1792_v32  ;;  %v1726_v50 = vsub.f32 %v6386_v40, %v1635_v45  ;;  %v1727_v55 = vsub.f32 %v6388_v25, %v1635_v45 }
 0x4ec   :  { %4573 = vpow2.f32 %v1794_v60  ;;  %v8214_v60 = vmax.f32 %v6512_v7, %v6514_v22 }
 0x4ed   :  { %v6584_v53 = vpop.eup %4563  ;;  %v1796_v9 = vmul.f32 1.442695, %v1726_v50  ;;  %v1798_v34 = vmul.f32 1.442695, %v1727_v55 }
 0x4ee   :  { %v6586_v37 = vpop.eup %4565  ;;  %v1638_v62 = vpop.xlane.xlu0 %1637 }
 0x4ef   :  { %4575 = vpow2.f32 %v1796_v9  ;;  %v1728_v17 = vsub.f32 %v6392_v51, %v1638_v62  ;;  %v1729_v26 = vsub.f32 %v6394_v41, %v1638_v62  ;;  %v1912_v42 = vadd.f32 %v6586_v37, %v6584_v53 }
 0x4f0   :  { %4577 = vpow2.f32 %v1798_v34 }
 0x4f1   :  { %v6592_v46 = vpop.eup %4567  ;;  %v1800_v21 = vmul.f32 1.442695, %v1728_v17  ;;  %v1802_v40 = vmul.f32 1.442695, %v1729_v26  ;;  %1913 = vadd.xlane.f32.xlu1 %v1912_v42  ;;  %v8215_v17 = vmax.f32 %v6518_v5, %v6520_v18 }
 0x4f2   :  { %v6594_v25 = vpop.eup %4569  ;;  %v1641_v38 = vpop.xlane.xlu0 %1640 }
 0x4f3   :  { %4579 = vpow2.f32 %v1800_v21  ;;  %v1730_v30 = vsub.f32 %v6398_v59, %v1641_v38  ;;  %v1731_v2 = vsub.f32 %v6400_v35, %v1641_v38  ;;  %v1915_v51 = vadd.f32 %v6594_v25, %v6592_v46 }
 0x4f4   :  { %4581 = vpow2.f32 %v1802_v40 }
 0x4f5   :  { %v6600_v41 = vpop.eup %4571  ;;  %v1804_v19 = vmul.f32 1.442695, %v1730_v30  ;;  %v1806_v32 = vmul.f32 1.442695, %v1731_v2  ;;  %1916 = vadd.xlane.f32.xlu0 %v1915_v51  ;;  %1697 = vmax.xlane.f32.xlu1 %v8214_v60  ;;  %v8216_v2 = vmax.f32 %v6524_v29, %v6526_v44 }
 0x4f6   :  { %v6605_v45 = vpop.eup %4573  ;;  %v1644_v50 = vpop.xlane.xlu0 %1643 }
 0x4f7   :  { %4583 = vpow2.f32 %v1804_v19  ;;  %v1732_v59 = vsub.f32 %v6404_v31, %v1644_v50  ;;  %v1733_v35 = vsub.f32 %v6406_v6, %v1644_v50  ;;  %v1918_v55 = vadd.f32 %v6605_v45, %v6600_v41 }
 0x4f8   :  { %4585 = vpow2.f32 %v1806_v32 }
 0x4f9   :  { %v6611_v9 = vpop.eup %4575  ;;  %v1808_v34 = vmul.f32 1.442695, %v1732_v59  ;;  %v1810_v62 = vmul.f32 1.442695, %v1733_v35  ;;  %1919 = vadd.xlane.f32.xlu1 %v1918_v55  ;;  %1700 = vmax.xlane.f32.xlu0 %v8215_v17  ;;  %v8217_v35 = vmax.f32 %v6530_v58, %v6532_v0 }
 0x4fa   :  { %v6616_v26 = vpop.eup %4577  ;;  %v1647_v42 = vpop.xlane.xlu0 %1646 }
 0x4fb   :  { %4587 = vpow2.f32 %v1808_v34  ;;  %v1734_v31 = vsub.f32 %v6410_v39, %v1647_v42  ;;  %v1735_v6 = vsub.f32 %v6412_v4, %v1647_v42  ;;  %v1921_v21 = vadd.f32 %v6616_v26, %v6611_v9 }
 0x4fc   :  { %4589 = vpow2.f32 %v1810_v62 }
 0x4fd   :  { %v6622_v40 = vpop.eup %4579  ;;  %v1812_v38 = vmul.f32 1.442695, %v1734_v31  ;;  %v1814_v30 = vmul.f32 1.442695, %v1735_v6  ;;  %1922 = vadd.xlane.f32.xlu0 %v1921_v21  ;;  %1703 = vmax.xlane.f32.xlu1 %v8216_v2  ;;  %v8218_v6 = vmax.f32 %v6540_v12, %v6544_v61 }
 0x4fe   :  { %v6627_v51 = vpop.eup %4581  ;;  %v1650_v19 = vpop.xlane.xlu0 %1649 }
 0x4ff   :  { %4591 = vpow2.f32 %v1812_v38  ;;  %v1736_v39 = vsub.f32 %v6416_v11, %v1650_v19  ;;  %v1737_v4 = vsub.f32 %v6418_v63, %v1650_v19  ;;  %v1924_v32 = vadd.f32 %v6627_v51, %v6622_v40 }
 0x500   :  { %4593 = vpow2.f32 %v1814_v30 }
 0x501   :  { %v6633_v60 = vpop.eup %4583  ;;  %v1816_v50 = vmul.f32 1.442695, %v1736_v39  ;;  %v1818_v59 = vmul.f32 1.442695, %v1737_v4  ;;  %1925 = vadd.xlane.f32.xlu1 %v1924_v32  ;;  %1706 = vmax.xlane.f32.xlu0 %v8217_v35  ;;  %v8219_v4 = vmax.f32 %v6552_v48, %v6556_v43 }
 0x502   :  { %v6638_v55 = vpop.eup %4585  ;;  %v1653_v34 = vpop.xlane.xlu0 %1652 }
 0x503   :  { %4595 = vpow2.f32 %v1816_v50  ;;  %v1738_v11 = vsub.f32 %v6422_v15, %v1653_v34  ;;  %v1739_v63 = vsub.f32 %v6424_v47, %v1653_v34  ;;  %v1927_v62 = vadd.f32 %v6638_v55, %v6633_v60 }
 0x504   :  { %4597 = vpow2.f32 %v1818_v59 }
 0x505   :  { %v6644_v17 = vpop.eup %4587  ;;  %v1820_v42 = vmul.f32 1.442695, %v1738_v11  ;;  %v1822_v31 = vmul.f32 1.442695, %v1739_v63  ;;  %1928 = vadd.xlane.f32.xlu0 %v1927_v62  ;;  %1709 = vmax.xlane.f32.xlu1 %v8218_v6  ;;  %v8220_v63 = vmax.f32 %v6561_v16, %v6565_v56 }
 0x506   :  { %v6649_v21 = vpop.eup %4589  ;;  %v1656_v38 = vpop.xlane.xlu0 %1655 }
 0x507   :  { %4599 = vpow2.f32 %v1820_v42  ;;  %v1740_v15 = vsub.f32 %v6428_v3, %v1656_v38  ;;  %v1741_v47 = vsub.f32 %v6430_v24, %v1656_v38  ;;  %v1930_v30 = vadd.f32 %v6649_v21, %v6644_v17 }
 0x508   :  { %4601 = vpow2.f32 %v1822_v31 }
 0x509   :  { %v6655_v2 = vpop.eup %4591  ;;  %v1824_v19 = vmul.f32 1.442695, %v1740_v15  ;;  %v1826_v39 = vmul.f32 1.442695, %v1741_v47  ;;  %1931 = vadd.xlane.f32.xlu1 %v1930_v30  ;;  %1712 = vmax.xlane.f32.xlu0 %v8219_v4  ;;  %v8221_v47 = vmax.f32 %v6570_v54, %v6572_v28 }
 0x50a   :  { %v6660_v32 = vpop.eup %4593  ;;  %v1659_v50 = vpop.xlane.xlu0 %1658 }
 0x50b   :  { %4603 = vpow2.f32 %v1824_v19  ;;  %v1742_v3 = vsub.f32 %v6434_v8, %v1659_v50  ;;  %v1743_v24 = vsub.f32 %v6436_v49, %v1659_v50  ;;  %v1933_v59 = vadd.f32 %v6660_v32, %v6655_v2 }
 0x50c   :  { %4605 = vpow2.f32 %v1826_v39 }
 0x50d   :  { %v6666_v35 = vpop.eup %4595  ;;  %v1828_v34 = vmul.f32 1.442695, %v1742_v3  ;;  %v1830_v11 = vmul.f32 1.442695, %v1743_v24  ;;  %1934 = vadd.xlane.f32.xlu0 %v1933_v59  ;;  %1715 = vmax.xlane.f32.xlu1 %v8220_v63 }
 0x50e   :  { %v6671_v62 = vpop.eup %4597  ;;  %v1662_v42 = vpop.xlane.xlu1 %1661 }
 0x50f   :  { %4607 = vpow2.f32 %v1828_v34  ;;  %v1744_v8 = vsub.f32 %v6440_v36, %v1662_v42  ;;  %v1745_v49 = vsub.f32 %v6442_v1, %v1662_v42  ;;  %v1936_v31 = vadd.f32 %v6671_v62, %v6666_v35 }
 0x510   :  { %4609 = vpow2.f32 %v1830_v11 }
 0x511   :  { %v6677_v6 = vpop.eup %4599  ;;  %v1832_v38 = vmul.f32 1.442695, %v1744_v8  ;;  %v1834_v15 = vmul.f32 1.442695, %v1745_v49  ;;  %1937 = vadd.xlane.f32.xlu1 %v1936_v31  ;;  %1718 = vmax.xlane.f32.xlu0 %v8221_v47 }
 0x512   :  { %v6682_v30 = vpop.eup %4601  ;;  %v1665_v19 = vpop.xlane.xlu0 %1664 }
 0x513   :  { %4611 = vpow2.f32 %v1832_v38  ;;  %v1746_v36 = vsub.f32 %v6446_v10, %v1665_v19  ;;  %v1747_v1 = vsub.f32 %v6448_v13, %v1665_v19  ;;  %v1939_v39 = vadd.f32 %v6682_v30, %v6677_v6 }
 0x514   :  { %4613 = vpow2.f32 %v1834_v15 }
 0x515   :  { %v6688_v4 = vpop.eup %4603  ;;  %v1836_v50 = vmul.f32 1.442695, %v1746_v36  ;;  %v1838_v3 = vmul.f32 1.442695, %v1747_v1  ;;  %1940 = vadd.xlane.f32.xlu0 %v1939_v39 }
 0x516   :  { %v6690_v24 = vpop.eup %4605  ;;  %v1668_v59 = vpop.xlane.xlu1 %1667 }
 0x517   :  { %4615 = vpow2.f32 %v1836_v50  ;;  %v1748_v34 = vsub.f32 %v6452_v20, %v1668_v59  ;;  %v1749_v11 = vsub.f32 %v6454_v33, %v1668_v59  ;;  %v1942_v10 = vadd.f32 %v6690_v24, %v6688_v4 }
 0x518   :  { %4617 = vpow2.f32 %v1838_v3 }
 0x519   :  { %v6696_v13 = vpop.eup %4607  ;;  %v1840_v63 = vmul.f32 1.442695, %v1748_v34  ;;  %v1842_v42 = vmul.f32 1.442695, %v1749_v11  ;;  %1943 = vadd.xlane.f32.xlu1 %v1942_v10  ;;  %v8222_v10 = vld [vmem:[#allocation29_spill] sm:$0xff] }
 0x51a   :  { %v6698_v8 = vpop.eup %4609  ;;  %v1671_v49 = vpop.xlane.xlu0 %1670 }
 0x51b   :  { %4619 = vpow2.f32 %v1840_v63  ;;  %v1750_v31 = vsub.f32 %v6458_v57, %v1671_v49  ;;  %v1751_v38 = vsub.f32 %v6460_v23, %v1671_v49  ;;  %v1945_v20 = vadd.f32 %v6698_v8, %v6696_v13 }
 0x51c   :  { %4621 = vpow2.f32 %v1842_v42 }
 0x51d   :  { %v6704_v33 = vpop.eup %4611  ;;  %v1844_v15 = vmul.f32 1.442695, %v1750_v31  ;;  %v1846_v47 = vmul.f32 1.442695, %v1751_v38  ;;  %1946 = vadd.xlane.f32.xlu0 %v1945_v20  ;;  %v8224_v20 = vld [vmem:[#allocation31_spill] sm:$0xff] }
 0x51e   :  { %v6706_v19 = vpop.eup %4613  ;;  %v1674_v36 = vpop.xlane.xlu1 %1673 }
 0x51f   :  { %4623 = vpow2.f32 %v1844_v15  ;;  %v1752_v1 = vsub.f32 %v6464_v52, %v1674_v36  ;;  %v1753_v39 = vsub.f32 %v6466_v14, %v1674_v36  ;;  %v1948_v57 = vadd.f32 %v6706_v19, %v6704_v33 }
 0x520   :  { %4625 = vpow2.f32 %v1846_v47  ;;  %v8225_v47 = vld [vmem:[#allocation37_spill] sm:$0xff] }
 0x521   :  { %v6712_v23 = vpop.eup %4615  ;;  %v1848_v50 = vmul.f32 1.442695, %v1752_v1  ;;  %v1850_v3 = vmul.f32 1.442695, %v1753_v39  ;;  %1949 = vadd.xlane.f32.xlu1 %v1948_v57 }
 0x522   :  { %v6714_v59 = vpop.eup %4617  ;;  %v1677_v34 = vpop.xlane.xlu0 %1676 }
 0x523   :  { %4627 = vpow2.f32 %v1848_v50  ;;  %v1754_v11 = vsub.f32 %v6470_v27, %v1677_v34  ;;  %v1755_v63 = vsub.f32 %v8222_v10, %v1677_v34  ;;  %v1951_v52 = vadd.f32 %v6714_v59, %v6712_v23  ;;  %v8227_v34 = vld [vmem:[#allocation32_spill] sm:$0xff]  ;;  %v8228_v10 = vld [vmem:[#allocation34_spill] sm:$0xff] }
 0x524   :  { %4629 = vpow2.f32 %v1850_v3 }
 0x525   :  { %v6720_v14 = vpop.eup %4619  ;;  %v1852_v42 = vmul.f32 1.442695, %v1754_v11  ;;  %v1854_v49 = vmul.f32 1.442695, %v1755_v63  ;;  %1952 = vadd.xlane.f32.xlu0 %v1951_v52 }
 0x526   :  { %8223 = vst [vmem:[#allocation29_spill] sm:$0xff] %v6720_v14  ;;  %v6722_v31 = vpop.eup %4621  ;;  %v1680_v38 = vpop.xlane.xlu1 %1679 }
 0x527   :  { %4631 = vpow2.f32 %v1852_v42  ;;  %v1756_v15 = vsub.f32 %v8224_v20, %v1680_v38  ;;  %v1757_v36 = vsub.f32 %v8225_v47, %v1680_v38  ;;  %v1954_v27 = vadd.f32 %v6722_v31, %v6720_v14  ;;  %v8231_v47 = vld [vmem:[#allocation35_spill] sm:$0xff] }
 0x528   :  { %4633 = vpow2.f32 %v1854_v49 }
 0x529   :  { %v6728_v1 = vpop.eup %4623  ;;  %v1856_v39 = vmul.f32 1.442695, %v1756_v15  ;;  %v1858_v57 = vmul.f32 1.442695, %v1757_v36  ;;  %1955 = vadd.xlane.f32.xlu1 %v1954_v27  ;;  %v8232_v27 = vld [vmem:[#allocation36_spill] sm:$0xff] }
 0x52a   :  { %8226 = vst [vmem:[#allocation31_spill] sm:$0xff] %v6728_v1  ;;  %v6730_v50 = vpop.eup %4625  ;;  %v1683_v3 = vpop.xlane.xlu0 %1682 }
 0x52b   :  { %4635 = vpow2.f32 %v1856_v39  ;;  %v1758_v11 = vsub.f32 %v8227_v34, %v1683_v3  ;;  %v1759_v63 = vsub.f32 %v8228_v10, %v1683_v3  ;;  %v1957_v52 = vadd.f32 %v6730_v50, %v6728_v1 }
 0x52c   :  { %4637 = vpow2.f32 %v1858_v57 }
 0x52d   :  { %v6736_v42 = vpop.eup %4627  ;;  %v1860_v49 = vmul.f32 1.442695, %v1758_v11  ;;  %v1862_v38 = vmul.f32 1.442695, %v1759_v63  ;;  %1958 = vadd.xlane.f32.xlu0 %v1957_v52  ;;  %v8235_v52 = vld [vmem:[#allocation41_spill] sm:$0xff] }
 0x52e   :  { %8229 = vst [vmem:[#allocation37_spill] sm:$0xff] %v6736_v42  ;;  %v6738_v20 = vpop.eup %4629  ;;  %v1686_v15 = vpop.xlane.xlu1 %1685 }
 0x52f   :  { %8230 = vst [vmem:[#allocation32_spill] sm:$0xff] %v6738_v20  ;;  %4639 = vpow2.f32 %v1860_v49  ;;  %v1760_v36 = vsub.f32 %v8231_v47, %v1686_v15  ;;  %v1761_v39 = vsub.f32 %v8232_v27, %v1686_v15  ;;  %v1960_v3 = vadd.f32 %v6738_v20, %v6736_v42  ;;  %v8236_v49 = vld [vmem:[#allocation39_spill] sm:$0xff] }
 0x530   :  { %4641 = vpow2.f32 %v1862_v38 }
 0x531   :  { %v6744_v34 = vpop.eup %4631  ;;  %v1864_v57 = vmul.f32 1.442695, %v1760_v36  ;;  %v1866_v10 = vmul.f32 1.442695, %v1761_v39  ;;  %1961 = vadd.xlane.f32.xlu1 %v1960_v3  ;;  %v8237_v3 = vld [vmem:[#allocation40_spill] sm:$0xff] }
 0x532   :  { %8233 = vst [vmem:[#allocation34_spill] sm:$0xff] %v6744_v34  ;;  %v6746_v11 = vpop.eup %4633  ;;  %v1689_v63 = vpop.xlane.xlu0 %1688 }
 0x533   :  { %8234 = vst [vmem:[#allocation35_spill] sm:$0xff] %v6746_v11  ;;  %4643 = vpow2.f32 %v1864_v57  ;;  %v1762_v14 = vsub.f32 %v8235_v52, %v1689_v63  ;;  %v1763_v1 = vsub.f32 %v8236_v49, %v1689_v63  ;;  %v1963_v15 = vadd.f32 %v6746_v11, %v6744_v34  ;;  %v8238_v57 = vld [vmem:[#allocation42_spill] sm:$0xff] }
 0x534   :  { %4645 = vpow2.f32 %v1866_v10 }
 0x535   :  { %v6752_v47 = vpop.eup %4635  ;;  %v1868_v38 = vmul.f32 1.442695, %v1762_v14  ;;  %v1870_v27 = vmul.f32 1.442695, %v1763_v1  ;;  %1964 = vadd.xlane.f32.xlu0 %v1963_v15  ;;  %v8239_v15 = vld [vmem:[#allocation43_spill] sm:$0xff] }
 0x536   :  { %v6754_v36 = vpop.eup %4637  ;;  %v1692_v39 = vpop.xlane.xlu1 %1691 }
 0x537   :  { %4647 = vpow2.f32 %v1868_v38  ;;  %v1764_v42 = vsub.f32 %v8237_v3, %v1692_v39  ;;  %v1765_v20 = vsub.f32 %v8238_v57, %v1692_v39  ;;  %v1966_v63 = vadd.f32 %v6754_v36, %v6752_v47  ;;  %v8240_v38 = vld [vmem:[#allocation38_spill] sm:$0xff] }
 0x538   :  { %4649 = vpow2.f32 %v1870_v27 }
 0x539   :  { %v6760_v52 = vpop.eup %4639  ;;  %v1872_v10 = vmul.f32 1.442695, %v1764_v42  ;;  %v1874_v49 = vmul.f32 1.442695, %v1765_v20  ;;  %1967 = vadd.xlane.f32.xlu1 %v1966_v63 }
 0x53a   :  { %v6762_v14 = vpop.eup %4641  ;;  %v1695_v1 = vpop.xlane.xlu0 %1694 }
 0x53b   :  { %4651 = vpow2.f32 %v1872_v10  ;;  %v1766_v34 = vsub.f32 %v8239_v15, %v1695_v1  ;;  %v1767_v11 = vsub.f32 %v8240_v38, %v1695_v1  ;;  %v1969_v39 = vadd.f32 %v6762_v14, %v6760_v52 }
 0x53c   :  { %4653 = vpow2.f32 %v1874_v49 }
 0x53d   :  { %v6768_v3 = vpop.eup %4643  ;;  %v1876_v27 = vmul.f32 1.442695, %v1766_v34  ;;  %v1878_v57 = vmul.f32 1.442695, %v1767_v11  ;;  %1970 = vadd.xlane.f32.xlu0 %v1969_v39 }
 0x53e   :  { %8241 = vst [vmem:[#allocation36_spill] sm:$0xff] %v6768_v3  ;;  %v6770_v42 = vpop.eup %4645 }
 0x53f   :  { %8242 = vst [vmem:[#allocation41_spill] sm:$0xff] %v6770_v42  ;;  %4655 = vpow2.f32 %v1876_v27  ;;  %v1972_v20 = vadd.f32 %v6770_v42, %v6768_v3 }
 0x540   :  { %4657 = vpow2.f32 %v1878_v57 }
 0x541   :  { %v6774_v63 = vpop.eup %4647  ;;  %1973 = vadd.xlane.f32.xlu1 %v1972_v20 }
 0x542   :  { %8243 = vst [vmem:[#allocation39_spill] sm:$0xff] %v6774_v63  ;;  %v6776_v10 = vpop.eup %4649 }
 0x543   :  { %8244 = vst [vmem:[#allocation40_spill] sm:$0xff] %v6776_v10  ;;  %v1975_v49 = vadd.f32 %v6776_v10, %v6774_v63 }
 0x545   :  { %v6780_v1 = vpop.eup %4651  ;;  %1976 = vadd.xlane.f32.xlu0 %v1975_v49 }
 0x546   :  { %8245 = vst [vmem:[#allocation42_spill] sm:$0xff] %v6780_v1  ;;  %v6782_v34 = vpop.eup %4653 }
 0x547   :  { %8246 = vst [vmem:[#allocation43_spill] sm:$0xff] %v6782_v34  ;;  %v1978_v11 = vadd.f32 %v6782_v34, %v6780_v1 }
 0x549   :  { %v6786_v15 = vpop.eup %4655  ;;  %1979 = vadd.xlane.f32.xlu1 %v1978_v11 }
 0x54a   :  { %8247 = vst [vmem:[#allocation38_spill] sm:$0xff] %v6786_v15  ;;  %v6788_v38 = vpop.eup %4657 }
 0x54b   :  { %8248 = vst [vmem:[#allocation54_spill] sm:$0xff] %v6788_v38  ;;  %v1981_v39 = vadd.f32 %v6788_v38, %v6786_v15 }
 0x54d   :  { %1982 = vadd.xlane.f32.xlu0 %v1981_v39 }
 0x57e   :  { %v1914_v27 = vpop.xlane.xlu1 %1913 }
 0x57f   :  { %4659 = vrcp.f32 %v1914_v27 }
 0x582   :  { %v1917_v57 = vpop.xlane.xlu0 %1916  ;;  %v1698_v20 = vpop.xlane.xlu1 %1697 }
 0x583   :  { %4661 = vrcp.f32 %v1917_v57  ;;  %v1768_v49 = vsub.f32 %v6512_v7, %v1698_v20  ;;  %v1769_v3 = vsub.f32 %v6514_v22, %v1698_v20 }
 0x585   :  { %v1880_v63 = vmul.f32 1.442695, %v1768_v49  ;;  %v1882_v1 = vmul.f32 1.442695, %v1769_v3 }
 0x586   :  { %v1920_v34 = vpop.xlane.xlu1 %1919  ;;  %v1701_v10 = vpop.xlane.xlu0 %1700 }
 0x587   :  { %4663 = vpow2.f32 %v1880_v63  ;;  %v1770_v11 = vsub.f32 %v6518_v5, %v1701_v10  ;;  %v1771_v42 = vsub.f32 %v6520_v18, %v1701_v10 }
 0x588   :  { %4665 = vpow2.f32 %v1882_v1 }
 0x589   :  { %4667 = vrcp.f32 %v1920_v34  ;;  %v1884_v39 = vmul.f32 1.442695, %v1770_v11  ;;  %v1886_v27 = vmul.f32 1.442695, %v1771_v42  ;;  %v4660_v57 = vpop.eup %4659 }
 0x58a   :  { %v1923_v15 = vpop.xlane.xlu0 %1922  ;;  %v1704_v38 = vpop.xlane.xlu1 %1703  ;;  %v2041_v18 = vmul.f32 %v4660_v57, %v6586_v37  ;;  %v2040_v42 = vmul.f32 %v4660_v57, %v6584_v53 }
 0x58b   :  { %4669 = vpow2.f32 %v1884_v39  ;;  %v1772_v7 = vsub.f32 %v6524_v29, %v1704_v38  ;;  %v1773_v22 = vsub.f32 %v6526_v44, %v1704_v38 }
 0x58c   :  { %4671 = vpow2.f32 %v1886_v27 }
 0x58d   :  { %v4662_v3 = vpop.eup %4661  ;;  %4673 = vrcp.f32 %v1923_v15  ;;  %v1888_v63 = vmul.f32 1.442695, %v1772_v7  ;;  %v1890_v20 = vmul.f32 1.442695, %v1773_v22 }
 0x58e   :  { %v1926_v5 = vpop.xlane.xlu1 %1925  ;;  %v1707_v49 = vpop.xlane.xlu0 %1706  ;;  %v2043_v10 = vmul.f32 %v4662_v3, %v6594_v25  ;;  %v2042_v1 = vmul.f32 %v4662_v3, %v6592_v46 }
 0x58f   :  { %4675 = vpow2.f32 %v1888_v63  ;;  %v1774_v29 = vsub.f32 %v6530_v58, %v1707_v49  ;;  %v1775_v44 = vsub.f32 %v6532_v0, %v1707_v49 }
 0x590   :  { %4677 = vpow2.f32 %v1890_v20  ;;  %v4375_v34 = vpack.c.bf16 %v2043_v10, %v2041_v18  ;;  %v4377_v15 = vpack.c.bf16 %v2042_v1, %v2040_v42 }
 0x591   :  { %v6804_v38 = vpop.eup %4663  ;;  %4679 = vrcp.f32 %v1926_v5  ;;  %v1892_v11 = vmul.f32 1.442695, %v1774_v29  ;;  %v1894_v39 = vmul.f32 1.442695, %v1775_v44 }
 0x592   :  { %v6806_v37 = vpop.eup %4665  ;;  %4376 = vmatprep.subr.bf16.mxu1 %v4375_v34  ;;  %v1929_v25 = vpop.xlane.xlu0 %1928 }
 0x593   :  { %v1710_v53 = vpop.xlane.xlu1 %1709  ;;  %v4668_v27 = vpop.eup %4667  ;;  %4681 = vpow2.f32 %v1892_v11  ;;  %4378 = vmatpush1.bf16.xpose.msra.mxu1 %v4377_v15  ;;  %v1984_v0 = vadd.f32 %v6806_v37, %v6804_v38 }
 0x594   :  { %v1776_v46 = vsub.f32 %v6540_v12, %v1710_v53  ;;  %v1777_v58 = vsub.f32 %v6544_v61, %v1710_v53  ;;  %4683 = vpow2.f32 %v1894_v39  ;;  %v2045_v12 = vmul.f32 %v4668_v27, %v6605_v45 }
 0x595   :  { %v6812_v57 = vpop.eup %4669  ;;  %4685 = vrcp.f32 %v1929_v25  ;;  %1985 = vadd.xlane.f32.xlu1 %v1984_v0  ;;  %v6814_v3 = vpop.f32.mrb[2].mxu1  ;;  %v2044_v29 = vmul.f32 %v4668_v27, %v6600_v41 }
 0x596   :  { %v1896_v7 = vmul.f32 1.442695, %v1776_v46  ;;  %v1898_v22 = vmul.f32 1.442695, %v1777_v58  ;;  %v6816_v63 = vpop.eup %4671  ;;  %v1713_v5 = vpop.xlane.xlu0 %1712 }
 0x597   :  { %v1932_v20 = vpop.xlane.xlu1 %1931  ;;  %v4674_v61 = vpop.eup %4673  ;;  %v1778_v49 = vsub.f32 %v6552_v48, %v1713_v5  ;;  %v1779_v18 = vsub.f32 %v6556_v43, %v1713_v5  ;;  %v1987_v10 = vadd.f32 %v6816_v63, %v6812_v57 }
 0x598   :  { %4687 = vpow2.f32 %v1896_v7  ;;  %v6823_v42 = vpop.f32.mrb[3].mxu1  ;;  %v2047_v1 = vmul.f32 %v4674_v61, %v6616_v26  ;;  %v2046_v44 = vmul.f32 %v4674_v61, %v6611_v9 }
 0x599   :  { %4689 = vpow2.f32 %v1898_v22  ;;  %v6828_v34 = vpop.eup %4675  ;;  %v1900_v45 = vmul.f32 1.442695, %v1778_v49  ;;  %v1902_v15 = vmul.f32 1.442695, %v1779_v18  ;;  %1988 = vadd.xlane.f32.xlu0 %v1987_v10 }
 0x59a   :  { %v6830_v48 = vpop.eup %4677  ;;  %4691 = vrcp.f32 %v1932_v20  ;;  %v4379_v43 = vpack.c.bf16 %v2047_v1, %v2045_v12  ;;  %v1935_v11 = vpop.xlane.xlu0 %1934  ;;  %v4381_v25 = vpack.c.bf16 %v2046_v44, %v2044_v29 }
 0x59b   :  { %v1716_v39 = vpop.xlane.xlu1 %1715  ;;  %v4680_v53 = vpop.eup %4679  ;;  %4693 = vpow2.f32 %v1900_v45  ;;  %v1990_v9 = vadd.f32 %v6830_v48, %v6828_v34 }
 0x59c   :  { %v1780_v26 = vsub.f32 %v6561_v16, %v1716_v39  ;;  %v1781_v41 = vsub.f32 %v6565_v56, %v1716_v39  ;;  %4695 = vpow2.f32 %v1902_v15  ;;  %4380 = vmatprep.subr.bf16.mxu1 %v4379_v43  ;;  %v2049_v22 = vmul.f32 %v4680_v53, %v6627_v51 }
 0x59d   :  { %v6836_v27 = vpop.eup %4681  ;;  %4697 = vrcp.f32 %v1935_v11  ;;  %4382 = vmatpush1.bf16.xpose.msra.mxu1 %v4381_v25  ;;  %1991 = vadd.xlane.f32.xlu1 %v1990_v9  ;;  %v2048_v49 = vmul.f32 %v4680_v53, %v6622_v40 }
 0x59e   :  { %v1904_v46 = vmul.f32 1.442695, %v1780_v26  ;;  %v1906_v58 = vmul.f32 1.442695, %v1781_v41  ;;  %v6838_v0 = vpop.eup %4683  ;;  %v1719_v7 = vpop.xlane.xlu0 %1718 }
 0x59f   :  { %v4686_v16 = vpop.eup %4685  ;;  %v1938_v56 = vpop.xlane.xlu1 %1937  ;;  %v1782_v20 = vsub.f32 %v6570_v54, %v1719_v7  ;;  %v1783_v5 = vsub.f32 %v6572_v28, %v1719_v7  ;;  %v1993_v12 = vadd.f32 %v6838_v0, %v6836_v27 }
 0x5a0   :  { %4699 = vpow2.f32 %v1904_v46  ;;  %v2051_v61 = vmul.f32 %v4686_v16, %v6638_v55  ;;  %v2050_v18 = vmul.f32 %v4686_v16, %v6633_v60 }
 0x5a1   :  { %4701 = vpow2.f32 %v1906_v58  ;;  %v1908_v51 = vmul.f32 1.442695, %v1782_v20  ;;  %v1910_v1 = vmul.f32 1.442695, %v1783_v5  ;;  %1994 = vadd.xlane.f32.xlu0 %v1993_v12 }
 0x5a2   :  { %v6848_v10 = vpop.eup %4687  ;;  %4703 = vrcp.f32 %v1938_v56  ;;  %v4383_v54 = vpack.c.bf16 %v2051_v61, %v2049_v22  ;;  %v1941_v28 = vpop.xlane.xlu0 %1940  ;;  %v4385_v44 = vpack.c.bf16 %v2050_v18, %v2048_v49 }
 0x5a3   :  { %v6850_v29 = vpop.eup %4689  ;;  %4705 = vpow2.f32 %v1908_v51 }
 0x5a4   :  { %v1996_v45 = vadd.f32 %v6850_v29, %v6848_v10  ;;  %v4692_v55 = vpop.eup %4691  ;;  %4707 = vpow2.f32 %v1910_v1  ;;  %4384 = vmatprep.subr.bf16.mxu1 %v4383_v54 }
 0x5a5   :  { %v6854_v40 = vpop.eup %4693  ;;  %4709 = vrcp.f32 %v1941_v28  ;;  %4386 = vmatpush1.bf16.xpose.msra.mxu1 %v4385_v44  ;;  %v2053_v39 = vmul.f32 %v4692_v55, %v6649_v21  ;;  %v2052_v53 = vmul.f32 %v4692_v55, %v6644_v17 }
 0x5a6   :  { %1997 = vadd.xlane.f32.xlu1 %v1996_v45  ;;  %v6856_v60 = vpop.eup %4695  ;;  %v1944_v15 = vpop.xlane.xlu1 %1943 }
 0x5a7   :  { %v4698_v43 = vpop.eup %4697  ;;  %v1999_v11 = vadd.f32 %v6856_v60, %v6854_v40  ;;  %4711 = vrcp.f32 %v1944_v15 }
 0x5a8   :  { %v2055_v25 = vmul.f32 %v4698_v43, %v6660_v32  ;;  %v2054_v26 = vmul.f32 %v4698_v43, %v6655_v2 }
 0x5a9   :  { %2000 = vadd.xlane.f32.xlu0 %v1999_v11 }
 0x5aa   :  { %v6864_v41 = vpop.eup %4699  ;;  %v4387_v46 = vpack.c.bf16 %v2055_v25, %v2053_v39  ;;  %v1947_v58 = vpop.xlane.xlu0 %1946  ;;  %v4389_v7 = vpack.c.bf16 %v2054_v26, %v2052_v53 }
 0x5ab   :  { %v6866_v9 = vpop.eup %4701  ;;  %4713 = vrcp.f32 %v1947_v58 }
 0x5ac   :  { %v2002_v22 = vadd.f32 %v6866_v9, %v6864_v41  ;;  %v4704_v21 = vpop.eup %4703  ;;  %4388 = vmatprep.subr.bf16.mxu1 %v4387_v46 }
 0x5ad   :  { %v6870_v32 = vpop.eup %4705  ;;  %4390 = vmatpush1.bf16.xpose.msra.mxu1 %v4389_v7  ;;  %v2057_v20 = vmul.f32 %v4704_v21, %v6671_v62  ;;  %v2056_v12 = vmul.f32 %v4704_v21, %v6666_v35  ;;  %v8250_v21 = vld [vmem:[#allocation29_spill] sm:$0xff] }
 0x5ae   :  { %2003 = vadd.xlane.f32.xlu1 %v2002_v22  ;;  %v6872_v17 = vpop.eup %4707  ;;  %v1950_v2 = vpop.xlane.xlu1 %1949  ;;  %v8249_v22 = vld [vmem:[#allocation31_spill] sm:$0xff] }
 0x5af   :  { %v4710_v16 = vpop.eup %4709  ;;  %v2005_v56 = vadd.f32 %v6872_v17, %v6870_v32  ;;  %4715 = vrcp.f32 %v1950_v2 }
 0x5b0   :  { %v2059_v5 = vmul.f32 %v4710_v16, %v6682_v30  ;;  %v2058_v61 = vmul.f32 %v4710_v16, %v6677_v6 }
 0x5b1   :  { %2006 = vadd.xlane.f32.xlu0 %v2005_v56  ;;  %v4712_v1 = vpop.eup %4711 }
 0x5b2   :  { %v4391_v49 = vpack.c.bf16 %v2059_v5, %v2057_v20  ;;  %v1953_v18 = vpop.xlane.xlu0 %1952  ;;  %v4393_v51 = vpack.c.bf16 %v2058_v61, %v2056_v12  ;;  %v2061_v44 = vmul.f32 %v4712_v1, %v6690_v24  ;;  %v2060_v35 = vmul.f32 %v4712_v1, %v6688_v4  ;;  %v8251_v12 = vld [vmem:[#allocation32_spill] sm:$0xff] }
 0x5b3   :  { %4717 = vrcp.f32 %v1953_v18  ;;  %v8253_v18 = vld [vmem:[#allocation34_spill] sm:$0xff] }
 0x5b4   :  { %4392 = vmatprep.subr.bf16.mxu1 %v4391_v49  ;;  %v8252_v49 = vld [vmem:[#allocation35_spill] sm:$0xff] }
 0x5b5   :  { %v4714_v54 = vpop.eup %4713  ;;  %4394 = vmatpush1.bf16.xpose.msra.mxu1 %v4393_v51  ;;  %v8254_v51 = vld [vmem:[#allocation37_spill] sm:$0xff] }
 0x5b6   :  { %v1956_v28 = vpop.xlane.xlu1 %1955  ;;  %v2063_v62 = vmul.f32 %v4714_v54, %v6698_v8  ;;  %v2062_v30 = vmul.f32 %v4714_v54, %v6696_v13 }
 0x5b7   :  { %4719 = vrcp.f32 %v1956_v28 }
 0x5b8   :  { %v4395_v6 = vpack.c.bf16 %v2063_v62, %v2061_v44  ;;  %v4397_v45 = vpack.c.bf16 %v2062_v30, %v2060_v35 }
 0x5b9   :  { %v4716_v15 = vpop.eup %4715 }
 0x5ba   :  { %4396 = vmatprep.subr.bf16.mxu1 %v4395_v6  ;;  %v1959_v55 = vpop.xlane.xlu0 %1958  ;;  %v2065_v39 = vmul.f32 %v4716_v15, %v6706_v19  ;;  %v2064_v13 = vmul.f32 %v4716_v15, %v6704_v33 }
 0x5bb   :  { %4721 = vrcp.f32 %v1959_v55 }
 0x5bd   :  { %v4718_v43 = vpop.eup %4717  ;;  %4398 = vmatpush1.bf16.xpose.msra.mxu1 %v4397_v45 }
 0x5be   :  { %v1962_v11 = vpop.xlane.xlu1 %1961  ;;  %v2067_v24 = vmul.f32 %v4718_v43, %v6714_v59  ;;  %v2066_v8 = vmul.f32 %v4718_v43, %v6712_v23 }
 0x5bf   :  { %4723 = vrcp.f32 %v1962_v11 }
 0x5c0   :  { %v4399_v25 = vpack.c.bf16 %v2067_v24, %v2065_v39  ;;  %v4401_v4 = vpack.c.bf16 %v2066_v8, %v2064_v13  ;;  %v2376_v24 = vrot.slane %v6823_v42, 4  ;;  %v2375_v13 = vrot.slane %v6814_v3, 4 }
 0x5c1   :  { %v4720_v26 = vpop.eup %4719 }
 0x5c2   :  { %4400 = vmatprep.subr.bf16.mxu1 %v4399_v25  ;;  %v1965_v53 = vpop.xlane.xlu0 %1964  ;;  %v2069_v7 = vmul.f32 %v4720_v26, %v6722_v31  ;;  %v2068_v23 = vmul.f32 %v4720_v26, %v8250_v21  ;;  %v8258_v26 = vld [vmem:[#allocation36_spill] sm:$0xff] }
 0x5c3   :  { %4725 = vrcp.f32 %v1965_v53  ;;  %v8257_v53 = vld [vmem:[#allocation39_spill] sm:$0xff] }
 0x5c5   :  { %v4722_v46 = vpop.eup %4721  ;;  %4402 = vmatpush1.bf16.xpose.msra.mxu1 %v4401_v4  ;;  %v8256_v4 = vld [vmem:[#allocation40_spill] sm:$0xff] }
 0x5c6   :  { %v1968_v58 = vpop.xlane.xlu1 %1967  ;;  %v2071_v19 = vmul.f32 %v4722_v46, %v6730_v50  ;;  %v2070_v59 = vmul.f32 %v4722_v46, %v8249_v22 }
 0x5c7   :  { %4727 = vrcp.f32 %v1968_v58 }
 0x5c8   :  { %v4403_v2 = vpack.c.bf16 %v2071_v19, %v2069_v7  ;;  %v4405_v33 = vpack.c.bf16 %v2070_v59, %v2068_v23  ;;  %v8259_v59 = vld [vmem:[#allocation43_spill] sm:$0xff]  ;;  %v8260_v23 = vld [vmem:[#allocation54_spill] sm:$0xff] }
 0x5c9   :  { %v4724_v56 = vpop.eup %4723 }
 0x5ca   :  { %4404 = vmatprep.subr.bf16.mxu1 %v4403_v2  ;;  %v1971_v16 = vpop.xlane.xlu0 %1970  ;;  %v2073_v61 = vmul.f32 %v4724_v56, %v8251_v12  ;;  %v2072_v1 = vmul.f32 %v4724_v56, %v8254_v51  ;;  %v8262_v56 = vld [vmem:[#allocation42_spill] sm:$0xff] }
 0x5cb   :  { %4729 = vrcp.f32 %v1971_v16 }
 0x5cd   :  { %v4726_v20 = vpop.eup %4725  ;;  %4406 = vmatpush1.bf16.xpose.msra.mxu1 %v4405_v33  ;;  %v8261_v33 = vld [vmem:[#allocation38_spill] sm:$0xff] }
 0x5ce   :  { %v1974_v5 = vpop.xlane.xlu1 %1973  ;;  %v2075_v31 = vmul.f32 %v4726_v20, %v8252_v49  ;;  %v2074_v50 = vmul.f32 %v4726_v20, %v8253_v18 }
 0x5cf   :  { %4731 = vrcp.f32 %v1974_v5 }
 0x5d0   :  { %v4407_v54 = vpack.c.bf16 %v2075_v31, %v2073_v61  ;;  %v4409_v28 = vpack.c.bf16 %v2074_v50, %v2072_v1 }
 0x5d1   :  { %v4728_v62 = vpop.eup %4727 }
 0x5d2   :  { %4408 = vmatprep.subr.bf16.mxu1 %v4407_v54  ;;  %v1977_v44 = vpop.xlane.xlu0 %1976  ;;  %v2077_v6 = vmul.f32 %v4728_v62, %v6754_v36  ;;  %v2076_v15 = vmul.f32 %v4728_v62, %v6752_v47  ;;  %v8255_v36 = vld [vmem:[#allocation41_spill] sm:$0xff] }
 0x5d3   :  { %4733 = vrcp.f32 %v1977_v44 }
 0x5d5   :  { %v4730_v30 = vpop.eup %4729  ;;  %4410 = vmatpush1.bf16.xpose.msra.mxu1 %v4409_v28 }
 0x5d6   :  { %v1980_v35 = vpop.xlane.xlu1 %1979  ;;  %v2079_v45 = vmul.f32 %v4730_v30, %v6762_v14  ;;  %v2078_v55 = vmul.f32 %v4730_v30, %v6760_v52 }
 0x5d7   :  { %4735 = vrcp.f32 %v1980_v35 }
 0x5d8   :  { %v4411_v43 = vpack.c.bf16 %v2079_v45, %v2077_v6  ;;  %v4413_v11 = vpack.c.bf16 %v2078_v55, %v2076_v15 }
 0x5d9   :  { %v4732_v8 = vpop.eup %4731 }
 0x5da   :  { %4412 = vmatprep.subr.bf16.mxu1 %v4411_v43  ;;  %v1983_v39 = vpop.xlane.xlu0 %1982  ;;  %v2081_v14 = vmul.f32 %v4732_v8, %v8255_v36  ;;  %v2080_v46 = vmul.f32 %v4732_v8, %v8258_v26  ;;  %v8265_v26 = vld [vmem:[#allocation23_spill] sm:$0xff] }
 0x5db   :  { %4737 = vrcp.f32 %v1983_v39 }
 0x5dd   :  { %v4734_v25 = vpop.eup %4733  ;;  %4414 = vmatpush1.bf16.xpose.msra.mxu1 %v4413_v11 }
 0x5de   :  { %2411 = vxpose.xlu0.b32.start.end [1/1] (short) %v2376_v24, 128  ;;  %v2083_v52 = vmul.f32 %v4734_v25, %v8256_v4  ;;  %v2082_v47 = vmul.f32 %v4734_v25, %v8257_v53 }
 0x5e0   :  { %v4415_v58 = vpack.c.bf16 %v2083_v52, %v2081_v14  ;;  %v4417_v7 = vpack.c.bf16 %v2082_v47, %v2080_v46 }
 0x5e1   :  { %2379 = vxpose.xlu1.b32.start.end [1/1] (short) %v2375_v13, 128  ;;  %v4736_v19 = vpop.eup %4735 }
 0x5e2   :  { %4416 = vmatprep.subr.bf16.mxu1 %v4415_v58  ;;  %v2085_v21 = vmul.f32 %v4736_v19, %v8259_v59  ;;  %v2084_v20 = vmul.f32 %v4736_v19, %v8262_v56 }
 0x5e5   :  { %v4738_v22 = vpop.eup %4737  ;;  %4418 = vmatpush1.bf16.xpose.msra.mxu1 %v4417_v7  ;;  %v6944_v7 = vpop.f32.mrb[4].mxu1 }
 0x5e6   :  { %v2087_v2 = vmul.f32 %v4738_v22, %v8260_v23  ;;  %v2086_v16 = vmul.f32 %v4738_v22, %v8261_v33  ;;  %8271 = vst [vmem:[#allocation32_spill] sm:$0xff] %v6944_v7 }
 0x5e8   :  { %v4419_v5 = vpack.c.bf16 %v2087_v2, %v2085_v21  ;;  %v4421_v12 = vpack.c.bf16 %v2086_v16, %v2084_v20 }
 0x5ea   :  { %4420 = vmatprep.subr.bf16.mxu1 %v4419_v5 }
 0x5ed   :  { %4422 = vmatpush1.bf16.xpose.msra.mxu1 %v4421_v12 }
 0x622   :  { %v1986_v61 = vpop.xlane.xlu1 %1985 }
 0x623   :  { %4739 = vrcp.f32 %v1986_v61 }
 0x626   :  { %v1989_v49 = vpop.xlane.xlu0 %1988 }
 0x627   :  { %4741 = vrcp.f32 %v1989_v49 }
 0x62a   :  { %v1992_v31 = vpop.xlane.xlu1 %1991 }
 0x62b   :  { %4743 = vrcp.f32 %v1992_v31 }
 0x62d   :  { %v4740_v50 = vpop.eup %4739 }
 0x62e   :  { %v1995_v18 = vpop.xlane.xlu0 %1994  ;;  %v2089_v54 = vmul.f32 %v4740_v50, %v6806_v37  ;;  %v2088_v44 = vmul.f32 %v4740_v50, %v6804_v38 }
 0x62f   :  { %4745 = vrcp.f32 %v1995_v18 }
 0x631   :  { %v4742_v51 = vpop.eup %4741 }
 0x632   :  { %v2091_v28 = vmul.f32 %v4742_v51, %v6816_v63  ;;  %v2090_v62 = vmul.f32 %v4742_v51, %v6812_v57 }
 0x633   :  { %v1998_v1 = vpop.xlane.xlu1 %1997 }
 0x634   :  { %v4423_v30 = vpack.c.bf16 %v2091_v28, %v2089_v54  ;;  %v4425_v35 = vpack.c.bf16 %v2090_v62, %v2088_v44  ;;  %4747 = vrcp.f32 %v1998_v1 }
 0x635   :  { %v4744_v45 = vpop.eup %4743 }
 0x636   :  { %4424 = vmatprep.subr.bf16.mxu1 %v4423_v30  ;;  %v2001_v6 = vpop.xlane.xlu0 %2000  ;;  %v2093_v43 = vmul.f32 %v4744_v45, %v6830_v48  ;;  %v2092_v63 = vmul.f32 %v4744_v45, %v6828_v34 }
 0x637   :  { %4749 = vrcp.f32 %v2001_v6  ;;  %4426 = vmatpush1.bf16.xpose.msra.mxu1 %v4425_v35 }
 0x639   :  { %v4746_v55 = vpop.eup %4745 }
 0x63a   :  { %v2095_v37 = vmul.f32 %v4746_v55, %v6838_v0  ;;  %v2094_v38 = vmul.f32 %v4746_v55, %v6836_v27 }
 0x63b   :  { %v2004_v15 = vpop.xlane.xlu1 %2003 }
 0x63c   :  { %v4427_v11 = vpack.c.bf16 %v2095_v37, %v2093_v43  ;;  %v4429_v57 = vpack.c.bf16 %v2094_v38, %v2092_v63  ;;  %4751 = vrcp.f32 %v2004_v15 }
 0x63e   :  { %4428 = vmatprep.subr.bf16.mxu1 %v4427_v11  ;;  %v2007_v39 = vpop.xlane.xlu0 %2006  ;;  %v4748_v24 = vpop.eup %4747 }
 0x63f   :  { %4753 = vrcp.f32 %v2007_v39  ;;  %4430 = vmatpush1.bf16.xpose.msra.mxu1 %v4429_v57  ;;  %v2097_v13 = vmul.f32 %v4748_v24, %v6850_v29  ;;  %v2096_v48 = vmul.f32 %v4748_v24, %v6848_v10  ;;  %v8263_v10 = vld [vmem:[#allocation24_spill] sm:$0xff] }
 0x641   :  { %v4750_v8 = vpop.eup %4749 }
 0x642   :  { %v2099_v25 = vmul.f32 %v4750_v8, %v6856_v60  ;;  %v2098_v0 = vmul.f32 %v4750_v8, %v6854_v40  ;;  %v8264_v40 = vld [vmem:[#allocation27_spill] sm:$0xff] }
 0x644   :  { %v4431_v34 = vpack.c.bf16 %v2099_v25, %v2097_v13  ;;  %v4433_v36 = vpack.c.bf16 %v2098_v0, %v2096_v48 }
 0x646   :  { %4432 = vmatprep.subr.bf16.mxu1 %v4431_v34  ;;  %v4752_v27 = vpop.eup %4751 }
 0x647   :  { %4434 = vmatpush1.bf16.xpose.msra.mxu1 %v4433_v36  ;;  %v2101_v4 = vmul.f32 %v4752_v27, %v6866_v9  ;;  %v2100_v53 = vmul.f32 %v4752_v27, %v6864_v41  ;;  %v8266_v9 = vld [vmem:[#allocation53_spill] sm:$0xff]  ;;  %v8268_v41 = vmov 0.0  }
 0x649   :  { %v4754_v14 = vpop.eup %4753 }
 0x64a   :  { %v2103_v52 = vmul.f32 %v4754_v14, %v6872_v17  ;;  %v2102_v29 = vmul.f32 %v4754_v14, %v6870_v32  ;;  %v6933_v17 = vrot.slane %v8266_v9, 4  ;;  %v8269_v32 = vld [vmem:[#allocation52_spill] sm:$0xff] }
 0x64b   :  { %v6941_v46 = vrot.slane %v8269_v32, 4 }
 0x64c   :  { %v4435_v47 = vpack.c.bf16 %v2103_v52, %v2101_v4  ;;  %v4437_v60 = vpack.c.bf16 %v2102_v29, %v2100_v53  ;;  %8267 = vst [vmem:[#allocation31_spill] sm:$0xff] %v6933_v17 }
 0x64d   :  { %8270 = vst [vmem:[#allocation29_spill] sm:$0xff] %v6941_v46 }
 0x64e   :  { %4436 = vmatprep.subr.bf16.mxu1 %v4435_v47 }
 0x64f   :  { %4438 = vmatpush1.bf16.xpose.msra.mxu1 %v4437_v60 }
 0x650   :  { %2181 = vmatprep.subr.mxu1 %v8263_v10 }
 0x656   :  { %2169 = vmatmul.mubr.f32.vlgmr.msra.gmra.mrb[6].mxu1 %v8264_v40 }
 0x657   :  { %2182 = vmatpush1.xpose.msra.mxu1 %v8265_v26  ;;  %2245 = vmatprep.mubr.f32.mxu1 %v8263_v10 }
 0x658   :  { %4176 = vmatprep.subr.msk.mxu1 %vm1015_vm10, %v6823_v42  ;;  %v6948_v42 = vpop.f32.mrb[5].mxu1 }
 0x659   :  { %8272 = vst [vmem:[#allocation35_spill] sm:$0xff] %v6948_v42 }
 0x65a   :  { %2246 = vmatmul.mubr.f32.vlgmr.msra.gmra.mrb[8].mxu1 %v8265_v26 }
 0x65b   :  { %4177 = vmatpush1.msk.msra.mxu1 %vm1015_vm10, %v6814_v3  ;;  %2607 = vmatprep.mubr.f32.mxu1 %v8268_v41 }
 0x65c   :  { %3357 = vmatprep.subr.mxu1 %v6933_v17 }
 0x65e   :  { %v2427_v16 = vpop.trf.xlu0 }
 0x661   :  { %v2395_v58 = vpop.trf.xlu1 }
 0x662   :  { %4178 = vmatmul.mubr.msk.f32.vlgmr.msra.gmra.mrb[10].mxu1 %vm1266_vm13, %v2395_v58  ;;  %v2428_v20 = vpop.trf.xlu0 }
 0x663   :  { %3358 = vmatpush1.xpose.msra.mxu1 %v6941_v46  ;;  %2613 = vmatprep.mubr.f32.mxu1 %v8268_v41 }
 0x665   :  { %v2396_v19 = vpop.trf.xlu1 }
 0x666   :  { %4179 = vmatmul.mubr.msk.f32.gmra.mrb[12].mxu1 %vm1266_vm13, %v2396_v19  ;;  %v2429_v61 = vpop.trf.xlu0 }
 0x667   :  { %2619 = vmatprep.mubr.f32.mxu1 %v8268_v41 }
 0x669   :  { %v2397_v3 = vpop.trf.xlu1 }
 0x66a   :  { %4180 = vmatmul.mubr.msk.f32.gmra.mrb[14].mxu1 %vm1266_vm13, %v2397_v3  ;;  %v2430_v31 = vpop.trf.xlu0 }
 0x66b   :  { %2625 = vmatprep.mubr.f32.mxu1 %v8268_v41 }
 0x66d   :  { %v2398_v22 = vpop.trf.xlu1 }
 0x66e   :  { %4181 = vmatmul.mubr.msk.f32.gmra.mrb[16].mxu1 %vm1266_vm13, %v2398_v22  ;;  %v2431_v51 = vpop.trf.xlu0 }
 0x66f   :  { %2631 = vmatprep.mubr.f32.mxu1 %v8268_v41 }
 0x671   :  { %v2399_v59 = vpop.trf.xlu1 }
 0x672   :  { %4182 = vmatmul.mubr.msk.f32.gmra.mrb[18].mxu1 %vm1266_vm13, %v2399_v59  ;;  %v2432_v54 = vpop.trf.xlu0 }
 0x673   :  { %2637 = vmatprep.mubr.f32.mxu1 %v8268_v41 }
 0x675   :  { %v2400_v21 = vpop.trf.xlu1 }
 0x676   :  { %4183 = vmatmul.mubr.msk.f32.gmra.mrb[20].mxu1 %vm1266_vm13, %v2400_v21  ;;  %v2433_v28 = vpop.trf.xlu0 }
 0x677   :  { %2643 = vmatprep.mubr.f32.mxu1 %v8268_v41 }
 0x679   :  { %v2401_v23 = vpop.trf.xlu1 }
 0x67a   :  { %4184 = vmatmul.mubr.msk.f32.gmra.mrb[22].mxu1 %vm1266_vm13, %v2401_v23  ;;  %v2434_v44 = vpop.trf.xlu0 }
 0x67b   :  { %2649 = vmatprep.mubr.f32.mxu1 %v8268_v41 }
 0x67d   :  { %v2402_v2 = vpop.trf.xlu1 }
 0x67e   :  { %4185 = vmatmul.mubr.msk.f32.gmra.mrb[24].mxu1 %vm1266_vm13, %v2402_v2  ;;  %v2435_v62 = vpop.trf.xlu0 }
 0x67f   :  { %2655 = vmatprep.mubr.f32.mxu1 %v8268_v41 }
 0x681   :  { %v2403_v33 = vpop.trf.xlu1 }
 0x682   :  { %4186 = vmatmul.mubr.msk.f32.gmra.mrb[26].mxu1 %vm1266_vm13, %v2403_v33  ;;  %v2436_v30 = vpop.trf.xlu0 }
 0x683   :  { %2661 = vmatprep.mubr.f32.mxu1 %v8268_v41 }
 0x685   :  { %v2404_v56 = vpop.trf.xlu1 }
 0x686   :  { %4187 = vmatmul.mubr.msk.f32.gmra.mrb[28].mxu1 %vm1266_vm13, %v2404_v56  ;;  %v2437_v35 = vpop.trf.xlu0 }
 0x687   :  { %2667 = vmatprep.mubr.f32.mxu1 %v8268_v41 }
 0x689   :  { %v2405_v5 = vpop.trf.xlu1 }
 0x68a   :  { %4188 = vmatmul.mubr.msk.f32.gmra.mrb[30].mxu1 %vm1266_vm13, %v2405_v5  ;;  %v2438_v6 = vpop.trf.xlu0 }
 0x68b   :  { %2673 = vmatprep.mubr.f32.mxu1 %v8268_v41 }
 0x68d   :  { %v2406_v12 = vpop.trf.xlu1 }
 0x68e   :  { %4189 = vmatmul.mubr.msk.f32.gmra.mrb[32].mxu1 %vm1266_vm13, %v2406_v12  ;;  %v2439_v45 = vpop.trf.xlu0 }
 0x68f   :  { %2679 = vmatprep.mubr.f32.mxu1 %v8268_v41 }
 0x691   :  { %v2407_v49 = vpop.trf.xlu1 }
 0x692   :  { %4190 = vmatmul.mubr.msk.f32.gmra.mrb[34].mxu1 %vm1266_vm13, %v2407_v49  ;;  %v2440_v55 = vpop.trf.xlu0 }
 0x693   :  { %2685 = vmatprep.mubr.f32.mxu1 %v8268_v41 }
 0x695   :  { %v2408_v18 = vpop.trf.xlu1 }
 0x696   :  { %4191 = vmatmul.mubr.msk.f32.gmra.mrb[36].mxu1 %vm1266_vm13, %v2408_v18  ;;  %v2441_v15 = vpop.trf.xlu0 }
 0x697   :  { %2691 = vmatprep.mubr.f32.mxu1 %v8268_v41 }
 0x699   :  { %v2409_v50 = vpop.trf.xlu1 }
 0x69a   :  { %4192 = vmatmul.mubr.msk.f32.gmra.mrb[38].mxu1 %vm1266_vm13, %v2409_v50  ;;  %v2442_v43 = vpop.trf.xlu0 }
 0x69b   :  { %2697 = vmatprep.mubr.f32.mxu1 %v8268_v41 }
 0x69d   :  { %v2410_v1 = vpop.trf.xlu1 }
 0x69e   :  { %4193 = vmatmul.mubr.msk.f32.gmra.mrb[40].mxu1 %vm1266_vm13, %v2410_v1 }
 0x69f   :  { %2703 = vmatprep.mubr.f32.mxu1 %v8268_v41 }
 0x6a2   :  { %4194 = vmatmul.mubr.msk.f32.gmra.mrb[42].mxu1 %vm1266_vm13, %v2427_v16 }
 0x6a3   :  { %2709 = vmatprep.mubr.f32.mxu1 %v8268_v41 }
 0x6a6   :  { %4195 = vmatmul.mubr.msk.f32.gmra.mrb[44].mxu1 %vm1266_vm13, %v2428_v20 }
 0x6a7   :  { %2715 = vmatprep.mubr.f32.mxu1 %v8268_v41 }
 0x6aa   :  { %4196 = vmatmul.mubr.msk.f32.gmra.mrb[46].mxu1 %vm1266_vm13, %v2429_v61 }
 0x6ab   :  { %2721 = vmatprep.mubr.f32.mxu1 %v8268_v41 }
 0x6ae   :  { %4197 = vmatmul.mubr.msk.f32.gmra.mrb[48].mxu1 %vm1266_vm13, %v2430_v31 }
 0x6af   :  { %2727 = vmatprep.mubr.f32.mxu1 %v8268_v41 }
 0x6b2   :  { %4198 = vmatmul.mubr.msk.f32.gmra.mrb[50].mxu1 %vm1266_vm13, %v2431_v51 }
 0x6b3   :  { %2733 = vmatprep.mubr.f32.mxu1 %v8268_v41 }
 0x6b6   :  { %4199 = vmatmul.mubr.msk.f32.gmra.mrb[52].mxu1 %vm1266_vm13, %v2432_v54 }
 0x6b7   :  { %2739 = vmatprep.mubr.f32.mxu1 %v8268_v41 }
 0x6ba   :  { %4200 = vmatmul.mubr.msk.f32.gmra.mrb[54].mxu1 %vm1266_vm13, %v2433_v28 }
 0x6bb   :  { %2745 = vmatprep.mubr.f32.mxu1 %v8268_v41 }
 0x6be   :  { %4201 = vmatmul.mubr.msk.f32.gmra.mrb[56].mxu1 %vm1266_vm13, %v2434_v44 }
 0x6bf   :  { %2751 = vmatprep.mubr.f32.mxu1 %v8268_v41 }
 0x6c2   :  { %4202 = vmatmul.mubr.msk.f32.gmra.mrb[58].mxu1 %vm1266_vm13, %v2435_v62 }
 0x6c3   :  { %2757 = vmatprep.mubr.f32.mxu1 %v8268_v41 }
 0x6c6   :  { %4203 = vmatmul.mubr.msk.f32.gmra.mrb[60].mxu1 %vm1266_vm13, %v2436_v30 }
 0x6c7   :  { %2763 = vmatprep.mubr.f32.mxu1 %v8268_v41 }
 0x6ca   :  { %4204 = vmatmul.mubr.msk.f32.gmra.mrb[62].mxu1 %vm1266_vm13, %v2437_v35 }
 0x6cb   :  { %2769 = vmatprep.mubr.f32.mxu1 %v8268_v41 }
 0x6ce   :  { %4205 = vmatmul.mubr.msk.f32.gmra.mrb[64].mxu1 %vm1266_vm13, %v2438_v6 }
 0x6cf   :  { %2775 = vmatprep.mubr.f32.mxu1 %v8268_v41 }
 0x6d2   :  { %4206 = vmatmul.mubr.msk.f32.gmra.mrb[66].mxu1 %vm1266_vm13, %v2439_v45 }
 0x6d3   :  { %2781 = vmatprep.mubr.f32.mxu1 %v8268_v41 }
 0x6d6   :  { %4207 = vmatmul.mubr.msk.f32.gmra.mrb[68].mxu1 %vm1266_vm13, %v2440_v55 }
 0x6d7   :  { %2787 = vmatprep.mubr.f32.mxu1 %v8268_v41 }
 0x6da   :  { %4208 = vmatmul.mubr.msk.f32.gmra.mrb[70].mxu1 %vm1266_vm13, %v2441_v15 }
 0x6db   :  { %2793 = vmatprep.mubr.f32.mxu1 %v8268_v41 }
 0x6de   :  { %4209 = vmatmul.mubr.msk.f32.gmra.mrb[72].mxu1 %vm1266_vm13, %v2442_v43 }
 0x6df   :  { %3421 = vmatprep.mubr.f32.mxu1 %v6933_v17 }
 0x6e2   :  { %3422 = vmatmul.mubr.f32.vlgmr.msra.gmra.mrb[74].mxu1 %v6941_v46 }
 0x6e3   :  { %3779 = vmatprep.mubr.f32.mxu1 %v8268_v41 }
 0x729   :  { %v7014_v37 = vpop.f32.mrb[6].mxu1 }
 0x72a   :  { %8273 = vst [vmem:[#allocation34_spill] sm:$0xff] %v7014_v37  ;;  %v7016_v63 = vpop.f32.mrb[7].mxu1 }
 0x72b   :  { %8274 = vst [vmem:[#allocation37_spill] sm:$0xff] %v7016_v63 }
 0x72d   :  { %v7018_v38 = vpop.f32.mrb[8].mxu1 }
 0x72e   :  { %v2249_v11 = vpop.f32.mrb[9].mxu1  ;;  %v2252_v57 = vsel %vm2251_vm14, %v7018_v38, -inf }
 0x72f   :  { %2253 = vmax.xlane.f32.xlu0 %v2252_v57 }
 0x735   :  { %v7022_v39 = vpop.f32.mrb[10].mxu1 }
 0x736   :  { %v7024_v24 = vpop.f32.mrb[11].mxu1 }
 0x737   :  { %v2800_v8 = vmax.f32 %v7022_v39, %v7024_v24 }
 0x739   :  { %2801 = vmax.xlane.f32.xlu1 %v2800_v8  ;;  %v7028_v13 = vpop.f32.mrb[12].mxu1 }
 0x73a   :  { %v7030_v25 = vpop.f32.mrb[13].mxu1 }
 0x73b   :  { %v2803_v48 = vmax.f32 %v7028_v13, %v7030_v25 }
 0x73d   :  { %2804 = vmax.xlane.f32.xlu1 %v2803_v48  ;;  %v7034_v0 = vpop.f32.mrb[14].mxu1 }
 0x73e   :  { %v7036_v34 = vpop.f32.mrb[15].mxu1 }
 0x73f   :  { %v2806_v36 = vmax.f32 %v7034_v0, %v7036_v34 }
 0x741   :  { %2807 = vmax.xlane.f32.xlu0 %v2806_v36  ;;  %v7040_v27 = vpop.f32.mrb[16].mxu1 }
 0x742   :  { %v7042_v14 = vpop.f32.mrb[17].mxu1 }
 0x743   :  { %v2809_v4 = vmax.f32 %v7040_v27, %v7042_v14 }
 0x745   :  { %2810 = vmax.xlane.f32.xlu1 %v2809_v4  ;;  %v7046_v52 = vpop.f32.mrb[18].mxu1 }
 0x746   :  { %v7048_v53 = vpop.f32.mrb[19].mxu1 }
 0x747   :  { %v2812_v29 = vmax.f32 %v7046_v52, %v7048_v53 }
 0x749   :  { %2813 = vmax.xlane.f32.xlu0 %v2812_v29  ;;  %v7052_v47 = vpop.f32.mrb[20].mxu1 }
 0x74a   :  { %v7054_v60 = vpop.f32.mrb[21].mxu1 }
 0x74b   :  { %v2815_v40 = vmax.f32 %v7052_v47, %v7054_v60 }
 0x74d   :  { %2816 = vmax.xlane.f32.xlu1 %v2815_v40  ;;  %v7058_v58 = vpop.f32.mrb[22].mxu1 }
 0x74e   :  { %v7060_v19 = vpop.f32.mrb[23].mxu1 }
 0x74f   :  { %v2818_v3 = vmax.f32 %v7058_v58, %v7060_v19 }
 0x751   :  { %2819 = vmax.xlane.f32.xlu0 %v2818_v3  ;;  %v7064_v22 = vpop.f32.mrb[24].mxu1 }
 0x752   :  { %v7066_v59 = vpop.f32.mrb[25].mxu1 }
 0x753   :  { %v2821_v21 = vmax.f32 %v7064_v22, %v7066_v59 }
 0x755   :  { %2822 = vmax.xlane.f32.xlu1 %v2821_v21  ;;  %v7070_v23 = vpop.f32.mrb[26].mxu1 }
 0x756   :  { %v7072_v2 = vpop.f32.mrb[27].mxu1 }
 0x757   :  { %v2824_v33 = vmax.f32 %v7070_v23, %v7072_v2 }
 0x759   :  { %2825 = vmax.xlane.f32.xlu0 %v2824_v33  ;;  %v7076_v16 = vpop.f32.mrb[28].mxu1 }
 0x75a   :  { %v7078_v56 = vpop.f32.mrb[29].mxu1 }
 0x75b   :  { %v2827_v20 = vmax.f32 %v7076_v16, %v7078_v56 }
 0x75d   :  { %2828 = vmax.xlane.f32.xlu1 %v2827_v20  ;;  %v7082_v5 = vpop.f32.mrb[30].mxu1 }
 0x75e   :  { %v7084_v12 = vpop.f32.mrb[31].mxu1 }
 0x75f   :  { %v2830_v61 = vmax.f32 %v7082_v5, %v7084_v12 }
 0x761   :  { %2831 = vmax.xlane.f32.xlu0 %v2830_v61  ;;  %v7088_v49 = vpop.f32.mrb[32].mxu1 }
 0x762   :  { %v7090_v31 = vpop.f32.mrb[33].mxu1 }
 0x763   :  { %v2833_v18 = vmax.f32 %v7088_v49, %v7090_v31 }
 0x765   :  { %2834 = vmax.xlane.f32.xlu1 %v2833_v18  ;;  %v7094_v50 = vpop.f32.mrb[34].mxu1 }
 0x766   :  { %v7096_v51 = vpop.f32.mrb[35].mxu1 }
 0x767   :  { %v2836_v1 = vmax.f32 %v7094_v50, %v7096_v51 }
 0x769   :  { %2837 = vmax.xlane.f32.xlu0 %v2836_v1  ;;  %v7100_v54 = vpop.f32.mrb[36].mxu1 }
 0x76a   :  { %v7102_v28 = vpop.f32.mrb[37].mxu1 }
 0x76b   :  { %v2839_v44 = vmax.f32 %v7100_v54, %v7102_v28 }
 0x76d   :  { %2840 = vmax.xlane.f32.xlu1 %v2839_v44  ;;  %v7106_v62 = vpop.f32.mrb[38].mxu1 }
 0x76e   :  { %v7108_v30 = vpop.f32.mrb[39].mxu1 }
 0x76f   :  { %v2842_v35 = vmax.f32 %v7106_v62, %v7108_v30 }
 0x771   :  { %2843 = vmax.xlane.f32.xlu0 %v2842_v35  ;;  %v7112_v6 = vpop.f32.mrb[40].mxu1 }
 0x772   :  { %v7114_v45 = vpop.f32.mrb[41].mxu1 }
 0x773   :  { %v2845_v55 = vmax.f32 %v7112_v6, %v7114_v45 }
 0x775   :  { %2846 = vmax.xlane.f32.xlu1 %v2845_v55  ;;  %v7118_v15 = vpop.f32.mrb[42].mxu1 }
 0x776   :  { %v7120_v43 = vpop.f32.mrb[43].mxu1 }
 0x777   :  { %v2848_v11 = vmax.f32 %v7118_v15, %v7120_v43 }
 0x779   :  { %2849 = vmax.xlane.f32.xlu1 %v2848_v11  ;;  %v7124_v57 = vpop.f32.mrb[44].mxu1 }
 0x77a   :  { %v7126_v8 = vpop.f32.mrb[45].mxu1 }
 0x77b   :  { %v2851_v48 = vmax.f32 %v7124_v57, %v7126_v8 }
 0x77d   :  { %2852 = vmax.xlane.f32.xlu0 %v2851_v48  ;;  %v7130_v36 = vpop.f32.mrb[46].mxu1 }
 0x77e   :  { %v7132_v4 = vpop.f32.mrb[47].mxu1 }
 0x77f   :  { %v2854_v29 = vmax.f32 %v7130_v36, %v7132_v4 }
 0x781   :  { %2855 = vmax.xlane.f32.xlu1 %v2854_v29  ;;  %v7136_v40 = vpop.f32.mrb[48].mxu1 }
 0x782   :  { %8275 = vst [vmem:[#allocation41_spill] sm:$0xff] %v7136_v40  ;;  %v7138_v3 = vpop.f32.mrb[49].mxu1 }
 0x783   :  { %8276 = vst [vmem:[#allocation40_spill] sm:$0xff] %v7138_v3  ;;  %v2857_v21 = vmax.f32 %v7136_v40, %v7138_v3 }
 0x785   :  { %2858 = vmax.xlane.f32.xlu0 %v2857_v21  ;;  %v7142_v33 = vpop.f32.mrb[50].mxu1 }
 0x786   :  { %8277 = vst [vmem:[#allocation39_spill] sm:$0xff] %v7142_v33  ;;  %v7144_v20 = vpop.f32.mrb[51].mxu1 }
 0x787   :  { %8278 = vst [vmem:[#allocation36_spill] sm:$0xff] %v7144_v20  ;;  %v2860_v61 = vmax.f32 %v7142_v33, %v7144_v20 }
 0x789   :  { %2861 = vmax.xlane.f32.xlu1 %v2860_v61  ;;  %v7148_v18 = vpop.f32.mrb[52].mxu1 }
 0x78a   :  { %8279 = vst [vmem:[#allocation43_spill] sm:$0xff] %v7148_v18  ;;  %v7150_v1 = vpop.f32.mrb[53].mxu1 }
 0x78b   :  { %8280 = vst [vmem:[#allocation54_spill] sm:$0xff] %v7150_v1  ;;  %v2863_v44 = vmax.f32 %v7148_v18, %v7150_v1 }
 0x78d   :  { %2864 = vmax.xlane.f32.xlu0 %v2863_v44  ;;  %v7154_v35 = vpop.f32.mrb[54].mxu1 }
 0x78e   :  { %8281 = vst [vmem:[#allocation38_spill] sm:$0xff] %v7154_v35  ;;  %v7156_v55 = vpop.f32.mrb[55].mxu1 }
 0x78f   :  { %8282 = vst [vmem:[#allocation42_spill] sm:$0xff] %v7156_v55  ;;  %v2866_v11 = vmax.f32 %v7154_v35, %v7156_v55 }
 0x791   :  { %2867 = vmax.xlane.f32.xlu1 %v2866_v11  ;;  %v7160_v48 = vpop.f32.mrb[56].mxu1 }
 0x792   :  { %8283 = vst [vmem:[#allocation27_spill] sm:$0xff] %v7160_v48  ;;  %v7162_v29 = vpop.f32.mrb[57].mxu1 }
 0x793   :  { %8284 = vst [vmem:[#allocation55_spill] sm:$0xff] %v7162_v29  ;;  %v2869_v21 = vmax.f32 %v7160_v48, %v7162_v29 }
 0x795   :  { %2870 = vmax.xlane.f32.xlu0 %v2869_v21  ;;  %v7166_v61 = vpop.f32.mrb[58].mxu1 }
 0x796   :  { %8285 = vst [vmem:[#allocation56_spill] sm:$0xff] %v7166_v61  ;;  %v7168_v9 = vpop.f32.mrb[59].mxu1 }
 0x797   :  { %8286 = vst [vmem:[#allocation57_spill] sm:$0xff] %v7168_v9  ;;  %v2872_v44 = vmax.f32 %v7166_v61, %v7168_v9 }
 0x799   :  { %2873 = vmax.xlane.f32.xlu1 %v2872_v44  ;;  %v7172_v32 = vpop.f32.mrb[60].mxu1 }
 0x79a   :  { %8287 = vst [vmem:[#allocation58_spill] sm:$0xff] %v7172_v32  ;;  %v7174_v10 = vpop.f32.mrb[61].mxu1 }
 0x79b   :  { %8288 = vst [vmem:[#allocation59_spill] sm:$0xff] %v7174_v10  ;;  %v2875_v11 = vmax.f32 %v7172_v32, %v7174_v10 }
 0x79d   :  { %2876 = vmax.xlane.f32.xlu0 %v2875_v11  ;;  %v7178_v26 = vpop.f32.mrb[62].mxu1 }
 0x79e   :  { %8289 = vst [vmem:[#allocation60_spill] sm:$0xff] %v7178_v26  ;;  %v7180_v63 = vpop.f32.mrb[63].mxu1 }
 0x79f   :  { %8290 = vst [vmem:[#allocation61_spill] sm:$0xff] %v7180_v63  ;;  %v2878_v21 = vmax.f32 %v7178_v26, %v7180_v63 }
 0x7a1   :  { %v7184_v37 = vpop.f32.mrb[64].mxu1 }
 0x7a2   :  { %v7186_v41 = vpop.f32.mrb[65].mxu1 }
 0x7a5   :  { %v7190_v46 = vpop.f32.mrb[66].mxu1 }
 0x7a6   :  { %v7192_v7 = vpop.f32.mrb[67].mxu1 }
 0x7a9   :  { %v7196_v17 = vpop.f32.mrb[68].mxu1 }
 0x7aa   :  { %v7198_v42 = vpop.f32.mrb[69].mxu1 }
 0x7ad   :  { %v7202_v32 = vpop.f32.mrb[70].mxu1 }
 0x7ae   :  { %v7204_v63 = vpop.f32.mrb[71].mxu1 }
 0x7b1   :  { %v7208_v26 = vpop.f32.mrb[72].mxu1 }
 0x7b2   :  { %v7210_v9 = vpop.f32.mrb[73].mxu1 }
 0x7b5   :  { %v7214_v61 = vpop.f32.mrb[74].mxu1 }
 0x7b6   :  { %v3425_v29 = vpop.f32.mrb[75].mxu1 }
 0x7bc   :  { %v2254_v48 = vpop.xlane.xlu0 %2253 }
 0x7bd   :  { %v2255_v10 = vsub.f32 %v7018_v38, %v2254_v48 }
 0x7bf   :  { %v2256_v55 = vmul.f32 1.442695, %v2255_v10 }
 0x7c1   :  { %4755 = vpow2.f32 %v2256_v55 }
 0x7c6   :  { %v2802_v35 = vpop.xlane.xlu1 %2801 }
 0x7c7   :  { %v2896_v1 = vsub.f32 %v7022_v39, %v2802_v35  ;;  %v2897_v44 = vsub.f32 %v7024_v24, %v2802_v35 }
 0x7c9   :  { %v2960_v18 = vmul.f32 1.442695, %v2896_v1  ;;  %v2962_v20 = vmul.f32 1.442695, %v2897_v44 }
 0x7ca   :  { %v2805_v33 = vpop.xlane.xlu1 %2804 }
 0x7cb   :  { %4757 = vpow2.f32 %v2960_v18  ;;  %v2898_v3 = vsub.f32 %v7028_v13, %v2805_v33  ;;  %v2899_v11 = vsub.f32 %v7030_v25, %v2805_v33  ;;  %v7221_v40 = vpop.eup %4755 }
 0x7cc   :  { %4759 = vpow2.f32 %v2962_v20  ;;  %v2258_v10 = vsel %vm2251_vm14, %v7221_v40, 0.0 }
 0x7cd   :  { %v2964_v29 = vmul.f32 1.442695, %v2898_v3  ;;  %v2966_v38 = vmul.f32 1.442695, %v2899_v11  ;;  %2259 = vadd.xlane.f32.xlu0 %v2258_v10 }
 0x7ce   :  { %v2808_v39 = vpop.xlane.xlu0 %2807 }
 0x7cf   :  { %4761 = vpow2.f32 %v2964_v29  ;;  %v2900_v24 = vsub.f32 %v7034_v0, %v2808_v39  ;;  %v2901_v1 = vsub.f32 %v7036_v34, %v2808_v39 }
 0x7d0   :  { %4763 = vpow2.f32 %v2966_v38 }
 0x7d1   :  { %v2968_v18 = vmul.f32 1.442695, %v2900_v24  ;;  %v2970_v13 = vmul.f32 1.442695, %v2901_v1  ;;  %2879 = vmax.xlane.f32.xlu0 %v2878_v21 }
 0x7d2   :  { %v2811_v35 = vpop.xlane.xlu1 %2810 }
 0x7d3   :  { %4765 = vpow2.f32 %v2968_v18  ;;  %v2902_v25 = vsub.f32 %v7040_v27, %v2811_v35  ;;  %v2903_v3 = vsub.f32 %v7042_v14, %v2811_v35 }
 0x7d4   :  { %4767 = vpow2.f32 %v2970_v13 }
 0x7d5   :  { %v7229_v33 = vpop.eup %4757  ;;  %v2972_v20 = vmul.f32 1.442695, %v2902_v25  ;;  %v2974_v55 = vmul.f32 1.442695, %v2903_v3 }
 0x7d6   :  { %v7231_v48 = vpop.eup %4759  ;;  %v2814_v0 = vpop.xlane.xlu0 %2813 }
 0x7d7   :  { %4769 = vpow2.f32 %v2972_v20  ;;  %v2904_v34 = vsub.f32 %v7046_v52, %v2814_v0  ;;  %v2905_v44 = vsub.f32 %v7048_v53, %v2814_v0  ;;  %v3088_v21 = vadd.f32 %v7231_v48, %v7229_v33 }
 0x7d8   :  { %4771 = vpow2.f32 %v2974_v55  ;;  %v3427_v53 = vsel %vm2251_vm14, %v7214_v61, -inf  ;;  %v8291_v0 = vmax.f32 %v7190_v46, %v7192_v7 }
 0x7d9   :  { %v7237_v27 = vpop.eup %4761  ;;  %v2976_v14 = vmul.f32 1.442695, %v2904_v34  ;;  %v2978_v11 = vmul.f32 1.442695, %v2905_v44  ;;  %3089 = vadd.xlane.f32.xlu1 %v3088_v21 }
 0x7da   :  { %v7239_v29 = vpop.eup %4763  ;;  %v2817_v38 = vpop.xlane.xlu1 %2816 }
 0x7db   :  { %4773 = vpow2.f32 %v2976_v14  ;;  %v2906_v10 = vsub.f32 %v7052_v47, %v2817_v38  ;;  %v2907_v39 = vsub.f32 %v7054_v60, %v2817_v38  ;;  %v3091_v52 = vadd.f32 %v7239_v29, %v7237_v27 }
 0x7dc   :  { %4775 = vpow2.f32 %v2978_v11 }
 0x7dd   :  { %v7247_v24 = vpop.eup %4765  ;;  %v2980_v1 = vmul.f32 1.442695, %v2906_v10  ;;  %v2982_v18 = vmul.f32 1.442695, %v2907_v39  ;;  %3428 = vmax.xlane.f32.xlu1 %v3427_v53  ;;  %3092 = vadd.xlane.f32.xlu0 %v3091_v52  ;;  %v8292_v10 = vmax.f32 %v7184_v37, %v7186_v41 }
 0x7de   :  { %v7249_v13 = vpop.eup %4767  ;;  %v2820_v35 = vpop.xlane.xlu0 %2819 }
 0x7df   :  { %4777 = vpow2.f32 %v2980_v1  ;;  %v2908_v47 = vsub.f32 %v7058_v58, %v2820_v35  ;;  %v2909_v60 = vsub.f32 %v7060_v19, %v2820_v35  ;;  %v3094_v25 = vadd.f32 %v7249_v13, %v7247_v24 }
 0x7e0   :  { %4779 = vpow2.f32 %v2982_v18 }
 0x7e1   :  { %v7255_v3 = vpop.eup %4769  ;;  %v2984_v20 = vmul.f32 1.442695, %v2908_v47  ;;  %v2986_v55 = vmul.f32 1.442695, %v2909_v60  ;;  %2885 = vmax.xlane.f32.xlu0 %v8291_v0  ;;  %3095 = vadd.xlane.f32.xlu1 %v3094_v25 }
 0x7e2   :  { %v7260_v34 = vpop.eup %4771  ;;  %v2823_v44 = vpop.xlane.xlu1 %2822 }
 0x7e3   :  { %4781 = vpow2.f32 %v2984_v20  ;;  %v2910_v58 = vsub.f32 %v7064_v22, %v2823_v44  ;;  %v2911_v19 = vsub.f32 %v7066_v59, %v2823_v44  ;;  %v3097_v21 = vadd.f32 %v7260_v34, %v7255_v3 }
 0x7e4   :  { %4783 = vpow2.f32 %v2986_v55  ;;  %v8293_v44 = vmax.f32 %v7202_v32, %v7204_v63 }
 0x7e5   :  { %v7266_v14 = vpop.eup %4773  ;;  %v2988_v11 = vmul.f32 1.442695, %v2910_v58  ;;  %v2990_v38 = vmul.f32 1.442695, %v2911_v19  ;;  %3098 = vadd.xlane.f32.xlu0 %v3097_v21  ;;  %2882 = vmax.xlane.f32.xlu1 %v8292_v10 }
 0x7e6   :  { %v7271_v39 = vpop.eup %4775  ;;  %v2826_v52 = vpop.xlane.xlu0 %2825 }
 0x7e7   :  { %4785 = vpow2.f32 %v2988_v11  ;;  %v2912_v22 = vsub.f32 %v7070_v23, %v2826_v52  ;;  %v2913_v59 = vsub.f32 %v7072_v2, %v2826_v52  ;;  %v3100_v53 = vadd.f32 %v7271_v39, %v7266_v14 }
 0x7e8   :  { %4787 = vpow2.f32 %v2990_v38  ;;  %v8294_v52 = vmax.f32 %v7196_v17, %v7198_v42 }
 0x7e9   :  { %v7277_v1 = vpop.eup %4777  ;;  %v2992_v18 = vmul.f32 1.442695, %v2912_v22  ;;  %v2994_v35 = vmul.f32 1.442695, %v2913_v59  ;;  %3101 = vadd.xlane.f32.xlu0 %v3100_v53 }
 0x7ea   :  { %v7279_v47 = vpop.eup %4779  ;;  %v2829_v60 = vpop.xlane.xlu1 %2828 }
 0x7eb   :  { %4789 = vpow2.f32 %v2992_v18  ;;  %v2914_v25 = vsub.f32 %v7076_v16, %v2829_v60  ;;  %v2915_v20 = vsub.f32 %v7078_v56, %v2829_v60  ;;  %v3103_v23 = vadd.f32 %v7279_v47, %v7277_v1 }
 0x7ec   :  { %4791 = vpow2.f32 %v2994_v35 }
 0x7ed   :  { %v7285_v2 = vpop.eup %4781  ;;  %v2996_v55 = vmul.f32 1.442695, %v2914_v25  ;;  %v2998_v0 = vmul.f32 1.442695, %v2915_v20  ;;  %3104 = vadd.xlane.f32.xlu1 %v3103_v23  ;;  %2891 = vmax.xlane.f32.xlu0 %v8293_v44 }
 0x7ee   :  { %v7290_v58 = vpop.eup %4783  ;;  %v2832_v19 = vpop.xlane.xlu0 %2831 }
 0x7ef   :  { %4793 = vpow2.f32 %v2996_v55  ;;  %v2916_v16 = vsub.f32 %v7082_v5, %v2832_v19  ;;  %v2917_v56 = vsub.f32 %v7084_v12, %v2832_v19  ;;  %v3106_v21 = vadd.f32 %v7290_v58, %v7285_v2 }
 0x7f0   :  { %4795 = vpow2.f32 %v2998_v0  ;;  %v8295_v19 = vmax.f32 %v7208_v26, %v7210_v9 }
 0x7f1   :  { %v7296_v11 = vpop.eup %4785  ;;  %v3000_v38 = vmul.f32 1.442695, %v2916_v16  ;;  %v3002_v10 = vmul.f32 1.442695, %v2917_v56  ;;  %2888 = vmax.xlane.f32.xlu1 %v8294_v52  ;;  %3107 = vadd.xlane.f32.xlu0 %v3106_v21 }
 0x7f2   :  { %v7301_v22 = vpop.eup %4787  ;;  %v2835_v59 = vpop.xlane.xlu1 %2834 }
 0x7f3   :  { %4797 = vpow2.f32 %v3000_v38  ;;  %v2918_v5 = vsub.f32 %v7088_v49, %v2835_v59  ;;  %v2919_v12 = vsub.f32 %v7090_v31, %v2835_v59  ;;  %v3109_v53 = vadd.f32 %v7301_v22, %v7296_v11 }
 0x7f4   :  { %4799 = vpow2.f32 %v3002_v10 }
 0x7f5   :  { %v7307_v18 = vpop.eup %4789  ;;  %v3004_v35 = vmul.f32 1.442695, %v2918_v5  ;;  %v3006_v60 = vmul.f32 1.442695, %v2919_v12  ;;  %3110 = vadd.xlane.f32.xlu1 %v3109_v53 }
 0x7f6   :  { %v7309_v25 = vpop.eup %4791  ;;  %v2838_v20 = vpop.xlane.xlu0 %2837 }
 0x7f7   :  { %4801 = vpow2.f32 %v3004_v35  ;;  %v2920_v23 = vsub.f32 %v7094_v50, %v2838_v20  ;;  %v2921_v55 = vsub.f32 %v7096_v51, %v2838_v20  ;;  %v3112_v49 = vadd.f32 %v7309_v25, %v7307_v18 }
 0x7f8   :  { %4803 = vpow2.f32 %v3006_v60 }
 0x7f9   :  { %v7315_v31 = vpop.eup %4793  ;;  %v3008_v0 = vmul.f32 1.442695, %v2920_v23  ;;  %v3010_v44 = vmul.f32 1.442695, %v2921_v55  ;;  %2894 = vmax.xlane.f32.xlu1 %v8295_v19  ;;  %3113 = vadd.xlane.f32.xlu0 %v3112_v49 }
 0x7fa   :  { %v7320_v16 = vpop.eup %4795  ;;  %v2841_v56 = vpop.xlane.xlu1 %2840 }
 0x7fb   :  { %4805 = vpow2.f32 %v3008_v0  ;;  %v2922_v50 = vsub.f32 %v7100_v54, %v2841_v56  ;;  %v2923_v51 = vsub.f32 %v7102_v28, %v2841_v56  ;;  %v3115_v21 = vadd.f32 %v7320_v16, %v7315_v31 }
 0x7fc   :  { %4807 = vpow2.f32 %v3010_v44 }
 0x7fd   :  { %v7326_v38 = vpop.eup %4797  ;;  %v3012_v10 = vmul.f32 1.442695, %v2922_v50  ;;  %v3014_v52 = vmul.f32 1.442695, %v2923_v51  ;;  %3116 = vadd.xlane.f32.xlu1 %v3115_v21 }
 0x7fe   :  { %v7328_v59 = vpop.eup %4799  ;;  %v2844_v5 = vpop.xlane.xlu0 %2843 }
 0x7ff   :  { %4809 = vpow2.f32 %v3012_v10  ;;  %v2924_v12 = vsub.f32 %v7106_v62, %v2844_v5  ;;  %v2925_v53 = vsub.f32 %v7108_v30, %v2844_v5  ;;  %v3118_v54 = vadd.f32 %v7328_v59, %v7326_v38 }
 0x800   :  { %4811 = vpow2.f32 %v3014_v52 }
 0x801   :  { %v7334_v28 = vpop.eup %4801  ;;  %v3016_v35 = vmul.f32 1.442695, %v2924_v12  ;;  %v3018_v60 = vmul.f32 1.442695, %v2925_v53  ;;  %3119 = vadd.xlane.f32.xlu0 %v3118_v54 }
 0x802   :  { %v7336_v20 = vpop.eup %4803  ;;  %v2847_v23 = vpop.xlane.xlu1 %2846 }
 0x803   :  { %4813 = vpow2.f32 %v3016_v35  ;;  %v2926_v55 = vsub.f32 %v7112_v6, %v2847_v23  ;;  %v2927_v49 = vsub.f32 %v7114_v45, %v2847_v23  ;;  %v3121_v62 = vadd.f32 %v7336_v20, %v7334_v28 }
 0x804   :  { %4815 = vpow2.f32 %v3018_v60 }
 0x805   :  { %v7342_v30 = vpop.eup %4805  ;;  %v3020_v0 = vmul.f32 1.442695, %v2926_v55  ;;  %v3022_v44 = vmul.f32 1.442695, %v2927_v49  ;;  %3122 = vadd.xlane.f32.xlu1 %v3121_v62 }
 0x806   :  { %v7344_v19 = vpop.eup %4807  ;;  %v2850_v56 = vpop.xlane.xlu1 %2849 }
 0x807   :  { %4817 = vpow2.f32 %v3020_v0  ;;  %v2928_v50 = vsub.f32 %v7118_v15, %v2850_v56  ;;  %v2929_v51 = vsub.f32 %v7120_v43, %v2850_v56  ;;  %v3124_v6 = vadd.f32 %v7344_v19, %v7342_v30 }
 0x808   :  { %4819 = vpow2.f32 %v3022_v44 }
 0x809   :  { %v7350_v45 = vpop.eup %4809  ;;  %v3024_v21 = vmul.f32 1.442695, %v2928_v50  ;;  %v3026_v10 = vmul.f32 1.442695, %v2929_v51  ;;  %3125 = vadd.xlane.f32.xlu0 %v3124_v6  ;;  %v8296_v50 = vld [vmem:[#allocation41_spill] sm:$0xff]  ;;  %v8297_v6 = vld [vmem:[#allocation40_spill] sm:$0xff] }
 0x80a   :  { %v7352_v52 = vpop.eup %4811  ;;  %v2853_v5 = vpop.xlane.xlu0 %2852 }
 0x80b   :  { %4821 = vpow2.f32 %v3024_v21  ;;  %v2930_v12 = vsub.f32 %v7124_v57, %v2853_v5  ;;  %v2931_v53 = vsub.f32 %v7126_v8, %v2853_v5  ;;  %v3127_v15 = vadd.f32 %v7352_v52, %v7350_v45 }
 0x80c   :  { %4823 = vpow2.f32 %v3026_v10 }
 0x80d   :  { %v7358_v43 = vpop.eup %4813  ;;  %v3028_v54 = vmul.f32 1.442695, %v2930_v12  ;;  %v3030_v35 = vmul.f32 1.442695, %v2931_v53  ;;  %3128 = vadd.xlane.f32.xlu1 %v3127_v15  ;;  %v8299_v15 = vld [vmem:[#allocation39_spill] sm:$0xff] }
 0x80e   :  { %v7360_v60 = vpop.eup %4815  ;;  %v2856_v23 = vpop.xlane.xlu1 %2855 }
 0x80f   :  { %4825 = vpow2.f32 %v3028_v54  ;;  %v2932_v55 = vsub.f32 %v7130_v36, %v2856_v23  ;;  %v2933_v49 = vsub.f32 %v7132_v4, %v2856_v23  ;;  %v3130_v57 = vadd.f32 %v7360_v60, %v7358_v43 }
 0x810   :  { %4827 = vpow2.f32 %v3030_v35  ;;  %v8300_v35 = vld [vmem:[#allocation36_spill] sm:$0xff] }
 0x811   :  { %v7366_v8 = vpop.eup %4817  ;;  %v3032_v62 = vmul.f32 1.442695, %v2932_v55  ;;  %v3034_v0 = vmul.f32 1.442695, %v2933_v49  ;;  %3131 = vadd.xlane.f32.xlu1 %v3130_v57 }
 0x812   :  { %v7368_v44 = vpop.eup %4819  ;;  %v2859_v56 = vpop.xlane.xlu0 %2858 }
 0x813   :  { %4829 = vpow2.f32 %v3032_v62  ;;  %v2934_v51 = vsub.f32 %v8296_v50, %v2859_v56  ;;  %v2935_v21 = vsub.f32 %v8297_v6, %v2859_v56  ;;  %v3133_v36 = vadd.f32 %v7368_v44, %v7366_v8  ;;  %v8302_v50 = vld [vmem:[#allocation43_spill] sm:$0xff]  ;;  %v8303_v6 = vld [vmem:[#allocation54_spill] sm:$0xff] }
 0x814   :  { %4831 = vpow2.f32 %v3034_v0 }
 0x815   :  { %v7374_v4 = vpop.eup %4821  ;;  %v3036_v10 = vmul.f32 1.442695, %v2934_v51  ;;  %v3038_v5 = vmul.f32 1.442695, %v2935_v21  ;;  %3134 = vadd.xlane.f32.xlu1 %v3133_v36 }
 0x816   :  { %8298 = vst [vmem:[#allocation41_spill] sm:$0xff] %v7374_v4  ;;  %v7376_v12 = vpop.eup %4823  ;;  %v2862_v53 = vpop.xlane.xlu1 %2861 }
 0x817   :  { %4833 = vpow2.f32 %v3036_v10  ;;  %v2936_v54 = vsub.f32 %v8299_v15, %v2862_v53  ;;  %v2937_v23 = vsub.f32 %v8300_v35, %v2862_v53  ;;  %v3136_v55 = vadd.f32 %v7376_v12, %v7374_v4  ;;  %v8306_v35 = vld [vmem:[#allocation38_spill] sm:$0xff] }
 0x818   :  { %4835 = vpow2.f32 %v3038_v5 }
 0x819   :  { %v7382_v49 = vpop.eup %4825  ;;  %v3040_v57 = vmul.f32 1.442695, %v2936_v54  ;;  %v3042_v62 = vmul.f32 1.442695, %v2937_v23  ;;  %3137 = vadd.xlane.f32.xlu1 %v3136_v55  ;;  %v8307_v55 = vld [vmem:[#allocation42_spill] sm:$0xff] }
 0x81a   :  { %8301 = vst [vmem:[#allocation40_spill] sm:$0xff] %v7382_v49  ;;  %v7384_v0 = vpop.eup %4827  ;;  %v2865_v56 = vpop.xlane.xlu0 %2864 }
 0x81b   :  { %4837 = vpow2.f32 %v3040_v57  ;;  %v2938_v51 = vsub.f32 %v8302_v50, %v2865_v56  ;;  %v2939_v21 = vsub.f32 %v8303_v6, %v2865_v56  ;;  %v3139_v36 = vadd.f32 %v7384_v0, %v7382_v49 }
 0x81c   :  { %4839 = vpow2.f32 %v3042_v62 }
 0x81d   :  { %v7390_v10 = vpop.eup %4829  ;;  %v3044_v5 = vmul.f32 1.442695, %v2938_v51  ;;  %v3046_v53 = vmul.f32 1.442695, %v2939_v21  ;;  %3140 = vadd.xlane.f32.xlu1 %v3139_v36  ;;  %v8309_v36 = vld [vmem:[#allocation27_spill] sm:$0xff] }
 0x81e   :  { %8304 = vst [vmem:[#allocation39_spill] sm:$0xff] %v7390_v10  ;;  %v7392_v15 = vpop.eup %4831  ;;  %v2868_v54 = vpop.xlane.xlu1 %2867 }
 0x81f   :  { %8305 = vst [vmem:[#allocation36_spill] sm:$0xff] %v7392_v15  ;;  %4841 = vpow2.f32 %v3044_v5  ;;  %v2940_v23 = vsub.f32 %v8306_v35, %v2868_v54  ;;  %v2941_v57 = vsub.f32 %v8307_v55, %v2868_v54  ;;  %v3142_v56 = vadd.f32 %v7392_v15, %v7390_v10  ;;  %v8310_v5 = vld [vmem:[#allocation55_spill] sm:$0xff] }
 0x820   :  { %4843 = vpow2.f32 %v3046_v53 }
 0x821   :  { %v7398_v50 = vpop.eup %4833  ;;  %v3048_v62 = vmul.f32 1.442695, %v2940_v23  ;;  %v3050_v6 = vmul.f32 1.442695, %v2941_v57  ;;  %3143 = vadd.xlane.f32.xlu1 %v3142_v56  ;;  %v8313_v56 = vld [vmem:[#allocation56_spill] sm:$0xff] }
 0x822   :  { %8308 = vst [vmem:[#allocation43_spill] sm:$0xff] %v7398_v50  ;;  %v7400_v51 = vpop.eup %4835  ;;  %v2871_v21 = vpop.xlane.xlu0 %2870 }
 0x823   :  { %4845 = vpow2.f32 %v3048_v62  ;;  %v2942_v4 = vsub.f32 %v8309_v36, %v2871_v21  ;;  %v2943_v49 = vsub.f32 %v8310_v5, %v2871_v21  ;;  %v3145_v54 = vadd.f32 %v7400_v51, %v7398_v50  ;;  %v8314_v62 = vld [vmem:[#allocation57_spill] sm:$0xff] }
 0x824   :  { %4847 = vpow2.f32 %v3050_v6 }
 0x825   :  { %v7406_v35 = vpop.eup %4837  ;;  %v3052_v53 = vmul.f32 1.442695, %v2942_v4  ;;  %v3054_v55 = vmul.f32 1.442695, %v2943_v49  ;;  %3146 = vadd.xlane.f32.xlu1 %v3145_v54 }
 0x826   :  { %8311 = vst [vmem:[#allocation54_spill] sm:$0xff] %v7406_v35  ;;  %v7408_v23 = vpop.eup %4839  ;;  %v2874_v57 = vpop.xlane.xlu1 %2873 }
 0x827   :  { %8312 = vst [vmem:[#allocation38_spill] sm:$0xff] %v7408_v23  ;;  %4849 = vpow2.f32 %v3052_v53  ;;  %v2944_v10 = vsub.f32 %v8313_v56, %v2874_v57  ;;  %v2945_v15 = vsub.f32 %v8314_v62, %v2874_v57  ;;  %v3148_v21 = vadd.f32 %v7408_v23, %v7406_v35 }
 0x828   :  { %4851 = vpow2.f32 %v3054_v55 }
 0x829   :  { %v7414_v36 = vpop.eup %4841  ;;  %v3056_v6 = vmul.f32 1.442695, %v2944_v10  ;;  %v3058_v5 = vmul.f32 1.442695, %v2945_v15  ;;  %3149 = vadd.xlane.f32.xlu1 %v3148_v21 }
 0x82a   :  { %8315 = vst [vmem:[#allocation42_spill] sm:$0xff] %v7414_v36  ;;  %v7416_v4 = vpop.eup %4843 }
 0x82b   :  { %8316 = vst [vmem:[#allocation27_spill] sm:$0xff] %v7416_v4  ;;  %4853 = vpow2.f32 %v3056_v6  ;;  %v3151_v49 = vadd.f32 %v7416_v4, %v7414_v36  ;;  %v7438_v6 = vpop.xlane.xlu0 %2876 }
 0x82c   :  { %4855 = vpow2.f32 %v3058_v5 }
 0x82d   :  { %v7420_v54 = vpop.eup %4845  ;;  %3152 = vadd.xlane.f32.xlu1 %v3151_v49 }
 0x82e   :  { %8317 = vst [vmem:[#allocation55_spill] sm:$0xff] %v7420_v54  ;;  %v7422_v53 = vpop.eup %4847 }
 0x82f   :  { %8318 = vst [vmem:[#allocation56_spill] sm:$0xff] %v7422_v53  ;;  %v3154_v55 = vadd.f32 %v7422_v53, %v7420_v54  ;;  %v8323_v54 = vld [vmem:[#allocation60_spill] sm:$0xff] }
 0x831   :  { %v7426_v57 = vpop.eup %4849  ;;  %3155 = vadd.xlane.f32.xlu1 %v3154_v55 }
 0x832   :  { %8319 = vst [vmem:[#allocation57_spill] sm:$0xff] %v7426_v57  ;;  %v7428_v10 = vpop.eup %4851 }
 0x833   :  { %8320 = vst [vmem:[#allocation62_spill] sm:$0xff] %v7428_v10  ;;  %v3157_v15 = vadd.f32 %v7428_v10, %v7426_v57  ;;  %v8324_v10 = vld [vmem:[#allocation61_spill] sm:$0xff] }
 0x835   :  { %v7432_v56 = vpop.eup %4853  ;;  %3158 = vadd.xlane.f32.xlu1 %v3157_v15 }
 0x836   :  { %8321 = vst [vmem:[#allocation63_spill] sm:$0xff] %v7432_v56  ;;  %v7434_v62 = vpop.eup %4855 }
 0x837   :  { %8322 = vst [vmem:[#allocation64_spill] sm:$0xff] %v7434_v62  ;;  %v3160_v21 = vadd.f32 %v7434_v62, %v7432_v56 }
 0x839   :  { %3161 = vadd.xlane.f32.xlu1 %v3160_v21 }
 0x85a   :  { %v2260_v5 = vpop.xlane.xlu0 %2259 }
 0x85b   :  { %4857 = vrcp.f32 %v2260_v5 }
 0x85e   :  { %v2880_v49 = vpop.xlane.xlu0 %2879 }
 0x85f   :  { %v2948_v53 = vsub.f32 %v8323_v54, %v2880_v49  ;;  %v2949_v36 = vsub.f32 %v8324_v10, %v2880_v49 }
 0x861   :  { %v3064_v15 = vmul.f32 1.442695, %v2948_v53  ;;  %v3066_v56 = vmul.f32 1.442695, %v2949_v36 }
 0x865   :  { %v4858_v55 = vpop.eup %4857 }
 0x866   :  { %v3090_v35 = vpop.xlane.xlu1 %3089  ;;  %v2262_v57 = vmul.f32 %v4858_v55, %v7221_v40 }
 0x867   :  { %4859 = vrcp.f32 %v3090_v35 }
 0x868   :  { %2263 = vxpose.xlu0.b32.start.end [1/1] (short) (narrow) %v2262_v57, 8 }
 0x86a   :  { %v3429_v23 = vpop.xlane.xlu1 %3428  ;;  %v3093_v4 = vpop.xlane.xlu0 %3092 }
 0x86b   :  { %v3430_v21 = vsub.f32 %v7214_v61, %v3429_v23  ;;  %4861 = vrcp.f32 %v3093_v4 }
 0x86c   :  { %4863 = vpow2.f32 %v3064_v15 }
 0x86d   :  { %v3431_v62 = vmul.f32 1.442695, %v3430_v21 }
 0x86e   :  { %v3096_v5 = vpop.xlane.xlu1 %3095  ;;  %v2886_v50 = vpop.xlane.xlu0 %2885 }
 0x86f   :  { %4865 = vpow2.f32 %v3431_v62  ;;  %v2952_v54 = vsub.f32 %v7190_v46, %v2886_v50  ;;  %v2953_v40 = vsub.f32 %v7192_v7, %v2886_v50 }
 0x870   :  { %4867 = vpow2.f32 %v3066_v56 }
 0x871   :  { %v4860_v10 = vpop.eup %4859  ;;  %v3072_v35 = vmul.f32 1.442695, %v2952_v54  ;;  %4869 = vrcp.f32 %v3096_v5  ;;  %v3074_v23 = vmul.f32 1.442695, %v2953_v40 }
 0x872   :  { %v2883_v57 = vpop.xlane.xlu1 %2882  ;;  %v3099_v53 = vpop.xlane.xlu0 %3098  ;;  %v3217_v62 = vmul.f32 %v4860_v10, %v7231_v48  ;;  %v7451_v50 = vmul.f32 %v4860_v10, %v7229_v33  ;;  %v8325_v48 = vld [vmem:[#allocation58_spill] sm:$0xff] }
 0x873   :  { %v2950_v49 = vsub.f32 %v7184_v37, %v2883_v57  ;;  %v2951_v61 = vsub.f32 %v7186_v41, %v2883_v57  ;;  %4871 = vrcp.f32 %v3099_v53  ;;  %v2946_v5 = vsub.f32 %v8325_v48, %v7438_v6 }
 0x874   :  { %4873 = vpow2.f32 %v3072_v35 }
 0x875   :  { %v4862_v36 = vpop.eup %4861  ;;  %v3068_v4 = vmul.f32 1.442695, %v2950_v49  ;;  %v3070_v55 = vmul.f32 1.442695, %v2951_v61  ;;  %v3060_v35 = vmul.f32 1.442695, %v2946_v5 }
 0x876   :  { %v3102_v46 = vpop.xlane.xlu0 %3101  ;;  %v3219_v7 = vmul.f32 %v4862_v36, %v7239_v29  ;;  %v7454_v56 = vmul.f32 %v4862_v36, %v7237_v27  ;;  %v7456_v37 = vpop.eup %4863  ;;  %v8326_v36 = vld [vmem:[#allocation59_spill] sm:$0xff] }
 0x877   :  { %4875 = vpow2.f32 %v3068_v4  ;;  %v2947_v4 = vsub.f32 %v8326_v36, %v7438_v6 }
 0x878   :  { %4877 = vpow2.f32 %v3070_v55  ;;  %v4439_v41 = vpack.c.bf16 %v3219_v7, %v3217_v62  ;;  %v4441_v15 = vpack.c.bf16 %v7454_v56, %v7451_v50 }
 0x879   :  { %v7460_v21 = vpop.eup %4865  ;;  %4879 = vrcp.f32 %v3102_v46 }
 0x87a   :  { %v7464_v29 = vpop.eup %4867  ;;  %4881 = vpow2.f32 %v3074_v23  ;;  %v3105_v33 = vpop.xlane.xlu1 %3104  ;;  %4440 = vmatprep.subr.bf16.mxu0 %v4439_v41  ;;  %v3433_v54 = vsel %vm2251_vm14, %v7460_v21, 0.0 }
 0x87b   :  { %v2892_v27 = vpop.xlane.xlu0 %2891  ;;  %4883 = vrcp.f32 %v3105_v33  ;;  %3434 = vadd.xlane.f32.xlu1 %v3433_v54  ;;  %v4870_v10 = vpop.eup %4869  ;;  %v3166_v53 = vadd.f32 %v7464_v29, %v7456_v37 }
 0x87c   :  { %v2956_v40 = vsub.f32 %v7202_v32, %v2892_v27  ;;  %v2957_v57 = vsub.f32 %v7204_v63, %v2892_v27  ;;  %v7479_v46 = vmul.f32 %v4870_v10, %v7249_v13  ;;  %v7485_v7 = vmul.f32 %v4870_v10, %v7247_v24 }
 0x87d   :  { %v4872_v23 = vpop.eup %4871  ;;  %4885 = vpow2.f32 %v3060_v35  ;;  %v3062_v27 = vmul.f32 1.442695, %v2947_v4 }
 0x87e   :  { %v3080_v49 = vmul.f32 1.442695, %v2956_v40  ;;  %v2889_v61 = vpop.xlane.xlu1 %2888  ;;  %v7476_v32 = vpop.eup %4873  ;;  %v7482_v63 = vmul.f32 %v4872_v23, %v7260_v34  ;;  %v7488_v41 = vmul.f32 %v4872_v23, %v7255_v3 }
 0x87f   :  { %v2954_v55 = vsub.f32 %v7196_v17, %v2889_v61  ;;  %v2955_v62 = vsub.f32 %v7198_v42, %v2889_v61  ;;  %3167 = vadd.xlane.f32.xlu1 %v3166_v53  ;;  %v3082_v17 = vmul.f32 1.442695, %v2957_v57 }
 0x880   :  { %4887 = vpow2.f32 %v3080_v49  ;;  %v4443_v34 = vpack.c.bf16 %v7482_v63, %v7479_v46 }
 0x881   :  { %v7490_v6 = vpop.eup %4875  ;;  %v3076_v42 = vmul.f32 1.442695, %v2954_v55  ;;  %v3078_v48 = vmul.f32 1.442695, %v2955_v62 }
 0x882   :  { %v7492_v5 = vpop.eup %4877  ;;  %v3111_v13 = vpop.xlane.xlu1 %3110 }
 0x883   :  { %v4880_v33 = vpop.eup %4879  ;;  %4889 = vpow2.f32 %v3076_v42  ;;  %v3169_v3 = vadd.f32 %v7492_v5, %v7490_v6 }
 0x884   :  { %v7500_v54 = vpop.eup %4881  ;;  %4891 = vpow2.f32 %v3078_v48  ;;  %v3225_v35 = vmul.f32 %v4880_v33, %v7271_v39  ;;  %v7505_v53 = vmul.f32 %v4880_v33, %v7266_v14 }
 0x885   :  { %v4884_v40 = vpop.eup %4883  ;;  %4893 = vpow2.f32 %v3082_v17  ;;  %3170 = vadd.xlane.f32.xlu1 %v3169_v3  ;;  %v3172_v36 = vadd.f32 %v7500_v54, %v7476_v32 }
 0x886   :  { %v2895_v10 = vpop.xlane.xlu1 %2894  ;;  %v3227_v57 = vmul.f32 %v4884_v40, %v7279_v47  ;;  %v7508_v49 = vmul.f32 %v4884_v40, %v7277_v1  ;;  %4895 = vpow2.f32 %v3062_v27 }
 0x887   :  { %v2958_v61 = vsub.f32 %v7208_v26, %v2895_v10  ;;  %v2959_v23 = vsub.f32 %v7210_v9, %v2895_v10  ;;  %v7516_v14 = vpop.eup %4885 }
 0x888   :  { %v4447_v4 = vpack.c.bf16 %v3227_v57, %v3225_v35  ;;  %v4449_v39 = vpack.c.bf16 %v7508_v49, %v7505_v53  ;;  %v3108_v49 = vpop.xlane.xlu0 %3107 }
 0x889   :  { %v3084_v55 = vmul.f32 1.442695, %v2958_v61  ;;  %v3086_v47 = vmul.f32 1.442695, %v2959_v23  ;;  %3173 = vadd.xlane.f32.xlu1 %v3172_v36 }
 0x88a   :  { %v7518_v1 = vpop.eup %4887  ;;  %v3117_v3 = vpop.xlane.xlu1 %3116 }
 0x88b   :  { %4897 = vpow2.f32 %v3084_v55  ;;  %8327 = vst [vmem:[#allocation60_spill] sm:$0xff] %v7518_v1 }
 0x88c   :  { %4899 = vpow2.f32 %v3086_v47  ;;  %v3114_v23 = vpop.xlane.xlu0 %3113 }
 0x88d   :  { %v7520_v62 = vpop.eup %4889  ;;  %4901 = vrcp.f32 %v3111_v13  ;;  %v8329_v13 = vpack.c.bf16 %v7488_v41, %v7485_v7 }
 0x88e   :  { %v7522_v26 = vpop.eup %4891  ;;  %4903 = vrcp.f32 %v3108_v49 }
 0x88f   :  { %v7524_v9 = vpop.eup %4893  ;;  %v3175_v46 = vadd.f32 %v7522_v26, %v7520_v62  ;;  %4905 = vrcp.f32 %v3117_v3 }
 0x890   :  { %v7528_v63 = vpop.eup %4895  ;;  %v3178_v17 = vadd.f32 %v7524_v9, %v7518_v1  ;;  %v3120_v55 = vpop.xlane.xlu0 %3119  ;;  %4907 = vrcp.f32 %v3114_v23 }
 0x891   :  { %3176 = vadd.xlane.f32.xlu1 %v3175_v46  ;;  %v3163_v42 = vadd.f32 %v7528_v63, %v7516_v14 }
 0x892   :  { %v3123_v40 = vpop.xlane.xlu1 %3122 }
 0x893   :  { %4909 = vrcp.f32 %v3123_v40 }
 0x894   :  { %4911 = vrcp.f32 %v3120_v55 }
 0x895   :  { %v7534_v48 = vpop.eup %4897  ;;  %3179 = vadd.xlane.f32.xlu1 %v3178_v17  ;;  %3164 = vadd.xlane.f32.xlu0 %v3163_v42  ;;  %v8328_v42 = vld [vmem:[#allocation35_spill] sm:$0xff] }
 0x896   :  { %v7536_v33 = vpop.eup %4899  ;;  %v3126_v47 = vpop.xlane.xlu0 %3125 }
 0x897   :  { %v3181_v27 = vadd.f32 %v7536_v33, %v7534_v48  ;;  %v4902_v1 = vpop.eup %4901 }
 0x898   :  { %v4904_v49 = vpop.eup %4903  ;;  %v3230_v23 = vmul.f32 %v4902_v1, %v7296_v11 }
 0x899   :  { %3182 = vadd.xlane.f32.xlu1 %v3181_v27  ;;  %v3229_v56 = vmul.f32 %v4904_v49, %v7290_v58  ;;  %v3228_v41 = vmul.f32 %v4904_v49, %v7285_v2 }
 0x89a   :  { %v3129_v10 = vpop.xlane.xlu1 %3128 }
 0x89b   :  { %4913 = vrcp.f32 %v3129_v10 }
 0x89c   :  { %4915 = vrcp.f32 %v3126_v47 }
 0x89e   :  { %v3132_v35 = vpop.xlane.xlu1 %3131 }
 0x8a2   :  { %v3135_v57 = vpop.xlane.xlu1 %3134 }
 0x8a3   :  { %4917 = vrcp.f32 %v3135_v57 }
 0x8a6   :  { %v7540_v53 = vpop.xlane.xlu1 %3137 }
 0x8aa   :  { %v7542_v61 = vpop.xlane.xlu1 %3140 }
 0x8ae   :  { %v7544_v36 = vpop.xlane.xlu1 %3143 }
 0x8b2   :  { %v7546_v46 = vpop.xlane.xlu1 %3146 }
 0x8b6   :  { %v7553_v27 = vpop.xlane.xlu1 %3149 }
 0x8ba   :  { %v7555_v24 = vpop.xlane.xlu1 %3152 }
 0x8be   :  { %v7561_v50 = vpop.xlane.xlu1 %3155 }
 0x8e8   :  { %v2279_v17 = vpop.trf.xlu0 }
 0x8e9   :  { %4175 = vmatmul.mubr.msk.f32.vlgmr.msra.gmra.mrb[70].mxu0 %vm1266_vm13, %v2279_v17  ;;  %v3231_v17 = vmul.f32 %v4902_v1, %v7301_v22 }
 0x8ea   :  { %4442 = vmatpush1.bf16.xpose.msra.mxu0 %v4441_v15  ;;  %3344 = vmatprep.mubr.f32.mxu0 %v8328_v42  ;;  %v7565_v42 = vpop.xlane.xlu1 %3158 }
 0x8eb   :  { %4444 = vmatprep.subr.bf16.mxu0 %v4443_v34  ;;  %v4451_v15 = vpack.c.bf16 %v3231_v17, %v3229_v56  ;;  %v4906_v34 = vpop.eup %4905 }
 0x8ec   :  { %v4908_v3 = vpop.eup %4907  ;;  %v3235_v7 = vmul.f32 %v4906_v34, %v7320_v16  ;;  %v3234_v11 = vmul.f32 %v4906_v34, %v7315_v31 }
 0x8ed   :  { %v3233_v22 = vmul.f32 %v4908_v3, %v7309_v25  ;;  %v4910_v40 = vpop.eup %4909  ;;  %v3232_v16 = vmul.f32 %v4908_v3, %v7307_v18 }
 0x8ee   :  { %v7570_v55 = vpop.xlane.xlu1 %3161  ;;  %v3239_v1 = vmul.f32 %v4910_v40, %v7336_v20  ;;  %v3238_v17 = vmul.f32 %v4910_v40, %v7334_v28 }
 0x8ef   :  { %v4455_v58 = vpack.c.bf16 %v3235_v7, %v3233_v22  ;;  %v4457_v10 = vpack.c.bf16 %v3234_v11, %v3232_v16  ;;  %v8333_v11 = vld [vmem:[#allocation43_spill] sm:$0xff] }
 0x8f2   :  { %4446 = vmatpush1.bf16.xpose.msra.mxu0 %v8329_v13 }
 0x8f3   :  { %4448 = vmatprep.subr.bf16.mxu0 %v4447_v4  ;;  %v4453_v4 = vpack.c.bf16 %v3230_v23, %v3228_v41  ;;  %v8330_v41 = vld [vmem:[#allocation40_spill] sm:$0xff] }
 0x8fa   :  { %4450 = vmatpush1.bf16.xpose.msra.mxu0 %v4449_v39  ;;  %v4912_v39 = vpop.eup %4911 }
 0x8fb   :  { %4452 = vmatprep.subr.bf16.mxu0 %v4451_v15  ;;  %v3237_v25 = vmul.f32 %v4912_v39, %v7328_v59  ;;  %v4914_v49 = vpop.eup %4913  ;;  %v3236_v20 = vmul.f32 %v4912_v39, %v7326_v38 }
 0x8fc   :  { %v4916_v47 = vpop.eup %4915  ;;  %v3243_v31 = vmul.f32 %v4914_v49, %v7352_v52  ;;  %v3242_v28 = vmul.f32 %v4914_v49, %v7350_v45  ;;  %v8336_v49 = vld [vmem:[#allocation38_spill] sm:$0xff] }
 0x8fd   :  { %v4459_v13 = vpack.c.bf16 %v3239_v1, %v3237_v25  ;;  %v3241_v18 = vmul.f32 %v4916_v47, %v7344_v19  ;;  %v4461_v57 = vpack.c.bf16 %v3238_v17, %v3236_v20  ;;  %v4918_v59 = vpop.eup %4917  ;;  %v3240_v19 = vmul.f32 %v4916_v47, %v7342_v30  ;;  %v8335_v25 = vld [vmem:[#allocation39_spill] sm:$0xff]  ;;  %v8337_v20 = vld [vmem:[#allocation42_spill] sm:$0xff] }
 0x8fe   :  { %v3247_v38 = vmul.f32 %v4918_v59, %v7368_v44 }
 0x8ff   :  { %v4463_v56 = vpack.c.bf16 %v3243_v31, %v3241_v18 }
 0x902   :  { %4454 = vmatpush1.bf16.xpose.msra.mxu0 %v4453_v4  ;;  %v8331_v4 = vld [vmem:[#allocation41_spill] sm:$0xff] }
 0x903   :  { %4456 = vmatprep.subr.bf16.mxu0 %v4455_v58  ;;  %v8332_v58 = vld [vmem:[#allocation36_spill] sm:$0xff] }
 0x908   :  { %v3435_v2 = vpop.xlane.xlu1 %3434 }
 0x909   :  { %4919 = vrcp.f32 %v3435_v2  ;;  %v8334_v2 = vld [vmem:[#allocation27_spill] sm:$0xff] }
 0x90a   :  { %4921 = vrcp.f32 %v3132_v35  ;;  %4458 = vmatpush1.bf16.xpose.msra.mxu0 %v4457_v10 }
 0x90b   :  { %4460 = vmatprep.subr.bf16.mxu0 %v4459_v13  ;;  %4923 = vrcp.f32 %v7542_v61  ;;  %v4465_v61 = vpack.c.bf16 %v3242_v28, %v3240_v19 }
 0x90c   :  { %4925 = vrcp.f32 %v7540_v53  ;;  %v3246_v53 = vmul.f32 %v4918_v59, %v7366_v8  ;;  %v8338_v59 = vld [vmem:[#allocation62_spill] sm:$0xff] }
 0x90d   :  { %4927 = vrcp.f32 %v7546_v46 }
 0x90e   :  { %4929 = vrcp.f32 %v7544_v36 }
 0x90f   :  { %4931 = vrcp.f32 %v7555_v24  ;;  %v3168_v24 = vpop.xlane.xlu1 %3167 }
 0x910   :  { %4933 = vrcp.f32 %v7553_v27 }
 0x911   :  { %4935 = vrcp.f32 %v7565_v42 }
 0x912   :  { %4462 = vmatpush1.bf16.xpose.msra.mxu0 %v4461_v57  ;;  %4937 = vrcp.f32 %v7561_v50 }
 0x913   :  { %v4920_v15 = vpop.eup %4919  ;;  %4464 = vmatprep.subr.bf16.mxu0 %v4463_v56  ;;  %v3171_v13 = vpop.xlane.xlu1 %3170 }
 0x914   :  { %v3437_v35 = vmul.f32 %v4920_v15, %v7460_v21  ;;  %v4922_v34 = vpop.eup %4921  ;;  %v8339_v15 = vld [vmem:[#allocation54_spill] sm:$0xff] }
 0x915   :  { %v3245_v52 = vmul.f32 %v4922_v34, %v7360_v60  ;;  %v4924_v23 = vpop.eup %4923  ;;  %v3244_v44 = vmul.f32 %v4922_v34, %v7358_v43  ;;  %v8340_v34 = vld [vmem:[#allocation56_spill] sm:$0xff] }
 0x916   :  { %3438 = vxpose.xlu1.b32.start.end [1/1] (short) (narrow) %v3437_v35, 8  ;;  %v4926_v21 = vpop.eup %4925  ;;  %v3251_v45 = vmul.f32 %v4924_v23, %v7384_v0  ;;  %v3250_v22 = vmul.f32 %v4924_v23, %v8330_v41 }
 0x917   :  { %v4467_v3 = vpack.c.bf16 %v3247_v38, %v3245_v52  ;;  %v3249_v30 = vmul.f32 %v4926_v21, %v7376_v12  ;;  %v4469_v60 = vpack.c.bf16 %v3246_v53, %v3244_v44  ;;  %v4928_v7 = vpop.eup %4927  ;;  %v3248_v0 = vmul.f32 %v4926_v21, %v8331_v4  ;;  %v3174_v57 = vpop.xlane.xlu1 %3173  ;;  %v8342_v53 = vld [vmem:[#allocation55_spill] sm:$0xff] }
 0x918   :  { %v4930_v36 = vpop.eup %4929  ;;  %v3255_v8 = vmul.f32 %v4928_v7, %v7400_v51  ;;  %v3254_v1 = vmul.f32 %v4928_v7, %v8333_v11 }
 0x919   :  { %v4471_v46 = vpack.c.bf16 %v3251_v45, %v3249_v30  ;;  %v3253_v43 = vmul.f32 %v4930_v36, %v8332_v58  ;;  %v4473_v12 = vpack.c.bf16 %v3250_v22, %v3248_v0  ;;  %v4932_v39 = vpop.eup %4931  ;;  %v3252_v10 = vmul.f32 %v4930_v36, %v8335_v25  ;;  %v8343_v30 = vld [vmem:[#allocation64_spill] sm:$0xff]  ;;  %v8344_v0 = vld [vmem:[#allocation63_spill] sm:$0xff] }
 0x91a   :  { %4466 = vmatpush1.bf16.xpose.msra.mxu0 %v4465_v61  ;;  %v4934_v27 = vpop.eup %4933  ;;  %v3259_v51 = vmul.f32 %v4932_v39, %v8334_v2  ;;  %v3258_v18 = vmul.f32 %v4932_v39, %v8337_v20 }
 0x91b   :  { %4468 = vmatprep.subr.bf16.mxu0 %v4467_v3  ;;  %v4475_v40 = vpack.c.bf16 %v3255_v8, %v3253_v43  ;;  %v3257_v47 = vmul.f32 %v4934_v27, %v8336_v49  ;;  %v4477_v42 = vpack.c.bf16 %v3254_v1, %v3252_v10  ;;  %v4936_v31 = vpop.eup %4935  ;;  %v3256_v35 = vmul.f32 %v4934_v27, %v8339_v15  ;;  %v8341_v3 = vld [vmem:[#allocation57_spill] sm:$0xff]  ;;  %v8352_v15 = vld [vmem:[#allocation23_spill] sm:$0xff] }
 0x91c   :  { %v4938_v50 = vpop.eup %4937  ;;  %v3263_v56 = vmul.f32 %v4936_v31, %v8338_v59  ;;  %v3262_v23 = vmul.f32 %v4936_v31, %v8341_v3  ;;  %v8350_v31 = vld [vmem:[#allocation34_spill] sm:$0xff] }
 0x91d   :  { %v4479_v17 = vpack.c.bf16 %v3259_v51, %v3257_v47  ;;  %v3261_v28 = vmul.f32 %v4938_v50, %v8340_v34  ;;  %v4481_v38 = vpack.c.bf16 %v3258_v18, %v3256_v35  ;;  %v3260_v45 = vmul.f32 %v4938_v50, %v8342_v53  ;;  %v8346_v47 = vld [vmem:[#allocation31_spill] sm:$0xff]  ;;  %v8353_v34 = vld [vmem:[#allocation24_spill] sm:$0xff] }
 0x91e   :  { %v3177_v19 = vpop.xlane.xlu1 %3176 }
 0x91f   :  { %v4483_v52 = vpack.c.bf16 %v3263_v56, %v3261_v28 }
 0x922   :  { %4470 = vmatpush1.bf16.xpose.msra.mxu0 %v4469_v60  ;;  %v3165_v16 = vpop.xlane.xlu0 %3164  ;;  %v3180_v44 = vpop.xlane.xlu1 %3179 }
 0x923   :  { %4472 = vmatprep.subr.bf16.mxu0 %v4471_v46  ;;  %4939 = vrcp.f32 %v3165_v16  ;;  %v4485_v46 = vpack.c.bf16 %v3262_v23, %v3260_v45 }
 0x924   :  { %4941 = vrcp.f32 %v7570_v55 }
 0x925   :  { %4943 = vrcp.f32 %v3171_v13 }
 0x926   :  { %4945 = vrcp.f32 %v3168_v24  ;;  %v3183_v8 = vpop.xlane.xlu1 %3182 }
 0x927   :  { %4947 = vrcp.f32 %v3177_v19 }
 0x928   :  { %4949 = vrcp.f32 %v3174_v57  ;;  %v8351_v57 = vld [vmem:[#allocation37_spill] sm:$0xff] }
 0x929   :  { %4951 = vrcp.f32 %v3183_v8 }
 0x92a   :  { %4474 = vmatpush1.bf16.xpose.msra.mxu0 %v4473_v12  ;;  %4953 = vrcp.f32 %v3180_v44 }
 0x92b   :  { %4476 = vmatprep.subr.bf16.mxu0 %v4475_v40 }
 0x92d   :  { %v4940_v61 = vpop.eup %4939 }
 0x92e   :  { %v4942_v55 = vpop.eup %4941  ;;  %v3267_v21 = vmul.f32 %v4940_v61, %v7528_v63  ;;  %v3266_v22 = vmul.f32 %v4940_v61, %v7516_v14  ;;  %v8355_v61 = vld [vmem:[#allocation21_spill] sm:$0xff] }
 0x92f   :  { %v3265_v60 = vmul.f32 %v4942_v55, %v8343_v30  ;;  %v4944_v36 = vpop.eup %4943  ;;  %v3264_v63 = vmul.f32 %v4942_v55, %v8344_v0 }
 0x930   :  { %v4946_v41 = vpop.eup %4945  ;;  %v3271_v4 = vmul.f32 %v4944_v36, %v7492_v5  ;;  %v3270_v39 = vmul.f32 %v4944_v36, %v7490_v6 }
 0x931   :  { %v4487_v7 = vpack.c.bf16 %v3267_v21, %v3265_v60  ;;  %v3269_v58 = vmul.f32 %v4946_v41, %v7464_v29  ;;  %v4489_v43 = vpack.c.bf16 %v3266_v22, %v3264_v63  ;;  %v4948_v24 = vpop.eup %4947  ;;  %v3268_v14 = vmul.f32 %v4946_v41, %v7456_v37 }
 0x932   :  { %4478 = vmatpush1.bf16.xpose.msra.mxu0 %v4477_v42  ;;  %v4950_v40 = vpop.eup %4949  ;;  %v3275_v27 = vmul.f32 %v4948_v24, %v7522_v26  ;;  %v3274_v2 = vmul.f32 %v4948_v24, %v7520_v62  ;;  %v8347_v62 = vld [vmem:[#allocation32_spill] sm:$0xff]  ;;  %v3557_v42 = vstv %s4138_s23 }
 0x933   :  { %4480 = vmatprep.subr.bf16.mxu0 %v4479_v17  ;;  %v4491_v12 = vpack.c.bf16 %v3271_v4, %v3269_v58  ;;  %v3273_v5 = vmul.f32 %v4950_v40, %v7500_v54  ;;  %v4493_v11 = vpack.c.bf16 %v3270_v39, %v3268_v14  ;;  %v4952_v16 = vpop.eup %4951  ;;  %v3272_v25 = vmul.f32 %v4950_v40, %v7476_v32  ;;  %v8345_v54 = vld [vmem:[#allocation60_spill] sm:$0xff] }
 0x934   :  { %v4954_v29 = vpop.eup %4953  ;;  %v3279_v51 = vmul.f32 %v4952_v16, %v7536_v33  ;;  %v3278_v37 = vmul.f32 %v4952_v16, %v7534_v48  ;;  %v8348_v33 = vld [vmem:[#allocation29_spill] sm:$0xff]  ;;  %v8349_v32 = vmov 0.0   ;;  %v3548_v48 = vstv %s1194_s21  ;;  %v8357_v58 = vld [vmem:[#allocation8_spill] sm:$0xff] }
 0x935   :  { %v4495_v1 = vpack.c.bf16 %v3275_v27, %v3273_v5  ;;  %v3277_v6 = vmul.f32 %v4954_v29, %v7524_v9  ;;  %v4497_v10 = vpack.c.bf16 %v3274_v2, %v3272_v25  ;;  %v3276_v13 = vmul.f32 %v4954_v29, %v8345_v54  ;;  %v8359_v2 = vld [vmem:[#allocation52_spill] sm:$0xff] }
 0x936   :  { %v3549_v50 = vmul.f32 %v3548_v48, %v8350_v31  ;;  %v3550_v59 = vmul.f32 %v3548_v48, %v8351_v57 }
 0x937   :  { %v4499_v26 = vpack.c.bf16 %v3279_v51, %v3277_v6  ;;  %v4501_v49 = vpack.c.bf16 %v3278_v37, %v3276_v13  ;;  %v8360_v6 = vld [vmem:[#allocation53_spill] sm:$0xff] }
 0x938   :  { %v3554_v55 = vadd.f32 %v3550_v59, %v8355_v61 }
 0x93a   :  { %4482 = vmatpush1.bf16.xpose.msra.mxu0 %v4481_v38  ;;  %v8354_v38 = vld [vmem:[#allocation20_spill] sm:$0xff] }
 0x93b   :  { %4484 = vmatprep.subr.bf16.mxu0 %v4483_v52  ;;  %v3553_v19 = vadd.f32 %v3549_v50, %v8354_v38 }
 0x942   :  { %4486 = vmatpush1.bf16.xpose.msra.mxu0 %v4485_v46 }
 0x943   :  { %4488 = vmatprep.subr.bf16.mxu0 %v4487_v7 }
 0x94a   :  { %4490 = vmatpush1.bf16.xpose.msra.mxu0 %v4489_v43 }
 0x94b   :  { %4492 = vmatprep.subr.bf16.mxu0 %v4491_v12  ;;  %v8358_v12 = vld [vmem:[#allocation6_spill] sm:$0xff] }
 0x952   :  { %4494 = vmatpush1.bf16.xpose.msra.mxu0 %v4493_v11 }
 0x953   :  { %4496 = vmatprep.subr.bf16.mxu0 %v4495_v1 }
 0x95a   :  { %4498 = vmatpush1.bf16.xpose.msra.mxu0 %v4497_v10 }
 0x95b   :  { %4500 = vmatprep.subr.bf16.mxu0 %v4499_v26 }
 0x962   :  { %4502 = vmatpush1.bf16.xpose.msra.mxu0 %v4501_v49 }
 0x963   :  { %4210 = vmatprep.subr.msk.mxu0 %vm1015_vm10, %v8346_v47 }
 0x969   :  { %3345 = vmatmul.mubr.f32.vlgmr.msra.gmra.mrb[72].mxu0 %v8347_v62 }
 0x96a   :  { %4211 = vmatpush1.msk.msra.mxu0 %vm1015_vm10, %v8348_v33  ;;  %3541 = vmatprep.mubr.f32.mxu0 %v8349_v32 }
 0x996   :  { %v3454_v9 = vpop.trf.xlu1 }
 0x997   :  { %4212 = vmatmul.mubr.msk.f32.vlgmr.msra.gmra.mrb[74].mxu0 %vm1266_vm13, %v3454_v9 }
 0x998   :  { %3850 = vmatprep.mubr.f32.mxu0 %v8349_v32 }
 0x9bc   :  { %v2368_v17 = vpop.f32.mrb[70].mxu0 }
 0x9bd   :  { %v3558_v20 = vmul.f32 %v3557_v42, %v2368_v17  ;;  %v2370_v18 = vpop.f32.mrb[71].mxu0 }
 0x9be   :  { %v3559_v56 = vmul.f32 %v3557_v42, %v2370_v18 }
 0x9bf   :  { %v3562_v35 = vadd.f32 %v3558_v20, %v8352_v15 }
 0x9c0   :  { %v3563_v28 = vadd.f32 %v3559_v56, %v8353_v34 }
 0x9c1   :  { %v3570_v52 = vrot.slane %v3562_v35, 4  ;;  %v8361_v35 = vld [vmem:[#allocation10_spill] sm:$0xff] }
 0x9c2   :  { %v3571_v3 = vrot.slane %v3563_v28, 4 }
 0x9c3   :  { %v7643_v23 = vsel %vm1015_vm10, %v3553_v19, %v3570_v52  ;;  %v8362_v52 = vld [vmem:[#allocation12_spill] sm:$0xff] }
 0x9c4   :  { %v7646_v21 = vsel %vm1015_vm10, %v3554_v55, %v3571_v3  ;;  %3582 = vrot.lane.b32.xlu0 %v7643_v23, %s4982_s29  ;;  %v8363_v3 = vld [vmem:[#allocation18_spill] sm:$0xff] }
 0x9c5   :  { %3600 = vrot.lane.b32.xlu1 %v7646_v21, %s4983_s26 }
 0x9c8   :  { %3598 = vrot.lane.b32.xlu0 %v7643_v23, %s4983_s26 }
 0x9c9   :  { %3632 = vrot.lane.b32.xlu1 %v7646_v21, %s4985_s28 }
 0x9cc   :  { %3614 = vrot.lane.b32.xlu0 %v7643_v23, %s4984_s27 }
 0x9cd   :  { %3648 = vrot.lane.b32.xlu1 %v7646_v21, %s4986_s5 }
 0x9d0   :  { %3630 = vrot.lane.b32.xlu0 %v7643_v23, %s4985_s28 }
 0x9d1   :  { %3664 = vrot.lane.b32.xlu1 %v7646_v21, %s4987_s18 }
 0x9d4   :  { %3646 = vrot.lane.b32.xlu0 %v7643_v23, %s4986_s5 }
 0x9d5   :  { %3680 = vrot.lane.b32.xlu1 %v7646_v21, %s4988_s19 }
 0x9d8   :  { %3662 = vrot.lane.b32.xlu0 %v7643_v23, %s4987_s18 }
 0x9d9   :  { %3696 = vrot.lane.b32.xlu1 %v7646_v21, %s4989_s22 }
 0x9dc   :  { %3678 = vrot.lane.b32.xlu0 %v7643_v23, %s4988_s19 }
 0x9e0   :  { %3584 = vrot.lane.b32.xlu0 %v7646_v21, %s4982_s29 }
 0x9e4   :  { %3616 = vrot.lane.b32.xlu0 %v7646_v21, %s4984_s27 }
 0xa36   :  { %v7678_v53 = vpop.permute.xlu0 %3582 }
 0xa37   :  { %v3601_v22 = vpop.permute.xlu1 %3600 }
 0xa3a   :  { %v7680_v45 = vpop.permute.xlu0 %3598 }
 0xa3b   :  { %v3608_v4 = vsel %vm175_vm1, %v7680_v45, %v3601_v22  ;;  %v3633_v13 = vpop.permute.xlu1 %3632 }
 0xa3c   :  { %v3346_v44 = vpop.f32.mrb[72].mxu0  ;;  %v3611_v43 = vmul.f32 %v3608_v4, %v8357_v58  ;;  %v8364_v4 = vld [vmem:[#allocation46_spill] sm:$0xff] }
 0xa3d   :  { %v3348_v30 = vpop.f32.mrb[73].mxu0  ;;  %v3551_v27 = vmul.f32 %v3548_v48, %v3346_v44 }
 0xa3e   :  { %v7682_v60 = vpop.permute.xlu0 %3614  ;;  %v3552_v11 = vmul.f32 %v3548_v48, %v3348_v30 }
 0xa3f   :  { %v3555_v51 = vadd.f32 %v3551_v27, %v8359_v2  ;;  %v3649_v49 = vpop.permute.xlu1 %3648 }
 0xa40   :  { %v3556_v10 = vadd.f32 %v3552_v11, %v8360_v6  ;;  %v8369_v6 = vld [vmem:[#allocation47_spill] sm:$0xff] }
 0xa42   :  { %v7684_v46 = vpop.permute.xlu0 %3630 }
 0xa43   :  { %v3640_v56 = vsel %vm337_vm3, %v7684_v46, %v3633_v13 }
 0xa44   :  { %v3643_v61 = vmul.f32 %v3640_v56, %v8362_v52 }
 0xa46   :  { %v7686_v7 = vpop.permute.xlu0 %3646 }
 0xa47   :  { %v3656_v15 = vsel %vm418_vm4, %v7686_v7, %v3649_v49 }
 0xa48   :  { %v7768_v44 = vmul.f32 %v3656_v15, %v8363_v3  ;;  %v8375_v3 = vld [vmem:[#allocation11_spill] sm:$0xff] }
 0xa4a   :  { %v7688_v36 = vpop.permute.xlu0 %3662 }
 0xa4e   :  { %v7690_v41 = vpop.permute.xlu0 %3678 }
 0xa52   :  { %v3585_v0 = vpop.permute.xlu0 %3584 }
 0xa53   :  { %v3592_v63 = vsel %vm94_vm0, %v7678_v53, %v3585_v0 }
 0xa54   :  { %v3595_v24 = vmul.f32 %v3592_v63, %v8358_v12  ;;  %v8365_v12 = vld [vmem:[#allocation44_spill] sm:$0xff] }
 0xa56   :  { %v4503_v40 = vpack.c.bf16 %v3611_v43, %v3595_v24  ;;  %v3617_v62 = vpop.permute.xlu0 %3616 }
 0xa57   :  { %v3624_v57 = vsel %vm256_vm2, %v7682_v60, %v3617_v62 }
 0xa58   :  { %4504 = vmatprep.subr.bf16.mxu1 %v4503_v40  ;;  %v3627_v34 = vmul.f32 %v3624_v57, %v8361_v35 }
 0xa5a   :  { %v4507_v43 = vpack.c.bf16 %v3643_v61, %v3627_v34 }
 0xa6a   :  { %v3543_v39 = vpop.f32.mrb[74].mxu0 }
 0xa6b   :  { %v3560_v14 = vmul.f32 %v3557_v42, %v3543_v39  ;;  %v3545_v5 = vpop.f32.mrb[75].mxu0 }
 0xa6c   :  { %v3561_v1 = vmul.f32 %v3557_v42, %v3545_v5 }
 0xa6d   :  { %v3564_v16 = vadd.f32 %v3560_v14, %v8348_v33 }
 0xa6e   :  { %v3565_v29 = vadd.f32 %v3561_v1, %v8346_v47  ;;  %v3665_v47 = vpop.permute.xlu1 %3664 }
 0xa6f   :  { %v3572_v25 = vrot.slane %v3564_v16, 4  ;;  %v7773_v30 = vsel %vm499_vm5, %v7688_v36, %v3665_v47  ;;  %v8366_v16 = vld [vmem:[#allocation7_spill] sm:$0xff] }
 0xa70   :  { %v3573_v26 = vrot.slane %v3565_v29, 4  ;;  %v8367_v29 = vld [vmem:[#allocation45_spill] sm:$0xff] }
 0xa71   :  { %v7705_v37 = vsel %vm1015_vm10, %v3555_v51, %v3572_v25  ;;  %v8368_v51 = vld [vmem:[#allocation9_spill] sm:$0xff] }
 0xa72   :  { %v7708_v54 = vsel %vm1015_vm10, %v3556_v10, %v3573_v26  ;;  %3586 = vrot.lane.b32.xlu0 %v7705_v37, %s4982_s29  ;;  %v7744_v9 = vpop.permute.xlu1 %3680  ;;  %v8370_v26 = vld [vmem:[#allocation14_spill] sm:$0xff] }
 0xa73   :  { %3636 = vrot.lane.b32.xlu1 %v7708_v54, %s4985_s28 }
 0xa76   :  { %3602 = vrot.lane.b32.xlu0 %v7705_v37, %s4983_s26  ;;  %v7746_v42 = vpop.permute.xlu1 %3696 }
 0xa77   :  { %3652 = vrot.lane.b32.xlu1 %v7708_v54, %s4986_s5 }
 0xa7a   :  { %3618 = vrot.lane.b32.xlu0 %v7705_v37, %s4984_s27 }
 0xa7b   :  { %3668 = vrot.lane.b32.xlu1 %v7708_v54, %s4987_s18 }
 0xa7e   :  { %3634 = vrot.lane.b32.xlu0 %v7705_v37, %s4985_s28 }
 0xa7f   :  { %3684 = vrot.lane.b32.xlu1 %v7708_v54, %s4988_s19 }
 0xa82   :  { %3650 = vrot.lane.b32.xlu0 %v7705_v37, %s4986_s5 }
 0xa83   :  { %3700 = vrot.lane.b32.xlu1 %v7708_v54, %s4989_s22 }
 0xa86   :  { %3666 = vrot.lane.b32.xlu0 %v7705_v37, %s4987_s18 }
 0xa8a   :  { %3588 = vrot.lane.b32.xlu0 %v7708_v54, %s4982_s29 }
 0xa8e   :  { %3604 = vrot.lane.b32.xlu0 %v7708_v54, %s4983_s26 }
 0xa92   :  { %3620 = vrot.lane.b32.xlu0 %v7708_v54, %s4984_s27 }
 0xa96   :  { %3682 = vrot.lane.b32.xlu0 %v7705_v37, %s4988_s19 }
 0xa9a   :  { %3694 = vrot.lane.b32.xlu0 %v7643_v23, %s4989_s22 }
 0xa9e   :  { %3698 = vrot.lane.b32.xlu0 %v7705_v37, %s4989_s22 }
 0xae4   :  { %v3587_v33 = vpop.permute.xlu0 %3586 }
 0xae5   :  { %v3637_v31 = vpop.permute.xlu1 %3636  ;;  %v3591_v55 = vsel %vm94_vm0, %v3585_v0, %v3587_v33 }
 0xae6   :  { %v3596_v24 = vmul.f32 %v3591_v55, %v8365_v12  ;;  %v3641_v40 = vsel %vm337_vm3, %v3637_v31, %v7684_v46 }
 0xae8   :  { %v3603_v48 = vpop.permute.xlu0 %3602 }
 0xae9   :  { %v3653_v18 = vpop.permute.xlu1 %3652  ;;  %v3607_v28 = vsel %vm175_vm1, %v3601_v22, %v3603_v48  ;;  %v3688_v22 = vsel %vm580_vm6, %v7690_v41, %v7744_v9 }
 0xaea   :  { %v3612_v63 = vmul.f32 %v3607_v28, %v8364_v4  ;;  %v3657_v39 = vsel %vm418_vm4, %v3653_v18, %v7686_v7 }
 0xaec   :  { %v3619_v17 = vpop.permute.xlu0 %3618 }
 0xaed   :  { %v7762_v38 = vpop.permute.xlu1 %3668 }
 0xaf0   :  { %v3635_v50 = vpop.permute.xlu0 %3634 }
 0xaf1   :  { %v3638_v27 = vsel %vm337_vm3, %v3635_v50, %v3637_v31  ;;  %v3639_v5 = vsel %vm337_vm3, %v3633_v13, %v3635_v50  ;;  %v3685_v1 = vpop.permute.xlu1 %3684  ;;  %v3642_v13 = vmul.f32 %v3641_v40, %v8370_v26  ;;  %v8372_v50 = vld [vmem:[#allocation50_spill] sm:$0xff] }
 0xaf2   :  { %v3644_v57 = vmul.f32 %v3639_v5, %v8372_v50  ;;  %v3689_v28 = vsel %vm580_vm6, %v3685_v1, %v7690_v41  ;;  %v4964_v50 = vld [vmem:[%s7976_s4 + $0x20] ss:$0 sm:$0xff] }
 0xaf4   :  { %v3651_v20 = vpop.permute.xlu0 %3650 }
 0xaf5   :  { %v3654_v55 = vsel %vm418_vm4, %v3651_v20, %v3653_v18 }
 0xaf8   :  { %v7751_v59 = vpop.permute.xlu0 %3666 }
 0xaf9   :  { %v3671_v12 = vsel %vm499_vm5, %v3665_v47, %v7751_v59 }
 0xafc   :  { %v3589_v19 = vpop.permute.xlu0 %3588 }
 0xafd   :  { %v3590_v58 = vsel %vm94_vm0, %v3587_v33, %v3589_v19  ;;  %v3593_v0 = vsel %vm94_vm0, %v3589_v19, %v7678_v53  ;;  %v3655_v53 = vsel %vm418_vm4, %v3649_v49, %v3651_v20  ;;  %v4527_v33 = vpack.c.bf16 %v3612_v63, %v3596_v24  ;;  %v8371_v49 = vld [vmem:[#allocation13_spill] sm:$0xff]  ;;  %v8378_v20 = vld [vmem:[#allocation28_spill] sm:$0xff]  ;;  %vm4520_vm0 = vmpackc.low %vm717_vm8, %vm4992_vm15 }
 0xafe   :  { %v3594_v7 = vmul.f32 %v3593_v0, %v8366_v16  ;;  %v3597_v2 = vmul.f32 %v3590_v58, %v8367_v29  ;;  %v3661_v31 = vmul.f32 %v3657_v39, %v8371_v49  ;;  %v8374_v19 = vld [vmem:[#allocation17_spill] sm:$0xff]  ;;  %v8377_v0 = vld [vmem:[#allocation48_spill] sm:$0xff]  ;;  %v3693_v18 = vmul.f32 %v3689_v28, %v8378_v20 }
 0xaff   :  { %v3659_v52 = vmul.f32 %v3655_v53, %v8374_v19  ;;  %v8376_v63 = vld [vmem:[#allocation49_spill] sm:$0xff]  ;;  %v4513_v16 = vpack.c.bf16 %v7768_v44, %v7643_v23  ;;  %v8385_v44 = vld [vmem:[#allocation26_spill] sm:$0xff]  ;;  %v8386_v49 = vld [vmem:[#allocation16_spill] sm:$0xff] }
 0xb00   :  { %v3605_v14 = vpop.permute.xlu0 %3604  ;;  %v4966_v19 = vld [vmem:[%s7976_s4 + $0x30] ss:$0 sm:$0xff] }
 0xb01   :  { %v3606_v11 = vsel %vm175_vm1, %v3603_v48, %v3605_v14  ;;  %v3609_v46 = vsel %vm175_vm1, %v3605_v14, %v7680_v45  ;;  %v3623_v48 = vsel %vm256_vm2, %v3617_v62, %v3619_v17  ;;  %v8373_v45 = vld [vmem:[#allocation51_spill] sm:$0xff]  ;;  %vm3711_vm1 = vcmask 596992  }
 0xb02   :  { %v3610_v25 = vmul.f32 %v3609_v46, %v8368_v51  ;;  %v3613_v10 = vmul.f32 %v3606_v11, %v8369_v6  ;;  %v3645_v56 = vmul.f32 %v3638_v27, %v8373_v45  ;;  %v3628_v41 = vmul.f32 %v3623_v48, %v8377_v0  ;;  %v8379_v14 = vld [vmem:[#allocation15_spill] sm:$0xff]  ;;  %v3701_v51 = vpop.permute.xlu1 %3700  ;;  %v8384_v6 = vld [vmem:[#allocation25_spill] sm:$0xff] }
 0xb03   :  { %v3660_v5 = vmul.f32 %v3654_v55, %v8379_v14 }
 0xb04   :  { %v4505_v15 = vpack.c.bf16 %v3610_v25, %v3594_v7  ;;  %v3621_v35 = vpop.permute.xlu0 %3620  ;;  %v4525_v34 = vpack.c.bf16 %v3613_v10, %v3597_v2  ;;  %v4531_v27 = vpack.c.bf16 %v3644_v57, %v3628_v41  ;;  %v8382_v7 = vld [vmem:[#allocation33_spill] sm:$0xff]  ;;  %v8383_v2 = vld [vmem:[#allocation19_spill] sm:$0xff]  ;;  %v3674_v10 = vmul.f32 %v7773_v30, %v8384_v6 }
 0xb05   :  { %v3622_v61 = vsel %vm256_vm2, %v3619_v17, %v3621_v35  ;;  %v3625_v62 = vsel %vm256_vm2, %v3621_v35, %v7682_v60  ;;  %v4533_v17 = vpack.c.bf16 %v3661_v31, %v7708_v54  ;;  %v3673_v60 = vsel %vm499_vm5, %v7762_v38, %v7688_v36  ;;  %v8380_v54 = vld [vmem:[#allocation22_spill] sm:$0xff] }
 0xb06   :  { %v3626_v4 = vmul.f32 %v3625_v62, %v8375_v3  ;;  %v3629_v58 = vmul.f32 %v3622_v61, %v8376_v63  ;;  %4506 = vmatpush1.bf16.msra.mxu1 %v4505_v15  ;;  %4526 = vmatprep.subr.bf16.mxu0 %v4525_v34  ;;  %v3675_v53 = vmul.f32 %v3671_v12, %v8380_v54  ;;  %v8381_v36 = vld [vmem:[#allocation30_spill] sm:$0xff]  ;;  %v8387_v15 = vmov 1.0   ;;  %v3710_v62 = vld [vmem:[%s7974_s2] sm:$0xff] }
 0xb07   :  { %4508 = vmatprep.subr.bf16.mxu1 %v4507_v43  ;;  %4528 = vmatpush1.bf16.msra.mxu0 %v4527_v33  ;;  %v4511_v43 = vpack.c.bf16 %v3659_v52, %v7646_v21  ;;  %v3690_v29 = vmul.f32 %v3688_v22, %v8382_v7  ;;  %v3670_v21 = vsel %vm499_vm5, %v7751_v59, %v7762_v38  ;;  %v4963_v59 = vld [vmem:[%s7976_s4 + $0x38] ss:$0 sm:$0xff]  ;;  %v4965_v34 = vld [vmem:[%s7976_s4 + $0x28] ss:$0 sm:$0xff] }
 0xb08   :  { %v4509_v24 = vpack.c.bf16 %v3642_v13, %v3626_v4  ;;  %v3683_v40 = vpop.permute.xlu0 %3682  ;;  %v4529_v39 = vpack.c.bf16 %v3645_v56, %v3629_v58  ;;  %v4535_v23 = vpack.c.bf16 %v3660_v5, %v7705_v37  ;;  %v3676_v30 = vmul.f32 %v3670_v21, %v8386_v49 }
 0xb09   :  { %v3687_v47 = vsel %vm580_vm6, %v7744_v9, %v3683_v40  ;;  %v3686_v11 = vsel %vm580_vm6, %v3683_v40, %v3685_v1  ;;  %v3677_v9 = vmul.f32 %v3673_v60, %v8383_v2  ;;  %v4517_v37 = vpack.c.bf16 %v3690_v29, %v3674_v10 }
 0xb0a   :  { %v3691_v46 = vmul.f32 %v3687_v47, %v8381_v36  ;;  %4510 = vmatpush1.bf16.msra.mxu1 %v4509_v24  ;;  %4530 = vmatprep.subr.bf16.mxu0 %v4529_v39  ;;  %v3692_v26 = vmul.f32 %v3686_v11, %v8385_v44  ;;  %v1011_v47 = vld [vmem:[%s7975_s3 + $0x10] sm:$0xff]  ;;  %v1013_v11 = vld [vmem:[%s7975_s3 + $0x20] sm:$0xff]  ;;  %v1014_v36 = vld [vmem:[%s7975_s3 + $0x28] sm:$0xff] }
 0xb0b   :  { %4512 = vmatprep.subr.bf16.mxu1 %v4511_v43  ;;  %4532 = vmatpush1.bf16.msra.mxu0 %v4531_v27  ;;  %v4537_v33 = vpack.c.bf16 %v3693_v18, %v3677_v9 }
 0xb0c   :  { %4534 = vmatprep.subr.bf16.mxu0 %v4533_v17  ;;  %v3695_v1 = vpop.permute.xlu0 %3694  ;;  %v4515_v25 = vpack.c.bf16 %v3691_v46, %v3675_v53  ;;  %v4539_v48 = vpack.c.bf16 %v3692_v26, %v3676_v30  ;;  %v1012_v53 = vld [vmem:[%s7975_s3 + $0x18] sm:$0xff] }
 0xb0d   :  { %v3705_v22 = vsel %vm661_vm7, %v3701_v51, %v3695_v1  ;;  %v3704_v13 = vsel %vm661_vm7, %v3695_v1, %v7746_v42 }
 0xb0e   :  { %v3709_v38 = vmul.f32 %v4963_v59, %v3705_v22  ;;  %4514 = vmatpush1.bf16.msra.mxu1 %v4513_v16  ;;  %v3706_v57 = vmul.f32 %v4964_v50, %v3704_v13 }
 0xb0f   :  { %4516 = vmatprep.subr.bf16.mxu1 %v4515_v25  ;;  %4536 = vmatpush1.bf16.msra.mxu0 %v4535_v23 }
 0xb10   :  { %4538 = vmatprep.subr.bf16.mxu0 %v4537_v33  ;;  %v3699_v31 = vpop.permute.xlu0 %3698  ;;  %v4541_v35 = vpack.c.bf16 %v8387_v15, %v3709_v38  ;;  %v4522_v61 = vpack.c.bf16 %v8387_v15, %v3706_v57 }
 0xb11   :  { %v3702_v45 = vsel %vm661_vm7, %v3699_v31, %v3701_v51  ;;  %v3703_v56 = vsel %vm661_vm7, %v7746_v42, %v3699_v31 }
 0xb12   :  { %v3707_v28 = vmul.f32 %v4965_v34, %v3703_v56  ;;  %v3708_v52 = vmul.f32 %v4966_v19, %v3702_v45  ;;  %4518 = vmatpush1.bf16.msra.mxu1 %v4517_v37 }
 0xb13   :  { %4540 = vmatpush1.bf16.msra.mxu0 %v4539_v48 }
 0xb14   :  { %v4519_v8 = vpack.c.bf16 %v8387_v15, %v3707_v28  ;;  %v4544_v42 = vpack.c.bf16 %v8387_v15, %v3708_v52  ;;  %4543 = vmatprep.subr.msk.bf16.mxu0 %vm4520_vm0, %v4541_v35 }
 0xb16   :  { %4521 = vmatprep.subr.msk.bf16.mxu1 %vm4520_vm0, %v4519_v8 }
 0xb17   :  { %4524 = vmatpush1.bf16.msk.msra.mxu1 %vm4520_vm0, %v4522_v61  ;;  %4546 = vmatpush1.bf16.msk.msra.mxu0 %vm4520_vm0, %v4544_v42 }
 0xb1a   :  { %4215 = vmatmul.mubr.msk.f32.vlgmr.msra.gmra.mrb[76].mxu1 %vm3711_vm1, %v3710_v62  ;;  %4218 = vmatmul.mubr.msk.f32.vlgmr.msra.gmra.mrb[76].mxu0 %vm3711_vm1, %v3710_v62 }
 0xb1b   :  { %3969 = vmatprep.mubr.f32.mxu1 %v8349_v32  ;;  %4058 = vmatprep.mubr.f32.mxu0 %v8349_v32 }
 0xbed   :  { %v3781_v55 = vpop.f32.mrb[76].mxu1  ;;  %v3852_v3 = vpop.f32.mrb[76].mxu0 }
 0xbee   :  { %v3857_v4 = vmax.f32 %v3781_v55, 0.0  ;;  %v3859_v63 = vmax.f32 %v3852_v3, 0.0  ;;  %v3783_v58 = vpop.f32.mrb[77].mxu1  ;;  %v3854_v0 = vpop.f32.mrb[77].mxu0 }
 0xbef   :  { %v3858_v41 = vmax.f32 %v3783_v58, 0.0  ;;  %v3860_v12 = vmax.f32 %v3854_v0, 0.0 }
 0xbf0   :  { %v3865_v17 = vrot.slane %v3857_v4, 4  ;;  %v3867_v60 = vrot.slane %v3859_v63, 4 }
 0xbf1   :  { %v3866_v20 = vrot.slane %v3858_v41, 4  ;;  %v3868_v18 = vrot.slane %v3860_v12, 4 }
 0xbf2   :  { %v3873_v24 = vadd.f32 %v3865_v17, %v3857_v4  ;;  %v3875_v40 = vadd.f32 %v3867_v60, %v3859_v63 }
 0xbf3   :  { %v3874_v39 = vadd.f32 %v3866_v20, %v3858_v41  ;;  %v3876_v27 = vadd.f32 %v3868_v18, %v3860_v12 }
 0xbf4   :  { %v3877_v43 = vsel %vm1015_vm10, %v3873_v24, 1.0  ;;  %v3879_v54 = vsel %vm1015_vm10, %v3875_v40, 1.0 }
 0xbf5   :  { %v3878_v14 = vsel %vm1015_vm10, %v3874_v39, 1.0  ;;  %v3880_v5 = vsel %vm1015_vm10, %v3876_v27, 1.0 }
 0xbf6   :  { %4219 = vmatprep.subr.msk.mxu1 %vm1027_vm11, %v3878_v14  ;;  %4225 = vmatprep.subr.msk.mxu0 %vm1027_vm11, %v3880_v5 }
 0xbf7   :  { %4220 = vmatpush1.msk.msra.mxu1 %vm1027_vm11, %v3877_v43  ;;  %4226 = vmatpush1.msk.msra.mxu0 %vm1027_vm11, %v3879_v54 }
 0xbf8   :  { %4221 = vmatmul.mubr.msk.f32.vlgmr.msra.gmra.mrb[78].mxu1 %vm1020_vm12, %v1011_v47  ;;  %4227 = vmatmul.mubr.msk.f32.vlgmr.msra.gmra.mrb[78].mxu0 %vm1020_vm12, %v1011_v47 }
 0xbf9   :  { %3975 = vmatprep.mubr.f32.mxu1 %v8349_v32  ;;  %4064 = vmatprep.mubr.f32.mxu0 %v8349_v32 }
 0xbfc   :  { %4222 = vmatmul.mubr.msk.f32.gmra.mrb[80].mxu1 %vm1020_vm12, %v1012_v53  ;;  %4228 = vmatmul.mubr.msk.f32.gmra.mrb[80].mxu0 %vm1020_vm12, %v1012_v53 }
 0xbfd   :  { %3981 = vmatprep.mubr.f32.mxu1 %v8349_v32  ;;  %4070 = vmatprep.mubr.f32.mxu0 %v8349_v32 }
 0xc00   :  { %4223 = vmatmul.mubr.msk.f32.gmra.mrb[82].mxu1 %vm1020_vm12, %v1013_v11  ;;  %4229 = vmatmul.mubr.msk.f32.gmra.mrb[82].mxu0 %vm1020_vm12, %v1013_v11 }
 0xc01   :  { %3987 = vmatprep.mubr.f32.mxu1 %v8349_v32  ;;  %4076 = vmatprep.mubr.f32.mxu0 %v8349_v32 }
 0xc04   :  { %4224 = vmatmul.mubr.msk.f32.gmra.mrb[84].mxu1 %vm1020_vm12, %v1014_v36  ;;  %4230 = vmatmul.mubr.msk.f32.gmra.mrb[84].mxu0 %vm1020_vm12, %v1014_v36 }
 0xccb   :  { %v3971_v46 = vpop.f32.mrb[78].mxu1  ;;  %v4060_v16 = vpop.f32.mrb[78].mxu0 }
 0xccc   :  { %v4083_v7 = vmax.f32 %v3971_v46, 0.0  ;;  %v4085_v29 = vmax.f32 %v4060_v16, 0.0  ;;  %v3973_v2 = vpop.f32.mrb[79].mxu1  ;;  %v4062_v9 = vpop.f32.mrb[79].mxu0 }
 0xccd   :  { %v4084_v51 = vmax.f32 %v3973_v2, 0.0  ;;  %v4086_v21 = vmax.f32 %v4062_v9, 0.0 }
 0xcce   :  { %4099 = vst [vmem:[%s7978_s6] sm:$0xff] %v4083_v7  ;;  %4101 = vst [vmem:[%s7978_s6 + $0x10] sm:$0xff] %v4085_v29 }
 0xccf   :  { %4100 = vst [vmem:[%s7978_s6 + $0x8] sm:$0xff] %v4084_v51  ;;  %4102 = vst [vmem:[%s7978_s6 + $0x18] sm:$0xff] %v4086_v21  ;;  %v3977_v32 = vpop.f32.mrb[80].mxu1  ;;  %v4066_v1 = vpop.f32.mrb[80].mxu0 }
 0xcd0   :  { %v4087_v25 = vmax.f32 %v3977_v32, 0.0  ;;  %v4089_v6 = vmax.f32 %v4066_v1, 0.0  ;;  %v3979_v10 = vpop.f32.mrb[81].mxu1  ;;  %v4068_v23 = vpop.f32.mrb[81].mxu0 }
 0xcd1   :  { %v4088_v44 = vmax.f32 %v3979_v10, 0.0  ;;  %v4090_v26 = vmax.f32 %v4068_v23, 0.0 }
 0xcd2   :  { %4103 = vst [vmem:[%s7978_s6 + $0x20] sm:$0xff] %v4087_v25  ;;  %4105 = vst [vmem:[%s7978_s6 + $0x30] sm:$0xff] %v4089_v6 }
 0xcd3   :  { %4104 = vst [vmem:[%s7978_s6 + $0x28] sm:$0xff] %v4088_v44  ;;  %4106 = vst [vmem:[%s7978_s6 + $0x38] sm:$0xff] %v4090_v26  ;;  %v3983_v22 = vpop.f32.mrb[82].mxu1  ;;  %v4072_v13 = vpop.f32.mrb[82].mxu0 }
 0xcd4   :  { %v4091_v59 = vmax.f32 %v3983_v22, 0.0  ;;  %v4093_v38 = vmax.f32 %v4072_v13, 0.0  ;;  %v3985_v33 = vpop.f32.mrb[83].mxu1  ;;  %v4074_v49 = vpop.f32.mrb[83].mxu0 }
 0xcd5   :  { %v4092_v30 = vmax.f32 %v3985_v33, 0.0  ;;  %v4094_v37 = vmax.f32 %v4074_v49, 0.0 }
 0xcd6   :  { %4107 = vst [vmem:[%s7978_s6 + $0x40] sm:$0xff] %v4091_v59  ;;  %4109 = vst [vmem:[%s7978_s6 + $0x50] sm:$0xff] %v4093_v38 }
 0xcd7   :  { %4108 = vst [vmem:[%s7978_s6 + $0x48] sm:$0xff] %v4092_v30  ;;  %4110 = vst [vmem:[%s7978_s6 + $0x58] sm:$0xff] %v4094_v37  ;;  %v3989_v31 = vpop.f32.mrb[84].mxu1  ;;  %v4078_v48 = vpop.f32.mrb[84].mxu0 }
 0xcd8   :  { %v4095_v50 = vmax.f32 %v3989_v31, 0.0  ;;  %v4097_v57 = vmax.f32 %v4078_v48, 0.0  ;;  %v3991_v45 = vpop.f32.mrb[85].mxu1  ;;  %v4080_v56 = vpop.f32.mrb[85].mxu0 }
 0xcd9   :  { %v4096_v15 = vmax.f32 %v3991_v45, 0.0  ;;  %v4098_v35 = vmax.f32 %v4080_v56, 0.0 }
 0xcda   :  { %4111 = vst [vmem:[%s7978_s6 + $0x60] sm:$0xff] %v4095_v50  ;;  %4113 = vst [vmem:[%s7978_s6 + $0x70] sm:$0xff] %v4097_v57 }
 0xcdb   :  { %4112 = vst [vmem:[%s7978_s6 + $0x68] sm:$0xff] %v4096_v15  ;;  %4114 = vst [vmem:[%s7978_s6 + $0x78] sm:$0xff] %v4098_v35 }
 0xcdc   :  { %4119 = vsyncpa [#allocation3], 1 }

</bundles_post_ra>
